<compile_context>
chip_gen: v7x
topology: tpu7x:2x2x1
jax: 0.10.0
libtpu: 0.0.40
codegen_flags: <defaults>
</compile_context>

<pallas_src>
import functools

import jax
import jax.numpy as jnp
import numpy as np
from jax.experimental import pallas as pl
from jax.experimental.pallas import tpu as pltpu

EPS = 1e-5
_LP = 8          # left halo columns in the pad buffer (sublane-aligned store)


def _block_kernel(x_ref, w1_ref, b1_ref, w2_ref, b2_ref, w3_ref, b3_ref,
                  o_ref, pad_ref):
    """One full image of the bottleneck block.

    x_ref   : (1, H, W, Cin)          NHWC input image (auto-pipelined)
    w1_ref  : (Cin, Cpad)             conv1 (1x1), bn1 scale folded, lane-padded
    w2_ref  : (9*Cpad, Cpad)          conv2 (3x3) as im2col matmul, bn2 folded
    w3_ref  : (Cpad, Cout)            conv3 (1x1), bn3 scale folded
    b*_ref  : (1, C)                  folded bn bias (f32)
    pad_ref : (H+2, W+_LP+1, Cpad)    zero-halo'd post-conv1 activation scratch
    """
    _, H, W, Cin = x_ref.shape
    Cpad = w1_ref.shape[1]
    Cout = w3_ref.shape[1]
    WP = pad_ref.shape[1]                  # W + _LP + 1
    M = H * W
    cdt = w1_ref.dtype                     # MXU operand dtype (bf16 or f32)

    # ---- zero ONLY the pad-buffer halo (top/bottom rows, left/right cols) --
    # (scratch persists across grid steps; the interior is fully rewritten.)
    pad_ref[0:1, :, :] = jnp.zeros((1, WP, Cpad), cdt)
    pad_ref[H + 1:H + 2, :, :] = jnp.zeros((1, WP, Cpad), cdt)
    pad_ref[1:H + 1, 0:_LP, :] = jnp.zeros((H, _LP, Cpad), cdt)
    pad_ref[1:H + 1, _LP + W:_LP + W + 1, :] = jnp.zeros((H, 1, Cpad), cdt)

    # ---- conv1 (1x1) + bn1 + relu  (BN scale folded into w1) --------------
    x = x_ref[0].reshape(M, Cin)                      # also the identity path
    h1 = jnp.dot(x.astype(cdt), w1_ref[...],
                 preferred_element_type=jnp.float32)
    h1 = jnp.maximum(h1 + b1_ref[...], 0.0)
    # Interior store starts at lane offset 0 / sublane offset _LP (aligned).
    pad_ref[1:H + 1, _LP:_LP + W, :] = h1.astype(cdt).reshape(H, W, Cpad)

    # ---- conv2 (3x3, stride 1, pad 1) as ONE lane-aligned im2col matmul ----
    patches = [
        pad_ref[kh:kh + H, (_LP - 1) + kw:(_LP - 1) + kw + W, :].reshape(M, Cpad)
        for kh in range(3) for kw in range(3)
    ]
    p = jnp.concatenate(patches, axis=-1)             # (M, 9*Cpad), lane-aligned
    h2 = jnp.dot(p, w2_ref[...], preferred_element_type=jnp.float32)
    h2 = jnp.maximum(h2 + b2_ref[...], 0.0)

    # ---- conv3 (1x1) + bn3 + residual + relu -------------------------------
    h3 = jnp.dot(h2.astype(cdt), w3_ref[...],
                 preferred_element_type=jnp.float32)
    h3 = h3 + b3_ref[...]
    out = jnp.maximum(h3 + x.astype(jnp.float32), 0.0)
    o_ref[...] = out.reshape(1, H, W, Cout).astype(o_ref.dtype)


def _fold_bn(gamma, beta, mean, var):
    scale = gamma / jnp.sqrt(var + EPS)
    bias = beta - mean * scale
    return scale, bias


def _round_up(x, m):
    return ((x + m - 1) // m) * m


def _vmem_budget_bytes():
    # VMEM-aware budget: v7x has 64 MiB physical per TC, v5e/v6e 128 MiB.
    try:
        cap = pltpu.get_tpu_info().vmem_capacity_bytes
    except Exception:
        cap = 64 * 1024 * 1024                       # conservative fallback
    return int(cap * 3 // 4)                         # leave headroom


def _block_forward_nhwc(x, params, mxu_dtype):
    """Fused bottleneck block, NHWC in / NHWC out (chain-friendly layout).

    Accepts f32 or bf16 activations; elementwise math stays f32 in-kernel."""
    (w1, g1, be1, m1, v1,
     w2, g2, be2, m2, v2,
     w3, g3, be3, m3, v3) = params

    N, H, W, Cin = x.shape
    Cmid = w1.shape[0]
    Cout = w3.shape[0]
    assert Cout == Cin, "identity residual requires in_channels == 4*out_channels"
    Cpad = _round_up(Cmid, 128)          # lane-pad the bottleneck width

    s1, b1 = _fold_bn(g1, be1, m1, v1)
    s2, b2 = _fold_bn(g2, be2, m2, v2)
    s3, b3 = _fold_bn(g3, be3, m3, v3)

    f32 = jnp.float32
    # Torch OIHW conv weights -> matmul form, BN scale folded into the output
    # channels, bottleneck channels zero-padded to Cpad lanes.
    w1_k = (jnp.zeros((Cin, Cpad), f32)
            .at[:, :Cmid].set(jnp.transpose(w1[:, :, 0, 0], (1, 0)) * s1[None, :])
            ).astype(mxu_dtype)
    b1_k = jnp.zeros((1, Cpad), f32).at[:, :Cmid].set(b1[None, :])

    w2_t = jnp.transpose(w2, (2, 3, 1, 0)) * s2[None, None, None, :]  # (3,3,I,O)
    w2_k = (jnp.zeros((3, 3, Cpad, Cpad), f32)
            .at[:, :, :Cmid, :Cmid].set(w2_t)
            ).reshape(9 * Cpad, Cpad).astype(mxu_dtype)
    b2_k = jnp.zeros((1, Cpad), f32).at[:, :Cmid].set(b2[None, :])

    w3_k = (jnp.zeros((Cpad, Cout), f32)
            .at[:Cmid, :].set(jnp.transpose(w3[:, :, 0, 0], (1, 0)) * s3[None, :])
            ).astype(mxu_dtype)
    b3_k = b3.reshape(1, Cout).astype(f32)

    grid = (N,)

    def _rep(arr):
        nd = arr.ndim
        return pl.BlockSpec(arr.shape, lambda n, _nd=nd: (0,) * _nd)

    in_specs = [
        pl.BlockSpec((1, H, W, Cin), lambda n: (n, 0, 0, 0)),   # one image
        _rep(w1_k), _rep(b1_k), _rep(w2_k), _rep(b2_k), _rep(w3_k), _rep(b3_k),
    ]
    out_spec = pl.BlockSpec((1, H, W, Cout), lambda n: (n, 0, 0, 0))

    # ---- VMEM sizing (per grid step) ---------------------------------------
    act_itm = jnp.dtype(x.dtype).itemsize
    mxu_itm = jnp.dtype(mxu_dtype).itemsize
    wbytes = ((w1_k.size + w2_k.size + w3_k.size) * mxu_itm
              + (b1_k.size + b2_k.size + b3_k.size) * 4)
    pad_bytes = (H + 2) * (W + _LP + 1) * Cpad * mxu_itm
    interm = (H * W * (9 * Cpad) * mxu_itm          # im2col matrix
              + 4 * H * W * max(Cpad, Cout) * 4)    # f32 temporaries (rough)
    est = (2 * H * W * (Cin + Cout) * act_itm       # double-buffered x / out
           + 2 * wbytes + pad_bytes + interm)
    budget = _vmem_budget_bytes()
    if est > budget:
        # TODO(synk): row-tiled (halo-exchange) fallback for very large images.
        raise ValueError("whole-image working set (%d B) exceeds the VMEM "
                         "budget (%d B); row-tiling fallback not implemented"
                         % (est, budget))
    vmem_limit = int(min(budget, max(32 * 1024 * 1024, 2 * est)))

    # Honest cost estimate: input read once, output written once, weights once.
    flops = 2 * N * H * W * (Cin * Cmid + 9 * Cmid * Cmid + Cmid * Cout)
    bytes_accessed = N * H * W * (Cin + Cout) * act_itm + wbytes

    return pl.pallas_call(
        _block_kernel,
        out_shape=jax.ShapeDtypeStruct((N, H, W, Cout), x.dtype),
        grid_spec=pltpu.PrefetchScalarGridSpec(
            num_scalar_prefetch=0,
            grid=grid,
            in_specs=in_specs,
            out_specs=out_spec,
            scratch_shapes=[
                pltpu.VMEM((H + 2, W + _LP + 1, Cpad), mxu_dtype),  # pad buffer
            ],
        ),
        compiler_params=pltpu.CompilerParams(
            dimension_semantics=("parallel",),
            vmem_limit_bytes=vmem_limit,
        ),
        cost_estimate=pl.CostEstimate(
            flops=int(flops), transcendentals=0,
            bytes_accessed=int(bytes_accessed)),
    )(x, w1_k, b1_k, w2_k, b2_k, w3_k, b3_k)


@functools.partial(jax.jit, static_argnames=("mxu_dtype",))
def block_forward(x_nchw, params, mxu_dtype=jnp.bfloat16):
    """NCHW wrapper (PyTorch layout). bf16 MXU operands by default on all
    generations (f32 accumulation / bias / ReLU / residual in-kernel); pass
    mxu_dtype=jnp.float32 for the exact path. When chaining blocks, call
    _block_forward_nhwc directly and hoist the transposes to the model edge."""
    x = jnp.transpose(x_nchw, (0, 2, 3, 1))          # NCHW -> NHWC
    out = _block_forward_nhwc(x, params, mxu_dtype)
    return jnp.transpose(out, (0, 3, 1, 2))          # NHWC -> NCHW


# ------------------------- pure-JAX reference ----------------------------
def _conv_nchw(x, w, stride, pad):
    return jax.lax.conv_general_dilated(
        x, w, (stride, stride), [(pad, pad), (pad, pad)],
        dimension_numbers=("NCHW", "OIHW", "NCHW"))


def _bn_nchw(x, g, b, m, v):
    g = g[None, :, None, None]
    b = b[None, :, None, None]
    m = m[None, :, None, None]
    v = v[None, :, None, None]
    return (x - m) / jnp.sqrt(v + EPS) * g + b


def block_reference(x, params):
    (w1, g1, b1, m1, v1,
     w2, g2, b2, m2, v2,
     w3, g3, b3, m3, v3) = params
    identity = x
    h = jax.nn.relu(_bn_nchw(_conv_nchw(x, w1, 1, 0), g1, b1, m1, v1))
    h = jax.nn.relu(_bn_nchw(_conv_nchw(h, w2, 1, 1), g2, b2, m2, v2))
    h = _bn_nchw(_conv_nchw(h, w3, 1, 0), g3, b3, m3, v3)
    return jax.nn.relu(h + identity)


# ------------------------------ driver ------------------------------------
def make_params(key, in_channels, out_channels):
    exp = 4
    ks = list(jax.random.split(key, 16))

    def nrm(k, shape, s=0.05):
        return jax.random.normal(k, shape, jnp.float32) * s

    def bn(k, c):
        k1, k2, k3, k4 = jax.random.split(k, 4)
        gamma = jax.random.uniform(k1, (c,), jnp.float32, 0.5, 1.5)
        beta = jax.random.normal(k2, (c,), jnp.float32) * 0.1
        mean = jax.random.normal(k3, (c,), jnp.float32) * 0.1
        var = jax.random.uniform(k4, (c,), jnp.float32, 0.5, 1.5)
        return gamma, beta, mean, var

    w1 = nrm(ks[0], (out_channels, in_channels, 1, 1))
    g1, b1, m1, v1 = bn(ks[1], out_channels)
    w2 = nrm(ks[2], (out_channels, out_channels, 3, 3))
    g2, b2, m2, v2 = bn(ks[3], out_channels)
    w3 = nrm(ks[4], (out_channels * exp, out_channels, 1, 1))
    g3, b3, m3, v3 = bn(ks[5], out_channels * exp)
    return (w1, g1, b1, m1, v1,
            w2, g2, b2, m2, v2,
            w3, g3, b3, m3, v3)


if __name__ == "__main__":
    key = jax.random.PRNGKey(0)
    kx, kp = jax.random.split(key)

    # downsample=None path => in_channels == out_channels * expansion, stride=1
    N, H, W = 2, 16, 16
    out_channels = 32
    in_channels = out_channels * 4          # 128

    x = jax.random.normal(kx, (N, in_channels, H, W), jnp.float32)
    params = make_params(kp, in_channels, out_channels)

    ref = jax.block_until_ready(block_reference(x, params))

    # Exact f32-MXU-operand path.
    out_f32 = jax.block_until_ready(
        block_forward(x, params, mxu_dtype=jnp.float32))
    np.testing.assert_allclose(np.asarray(out_f32), np.asarray(ref),
                               rtol=1e-4, atol=1e-4)

    # Default bf16-MXU-operand perf path (all generations); f32 accumulation
    # + f32 bias/ReLU/residual inside the kernel.
    out_bf16 = jax.block_until_ready(block_forward(x, params))
    np.testing.assert_allclose(np.asarray(out_bf16), np.asarray(ref),
                               rtol=1e-1, atol=1e-1)

    assert out_f32.shape == (N, in_channels, H, W)
    print("KERNEL_OK")
</pallas_src>

<mosaic_0001>
module attributes {stable_mosaic.version = 11 : i64} {
  func.func @_block_kernel(%arg0: i32, %arg1: memref<1x16x16x128xf32, #tpu.memory_space<vmem>>, %arg2: memref<128x128xf32, #tpu.memory_space<vmem>>, %arg3: memref<1x128xf32, #tpu.memory_space<vmem>>, %arg4: memref<1152x128xf32, #tpu.memory_space<vmem>>, %arg5: memref<1x128xf32, #tpu.memory_space<vmem>>, %arg6: memref<128x128xf32, #tpu.memory_space<vmem>>, %arg7: memref<1x128xf32, #tpu.memory_space<vmem>>, %arg8: memref<1x16x16x128xf32, #tpu.memory_space<vmem>>, %arg9: memref<18x25x128xf32, #tpu.memory_space<vmem>>) attributes {dimension_semantics = [#tpu.dimension_semantics<parallel>], iteration_bounds = array<i64: 2>, scalar_prefetch = 0 : i64, scratch_operands = 1 : i64, tpu.core_type = #tpu.core_type<tc>, window_params = [{transform_indices = @transform_0, window_bounds = array<i64: 1, 16, 16, 128>}, {pipeline_mode = #tpu.pipeline_mode<synchronous>, transform_indices = @transform_1, window_bounds = array<i64: 128, 128>}, {pipeline_mode = #tpu.pipeline_mode<synchronous>, transform_indices = @transform_2, window_bounds = array<i64: 1, 128>}, {pipeline_mode = #tpu.pipeline_mode<synchronous>, transform_indices = @transform_3, window_bounds = array<i64: 1152, 128>}, {pipeline_mode = #tpu.pipeline_mode<synchronous>, transform_indices = @transform_4, window_bounds = array<i64: 1, 128>}, {pipeline_mode = #tpu.pipeline_mode<synchronous>, transform_indices = @transform_5, window_bounds = array<i64: 128, 128>}, {pipeline_mode = #tpu.pipeline_mode<synchronous>, transform_indices = @transform_6, window_bounds = array<i64: 1, 128>}, {transform_indices = @transform_7, window_bounds = array<i64: 1, 16, 16, 128>}]} {
    %cst = arith.constant 0.000000e+00 : f32
    %0 = vector.broadcast %cst : f32 to vector<1x25x128xf32>
    %c0 = arith.constant 0 : index
    %c0_0 = arith.constant 0 : index
    %c0_1 = arith.constant 0 : index
    %1 = vector.load %arg9[%c0, %c0_0, %c0_1] : memref<18x25x128xf32, #tpu.memory_space<vmem>>, vector<1x25x128xf32>
    tpu.vector_store %arg9[%c0, %c0_0, %c0_1], %0 {strides = array<i32>} : memref<18x25x128xf32, #tpu.memory_space<vmem>>, vector<1x25x128xf32>,
    %cst_2 = arith.constant 0.000000e+00 : f32
    %2 = vector.broadcast %cst_2 : f32 to vector<1x25x128xf32>
    %c17 = arith.constant 17 : index
    %c0_3 = arith.constant 0 : index
    %c0_4 = arith.constant 0 : index
    %3 = vector.load %arg9[%c17, %c0_3, %c0_4] : memref<18x25x128xf32, #tpu.memory_space<vmem>>, vector<1x25x128xf32>
    tpu.vector_store %arg9[%c17, %c0_3, %c0_4], %2 {strides = array<i32>} : memref<18x25x128xf32, #tpu.memory_space<vmem>>, vector<1x25x128xf32>,
    %cst_5 = arith.constant 0.000000e+00 : f32
    %4 = vector.broadcast %cst_5 : f32 to vector<16x8x128xf32>
    %c1 = arith.constant 1 : index
    %c0_6 = arith.constant 0 : index
    %c0_7 = arith.constant 0 : index
    %5 = vector.load %arg9[%c1, %c0_6, %c0_7] : memref<18x25x128xf32, #tpu.memory_space<vmem>>, vector<16x8x128xf32>
    tpu.vector_store %arg9[%c1, %c0_6, %c0_7], %4 {strides = array<i32>} : memref<18x25x128xf32, #tpu.memory_space<vmem>>, vector<16x8x128xf32>,
    %cst_8 = arith.constant 0.000000e+00 : f32
    %6 = vector.broadcast %cst_8 : f32 to vector<16x1x128xf32>
    %c1_9 = arith.constant 1 : index
    %c24 = arith.constant 24 : index
    %c0_10 = arith.constant 0 : index
    %7 = vector.load %arg9[%c1_9, %c24, %c0_10] : memref<18x25x128xf32, #tpu.memory_space<vmem>>, vector<16x1x128xf32>
    tpu.vector_store %arg9[%c1_9, %c24, %c0_10], %6 {strides = array<i32>} : memref<18x25x128xf32, #tpu.memory_space<vmem>>, vector<16x1x128xf32>,
    %c0_11 = arith.constant 0 : index
    %c0_12 = arith.constant 0 : index
    %c0_13 = arith.constant 0 : index
    %c0_14 = arith.constant 0 : index
    %8 = vector.load %arg1[%c0_11, %c0_12, %c0_13, %c0_14] : memref<1x16x16x128xf32, #tpu.memory_space<vmem>>, vector<1x16x16x128xf32>
    %9 = vector.shape_cast %8 : vector<1x16x16x128xf32> to vector<16x16x128xf32>
    %10 = vector.shape_cast %9 : vector<16x16x128xf32> to vector<256x128xf32>
    %c0_15 = arith.constant 0 : index
    %c0_16 = arith.constant 0 : index
    %11 = vector.load %arg2[%c0_15, %c0_16] : memref<128x128xf32, #tpu.memory_space<vmem>>, vector<128x128xf32>
    %cst_17 = arith.constant dense<0.000000e+00> : vector<256x128xf32>
    %12 = tpu.matmul %10, %11, %cst_17 {dimension_numbers = #tpu.dot_dimension_numbers<[1], [0], [0], [1], [0, 0, 1, 1], [], []>} : vector<256x128xf32>, vector<128x128xf32>, vector<256x128xf32> -> vector<256x128xf32>
    %c0_18 = arith.constant 0 : index
    %c0_19 = arith.constant 0 : index
    %13 = vector.load %arg3[%c0_18, %c0_19] : memref<1x128xf32, #tpu.memory_space<vmem>>, vector<1x128xf32>
    %14 = vector.broadcast %13 : vector<1x128xf32> to vector<256x128xf32>
    %15 = arith.addf %12, %14 : vector<256x128xf32>
    %cst_20 = arith.constant 0.000000e+00 : f32
    %16 = vector.broadcast %cst_20 : f32 to vector<256x128xf32>
    %17 = arith.maximumf %15, %16 : vector<256x128xf32>
    %18 = vector.shape_cast %17 : vector<256x128xf32> to vector<16x16x128xf32>
    %c1_21 = arith.constant 1 : index
    %c8 = arith.constant 8 : index
    %c0_22 = arith.constant 0 : index
    %19 = vector.load %arg9[%c1_21, %c8, %c0_22] : memref<18x25x128xf32, #tpu.memory_space<vmem>>, vector<16x16x128xf32>
    tpu.vector_store %arg9[%c1_21, %c8, %c0_22], %18 {strides = array<i32>} : memref<18x25x128xf32, #tpu.memory_space<vmem>>, vector<16x16x128xf32>,
    %c0_23 = arith.constant 0 : index
    %c7 = arith.constant 7 : index
    %c0_24 = arith.constant 0 : index
    %20 = vector.load %arg9[%c0_23, %c7, %c0_24] : memref<18x25x128xf32, #tpu.memory_space<vmem>>, vector<16x16x128xf32>
    %21 = vector.shape_cast %20 : vector<16x16x128xf32> to vector<256x128xf32>
    %c0_25 = arith.constant 0 : index
    %c8_26 = arith.constant 8 : index
    %c0_27 = arith.constant 0 : index
    %22 = vector.load %arg9[%c0_25, %c8_26, %c0_27] : memref<18x25x128xf32, #tpu.memory_space<vmem>>, vector<16x16x128xf32>
    %23 = vector.shape_cast %22 : vector<16x16x128xf32> to vector<256x128xf32>
    %c0_28 = arith.constant 0 : index
    %c9 = arith.constant 9 : index
    %c0_29 = arith.constant 0 : index
    %24 = vector.load %arg9[%c0_28, %c9, %c0_29] : memref<18x25x128xf32, #tpu.memory_space<vmem>>, vector<16x16x128xf32>
    %25 = vector.shape_cast %24 : vector<16x16x128xf32> to vector<256x128xf32>
    %c1_30 = arith.constant 1 : index
    %c7_31 = arith.constant 7 : index
    %c0_32 = arith.constant 0 : index
    %26 = vector.load %arg9[%c1_30, %c7_31, %c0_32] : memref<18x25x128xf32, #tpu.memory_space<vmem>>, vector<16x16x128xf32>
    %27 = vector.shape_cast %26 : vector<16x16x128xf32> to vector<256x128xf32>
    %c1_33 = arith.constant 1 : index
    %c8_34 = arith.constant 8 : index
    %c0_35 = arith.constant 0 : index
    %28 = vector.load %arg9[%c1_33, %c8_34, %c0_35] : memref<18x25x128xf32, #tpu.memory_space<vmem>>, vector<16x16x128xf32>
    %29 = vector.shape_cast %28 : vector<16x16x128xf32> to vector<256x128xf32>
    %c1_36 = arith.constant 1 : index
    %c9_37 = arith.constant 9 : index
    %c0_38 = arith.constant 0 : index
    %30 = vector.load %arg9[%c1_36, %c9_37, %c0_38] : memref<18x25x128xf32, #tpu.memory_space<vmem>>, vector<16x16x128xf32>
    %31 = vector.shape_cast %30 : vector<16x16x128xf32> to vector<256x128xf32>
    %c2 = arith.constant 2 : index
    %c7_39 = arith.constant 7 : index
    %c0_40 = arith.constant 0 : index
    %32 = vector.load %arg9[%c2, %c7_39, %c0_40] : memref<18x25x128xf32, #tpu.memory_space<vmem>>, vector<16x16x128xf32>
    %33 = vector.shape_cast %32 : vector<16x16x128xf32> to vector<256x128xf32>
    %c2_41 = arith.constant 2 : index
    %c8_42 = arith.constant 8 : index
    %c0_43 = arith.constant 0 : index
    %34 = vector.load %arg9[%c2_41, %c8_42, %c0_43] : memref<18x25x128xf32, #tpu.memory_space<vmem>>, vector<16x16x128xf32>
    %35 = vector.shape_cast %34 : vector<16x16x128xf32> to vector<256x128xf32>
    %c2_44 = arith.constant 2 : index
    %c9_45 = arith.constant 9 : index
    %c0_46 = arith.constant 0 : index
    %36 = vector.load %arg9[%c2_44, %c9_45, %c0_46] : memref<18x25x128xf32, #tpu.memory_space<vmem>>, vector<16x16x128xf32>
    %37 = vector.shape_cast %36 : vector<16x16x128xf32> to vector<256x128xf32>
    %38 = tpu.concatenate %21, %23, %25, %27, %29, %31, %33, %35, %37 in 1 : vector<256x128xf32>, vector<256x128xf32>, vector<256x128xf32>, vector<256x128xf32>, vector<256x128xf32>, vector<256x128xf32>, vector<256x128xf32>, vector<256x128xf32>, vector<256x128xf32> -> vector<256x1152xf32>
    %c0_47 = arith.constant 0 : index
    %c0_48 = arith.constant 0 : index
    %39 = vector.load %arg4[%c0_47, %c0_48] : memref<1152x128xf32, #tpu.memory_space<vmem>>, vector<1152x128xf32>
    %cst_49 = arith.constant dense<0.000000e+00> : vector<256x128xf32>
    %40 = tpu.matmul %38, %39, %cst_49 {dimension_numbers = #tpu.dot_dimension_numbers<[1], [0], [0], [1], [0, 0, 1, 1], [], []>} : vector<256x1152xf32>, vector<1152x128xf32>, vector<256x128xf32> -> vector<256x128xf32>
    %c0_50 = arith.constant 0 : index
    %c0_51 = arith.constant 0 : index
    %41 = vector.load %arg5[%c0_50, %c0_51] : memref<1x128xf32, #tpu.memory_space<vmem>>, vector<1x128xf32>
    %42 = vector.broadcast %41 : vector<1x128xf32> to vector<256x128xf32>
    %43 = arith.addf %40, %42 : vector<256x128xf32>
    %cst_52 = arith.constant 0.000000e+00 : f32
    %44 = vector.broadcast %cst_52 : f32 to vector<256x128xf32>
    %45 = arith.maximumf %43, %44 : vector<256x128xf32>
    %c0_53 = arith.constant 0 : index
    %c0_54 = arith.constant 0 : index
    %46 = vector.load %arg6[%c0_53, %c0_54] : memref<128x128xf32, #tpu.memory_space<vmem>>, vector<128x128xf32>
    %cst_55 = arith.constant dense<0.000000e+00> : vector<256x128xf32>
    %47 = tpu.matmul %45, %46, %cst_55 {dimension_numbers = #tpu.dot_dimension_numbers<[1], [0], [0], [1], [0, 0, 1, 1], [], []>} : vector<256x128xf32>, vector<128x128xf32>, vector<256x128xf32> -> vector<256x128xf32>
    %c0_56 = arith.constant 0 : index
    %c0_57 = arith.constant 0 : index
    %48 = vector.load %arg7[%c0_56, %c0_57] : memref<1x128xf32, #tpu.memory_space<vmem>>, vector<1x128xf32>
    %49 = vector.broadcast %48 : vector<1x128xf32> to vector<256x128xf32>
    %50 = arith.addf %47, %49 : vector<256x128xf32>
    %51 = arith.addf %50, %10 : vector<256x128xf32>
    %cst_58 = arith.constant 0.000000e+00 : f32
    %52 = vector.broadcast %cst_58 : f32 to vector<256x128xf32>
    %53 = arith.maximumf %51, %52 : vector<256x128xf32>
    %54 = vector.shape_cast %53 : vector<256x128xf32> to vector<1x16x16x128xf32>
    %c0_59 = arith.constant 0 : index
    %c0_60 = arith.constant 0 : index
    %c0_61 = arith.constant 0 : index
    %c0_62 = arith.constant 0 : index
    %55 = vector.load %arg8[%c0_59, %c0_60, %c0_61, %c0_62] : memref<1x16x16x128xf32, #tpu.memory_space<vmem>>, vector<1x16x16x128xf32>
    tpu.vector_store %arg8[%c0_59, %c0_60, %c0_61, %c0_62], %54 {strides = array<i32>} : memref<1x16x16x128xf32, #tpu.memory_space<vmem>>, vector<1x16x16x128xf32>,
    return
  }
  func.func @transform_0(%arg0: i32) -> (i32, i32, i32, i32) {
    %c0_i32 = arith.constant 0 : i32
    %c0_i32_0 = arith.constant 0 : i32
    %c0_i32_1 = arith.constant 0 : i32
    %c0_i32_2 = arith.constant 0 : i32
    return %arg0, %c0_i32, %c0_i32_0, %c0_i32_1 : i32, i32, i32, i32
  }
  func.func @transform_1(%arg0: i32) -> (i32, i32) {
    %c0_i32 = arith.constant 0 : i32
    %c0_i32_0 = arith.constant 0 : i32
    %c0_i32_1 = arith.constant 0 : i32
    return %c0_i32, %c0_i32_0 : i32, i32
  }
  func.func @transform_2(%arg0: i32) -> (i32, i32) {
    %c0_i32 = arith.constant 0 : i32
    %c0_i32_0 = arith.constant 0 : i32
    %c0_i32_1 = arith.constant 0 : i32
    return %c0_i32, %c0_i32_0 : i32, i32
  }
  func.func @transform_3(%arg0: i32) -> (i32, i32) {
    %c0_i32 = arith.constant 0 : i32
    %c0_i32_0 = arith.constant 0 : i32
    %c0_i32_1 = arith.constant 0 : i32
    return %c0_i32, %c0_i32_0 : i32, i32
  }
  func.func @transform_4(%arg0: i32) -> (i32, i32) {
    %c0_i32 = arith.constant 0 : i32
    %c0_i32_0 = arith.constant 0 : i32
    %c0_i32_1 = arith.constant 0 : i32
    return %c0_i32, %c0_i32_0 : i32, i32
  }
  func.func @transform_5(%arg0: i32) -> (i32, i32) {
    %c0_i32 = arith.constant 0 : i32
    %c0_i32_0 = arith.constant 0 : i32
    %c0_i32_1 = arith.constant 0 : i32
    return %c0_i32, %c0_i32_0 : i32, i32
  }
  func.func @transform_6(%arg0: i32) -> (i32, i32) {
    %c0_i32 = arith.constant 0 : i32
    %c0_i32_0 = arith.constant 0 : i32
    %c0_i32_1 = arith.constant 0 : i32
    return %c0_i32, %c0_i32_0 : i32, i32
  }
  func.func @transform_7(%arg0: i32) -> (i32, i32, i32, i32) {
    %c0_i32 = arith.constant 0 : i32
    %c0_i32_0 = arith.constant 0 : i32
    %c0_i32_1 = arith.constant 0 : i32
    %c0_i32_2 = arith.constant 0 : i32
    return %arg0, %c0_i32, %c0_i32_0, %c0_i32_1 : i32, i32, i32, i32
  }
}

</mosaic_0001>

<bundles_post_ra>
// kernel: block_forward.1
= control target key start
LH: loop header
LB: loop body
LE: loop exit
PB: predicated region body
PF: predicated region fallthrough
CT: control target
= control target key end

     0   :  { %12 = vsyncpa [#allocation4], 0  ;;  %s5379_s0 = inlined_call_operand.vmem [shape: f32[2,16,16,128], index: 0, kind: input, shape index: {}]   ;;  %s5380_s1 = inlined_call_operand.vmem [shape: f32[128,128], index: 1, kind: input, shape index: {}]   ;;  %s5381_s2 = inlined_call_operand.vmem [shape: f32[1,128], index: 2, kind: input, shape index: {}]   ;;  %s5382_s3 = inlined_call_operand.vmem [shape: f32[1152,128], index: 3, kind: input, shape index: {}]   ;;  %s5383_s4 = inlined_call_operand.vmem [shape: f32[1,128], index: 4, kind: input, shape index: {}]   ;;  %s5384_s5 = inlined_call_operand.vmem [shape: f32[128,128], index: 5, kind: input, shape index: {}]   ;;  %s5385_s6 = inlined_call_operand.vmem [shape: f32[1,128], index: 6, kind: input, shape index: {}]   ;;  %s5386_s7 = inlined_call_operand.hbm [shape: f32[2,16,16,128], index: 7, kind: output, shape index: {}]  }
   0x1   :  { %14 = vsyncpa [#allocation4 + $0x1], 0  ;;  %s3778_s24 = smov 0   ;;  %s3780_s25 = smov 0  }
   0x2   :  { %s3782_s26 = smov 0   ;;  %s3784_s27 = smov 0  }
   0x3 LB: > { %s3799_s28 = sadd.s32 4294967295, %s3731_s27   ;;  %s2680_s29 = sadd.s32 4294967294, %s3731_s27   ;;  %s3731_s27 = sphi %s3784_s27, %s5454_s27   ;;  %s3727_s26 = sphi %s3782_s26, %s5453_s26   ;;  %s3723_s25 = sphi %s3780_s25, %s5452_s25   ;;  %s3719_s24 = sphi %s3778_s24, %s5451_s24  }
   0x4   : > { %s3803_s30 = sadd.s32 1, %s3731_s27   ;;  %s179_s8 = sadd.s32 1, %s3727_s26 }
   0x5   : > { %s176_s9 = ssub.s32 %s3731_s27, %s3803_s30  ;;  %p189_p0 = scmp.ne.s32.totalorder %s3727_s26, %s3723_s25 }
   0x6   : > { %p177_p1 = scmp.eq.s32.totalorder %s176_s9, 0  ;;  %p190_p2 = scmp.eq.s32.totalorder %s3799_s28, 1 }
   0x7   : > { %p195_p3 = scmp.ne.s32.totalorder %s3723_s25, %s3719_s24  ;;  %p196_p4 = scmp.eq.s32.totalorder %s2680_s29, 1 }
   0x8   : > { %s3814_s10 = scalar_select %p177_p1, %s3727_s26, %s179_s8  }
   0x9   : > { %p3816_p5 = por %p190_p2, %p189_p0  ;;  %p3820_p6 = por %p196_p4, %p195_p3 }
   0xa   : > { %p2683_p7 = scmp.ge.s32.totalorder %s3731_s27, 1  ;;  %p240_p8 = scmp.lt.s32.totalorder %s3731_s27, 3 }
   0xc   : > { %p241_p9 = pnand %p2683_p7, %p240_p8 }
   0xe   : > { %244 = sbr.rel (%p241_p9) target bundleno = 1090 (0x442), region = 48 }
  0x15   : > { %v351_v0 = vld [vmem:[%s5380_s1] sm:$0xff]  ;;  %v352_v1 = vld [vmem:[%s5380_s1 + $0x8] sm:$0xff]  ;;  %v353_v2 = vld [vmem:[%s5380_s1 + $0x10] sm:$0xff]  ;;  %p272_p10 = scmp.lt.s32.totalorder %s3799_s28, 1  ;;  %v3733_v5 = vmov 0.0|0.0   ;;  %s269_s22 = sand.u32 1, %s3723_s25  }
  0x16   : > { %v3081_v3 = vpack.c.bf16 %v352_v1, %v351_v0  ;;  %v354_v4 = vld [vmem:[%s5380_s1 + $0x18] sm:$0xff]  ;;  %3369 = vmatprep.subr.bf16.mxu1 %v3733_v5  ;;  %v355_v7 = vld [vmem:[%s5380_s1 + $0x20] sm:$0xff]  ;;  %v356_v8 = vld [vmem:[%s5380_s1 + $0x28] sm:$0xff]  ;;  %s2696_s13 = sshll.u32 %s3799_s28, 12 }
  0x17   : > { %v3085_v6 = vpack.c.bf16 %v354_v4, %v353_v2  ;;  %s273_s8 = scalar_select %p272_p10, %s3799_s28, 1  ;;  %v3089_v9 = vpack.c.bf16 %v356_v8, %v355_v7  ;;  %v357_v10 = vld [vmem:[%s5380_s1 + $0x30] sm:$0xff]  ;;  %v358_v11 = vld [vmem:[%s5380_s1 + $0x38] sm:$0xff]  ;;  %v359_v14 = vld [vmem:[%s5380_s1 + $0x40] sm:$0xff] }
  0x18   : > { %3082 = vmatprep.subr.bf16.mxu0 %v3081_v3  ;;  %v3093_v13 = vpack.c.bf16 %v358_v11, %v357_v10  ;;  %v360_v15 = vld [vmem:[%s5380_s1 + $0x48] sm:$0xff]  ;;  %v361_v17 = vld [vmem:[%s5380_s1 + $0x50] sm:$0xff]  ;;  %v362_v18 = vld [vmem:[%s5380_s1 + $0x58] sm:$0xff]  ;;  %s5330_s18 = scalar_lea.hbm %s5386_s7, %s2696_s13  ;;  %s5338_s28 = scalar_lea.sflag [#allocation4], %s269_s22 }
  0x19   : > { %3084 = vmatpush3.bf16.msra.mxu0 %v3081_v3  ;;  %s2695_s9 = sshll.u32 %s273_s8, 8  ;;  %v3097_v16 = vpack.c.bf16 %v360_v15, %v359_v14  ;;  %v3101_v19 = vpack.c.bf16 %v362_v18, %v361_v17  ;;  %v363_v20 = vld [vmem:[%s5380_s1 + $0x60] sm:$0xff]  ;;  %v364_v21 = vld [vmem:[%s5380_s1 + $0x68] sm:$0xff]  ;;  %v365_v25 = vld [vmem:[%s5380_s1 + $0x70] sm:$0xff]  ;;  %s2684_s8 = sshll.u32 %s269_s22, 8 }
  0x1a   : > { %3086 = vmatprep.subr.bf16.mxu0 %v3085_v6  ;;  %s3850_s15 = scalar_lea.vmem %s5379_s0, %s2695_s9  ;;  %v3105_v22 = vpack.c.bf16 %v364_v21, %v363_v20  ;;  %v984_v23 = vld [vmem:[%s5382_s3 + $0x100] sm:$0xff]  ;;  %v985_v24 = vld [vmem:[%s5382_s3 + $0x108] sm:$0xff]  ;;  %v366_v26 = vld [vmem:[%s5380_s1 + $0x78] sm:$0xff]  ;;  %s5233_s9 = scalar_lea.vmem [#allocation3], %s2684_s8 }
  0x1b   : > { %v319_v12 = vld [vmem:[%s3850_s15] sm:$0xff]  ;;  %v3889_v27 = vpack.c.bf16 %v985_v24, %v984_v23  ;;  %v986_v28 = vld [vmem:[%s5382_s3 + $0x110] sm:$0xff]  ;;  %v987_v29 = vld [vmem:[%s5382_s3 + $0x118] sm:$0xff]  ;;  %v3109_v31 = vpack.c.bf16 %v366_v26, %v365_v25  ;;  %s2618_s14 = sshll.u32 %s5233_s9, 4  ;;  %s5332_s14 = int_to_ptr.vmem [resolvable:$true] %s2618_s14 }
  0x1c   : > { %2873 = vmatprep.mubr.f32.mxu0 %v319_v12  ;;  %v3898_v30 = vpack.c.bf16 %v987_v29, %v986_v28  ;;  %v988_v32 = vld [vmem:[%s5382_s3 + $0x120] sm:$0xff]  ;;  %v989_v33 = vld [vmem:[%s5382_s3 + $0x128] sm:$0xff]  ;;  %v990_v37 = vld [vmem:[%s5382_s3 + $0x130] sm:$0xff]  ;;  %s3669_s19 = scalar_lea.vmem %s5332_s14, 4096 }
  0x1d   : > { %3088 = vmatpush3.bf16.msra.mxu0 %v3085_v6  ;;  %3385 = vmatpush1.bf16.msra.mxu1 %v3889_v27  ;;  %v3908_v34 = vpack.c.bf16 %v989_v33, %v988_v32  ;;  %v952_v35 = vld [vmem:[%s5382_s3] sm:$0xff]  ;;  %v953_v36 = vld [vmem:[%s5382_s3 + $0x8] sm:$0xff]  ;;  %v991_v38 = vld [vmem:[%s5382_s3 + $0x138] sm:$0xff]  ;;  %p3670_p11 = scmp.ne.s32.totalorder %s5332_s14, %s3669_s19 }
  0x1e   : > { %3090 = vmatprep.subr.bf16.mxu0 %v3089_v9  ;;  %3370 = vmatprep.subr.bf16.mxu1 %v3733_v5  ;;  %v320_v39 = vld [vmem:[%s3850_s15 + $0x8] sm:$0xff]  ;;  %v3114_v40 = vpack.c.bf16 %v953_v36, %v952_v35  ;;  %v321_v41 = vld [vmem:[%s3850_s15 + $0x10] sm:$0xff]  ;;  %v955_v43 = vld [vmem:[%s5382_s3 + $0x18] sm:$0xff]  ;;  %v3934_v44 = vpack.c.bf16 %v991_v38, %v990_v37 }
  0x1f   : > { %v954_v42 = vld [vmem:[%s5382_s3 + $0x10] sm:$0xff]  ;;  %v992_v45 = vld [vmem:[%s5382_s3 + $0x140] sm:$0xff]  ;;  %v993_v46 = vld [vmem:[%s5382_s3 + $0x148] sm:$0xff]  ;;  %p3671_p12 = pnand %p3670_p11, %p3816_p5 }
  0x20   : > { %v322_v47 = vld [vmem:[%s3850_s15 + $0x18] sm:$0xff]  ;;  %v3117_v48 = vpack.c.bf16 %v955_v43, %v954_v42  ;;  %v323_v49 = vld [vmem:[%s3850_s15 + $0x20] sm:$0xff]  ;;  %v957_v51 = vld [vmem:[%s5382_s3 + $0x28] sm:$0xff]  ;;  %v3952_v52 = vpack.c.bf16 %v993_v46, %v992_v45 }
  0x21   : > { %3092 = vmatpush3.bf16.msra.mxu0 %v3089_v9  ;;  %3386 = vmatpush1.bf16.msra.mxu1 %v3898_v30  ;;  %v956_v50 = vld [vmem:[%s5382_s3 + $0x20] sm:$0xff]  ;;  %v994_v53 = vld [vmem:[%s5382_s3 + $0x150] sm:$0xff]  ;;  %v995_v54 = vld [vmem:[%s5382_s3 + $0x158] sm:$0xff]  ;;  %p3672_p13 = pneg %p3671_p12 }
  0x22   : > { %3094 = vmatprep.subr.bf16.mxu0 %v3093_v13  ;;  %3371 = vmatprep.subr.bf16.mxu1 %v3733_v5  ;;  %v324_v55 = vld [vmem:[%s3850_s15 + $0x28] sm:$0xff]  ;;  %v3120_v56 = vpack.c.bf16 %v957_v51, %v956_v50  ;;  %v325_v57 = vld [vmem:[%s3850_s15 + $0x30] sm:$0xff]  ;;  %v959_v59 = vld [vmem:[%s5382_s3 + $0x38] sm:$0xff]  ;;  %v3971_v60 = vpack.c.bf16 %v995_v54, %v994_v53 }
  0x23   : > { %v958_v58 = vld [vmem:[%s5382_s3 + $0x30] sm:$0xff]  ;;  %v996_v61 = vld [vmem:[%s5382_s3 + $0x160] sm:$0xff]  ;;  %v997_v62 = vld [vmem:[%s5382_s3 + $0x168] sm:$0xff] }
  0x24   : > { %v326_v63 = vld [vmem:[%s3850_s15 + $0x38] sm:$0xff]  ;;  %v3123_v0 = vpack.c.bf16 %v959_v59, %v958_v58  ;;  %v327_v1 = vld [vmem:[%s3850_s15 + $0x40] sm:$0xff]  ;;  %v961_v3 = vld [vmem:[%s5382_s3 + $0x48] sm:$0xff]  ;;  %v3990_v4 = vpack.c.bf16 %v997_v62, %v996_v61 }
  0x25   : > { %3096 = vmatpush3.bf16.msra.mxu0 %v3093_v13  ;;  %3387 = vmatpush1.bf16.msra.mxu1 %v3908_v34  ;;  %v960_v2 = vld [vmem:[%s5382_s3 + $0x40] sm:$0xff]  ;;  %v328_v6 = vld [vmem:[%s3850_s15 + $0x48] sm:$0xff]  ;;  %v329_v8 = vld [vmem:[%s3850_s15 + $0x50] sm:$0xff] }
  0x26   : > { %3098 = vmatprep.subr.bf16.mxu0 %v3097_v16  ;;  %3372 = vmatprep.subr.bf16.mxu1 %v3733_v5  ;;  %v3126_v7 = vpack.c.bf16 %v961_v3, %v960_v2  ;;  %v962_v9 = vld [vmem:[%s5382_s3 + $0x50] sm:$0xff]  ;;  %v963_v10 = vld [vmem:[%s5382_s3 + $0x58] sm:$0xff]  ;;  %v331_v13 = vld [vmem:[%s3850_s15 + $0x60] sm:$0xff]  ;;  %v3734_v2 = vmov 0.0  }
  0x27   : > { %v330_v11 = vld [vmem:[%s3850_s15 + $0x58] sm:$0xff]  ;;  %v3129_v12 = vpack.c.bf16 %v963_v10, %v962_v9  ;;  %v964_v14 = vld [vmem:[%s5382_s3 + $0x60] sm:$0xff]  ;;  %v965_v15 = vld [vmem:[%s5382_s3 + $0x68] sm:$0xff]  ;;  %278 = vst [vmem:[#allocation2 + $0x8] sm:$0xff] %v3734_v2 }
  0x28   : > { %v3132_v17 = vpack.c.bf16 %v965_v15, %v964_v14  ;;  %v333_v18 = vld [vmem:[%s3850_s15 + $0x70] sm:$0xff]  ;;  %v967_v20 = vld [vmem:[%s5382_s3 + $0x78] sm:$0xff]  ;;  %v335_v23 = vld [vmem:[%s3850_s15 + $0x80] sm:$0xff]  ;;  %277 = vst [vmem:[#allocation2] sm:$0xff] %v3734_v2 }
  0x29   : > { %3100 = vmatpush3.bf16.msra.mxu0 %v3097_v16  ;;  %3388 = vmatpush1.bf16.msra.mxu1 %v3934_v44  ;;  %v332_v16 = vld [vmem:[%s3850_s15 + $0x68] sm:$0xff]  ;;  %v334_v21 = vld [vmem:[%s3850_s15 + $0x78] sm:$0xff]  ;;  %v968_v24 = vld [vmem:[%s5382_s3 + $0x80] sm:$0xff]  ;;  %279 = vst [vmem:[#allocation2 + $0x10] sm:$0xff] %v3734_v2 }
  0x2a   : > { %3102 = vmatprep.subr.bf16.mxu0 %v3101_v19  ;;  %3373 = vmatprep.subr.bf16.mxu1 %v3733_v5  ;;  %v969_v25 = vld [vmem:[%s5382_s3 + $0x88] sm:$0xff]  ;;  %v337_v29 = vld [vmem:[%s3850_s15 + $0x90] sm:$0xff]  ;;  %v971_v32 = vld [vmem:[%s5382_s3 + $0x98] sm:$0xff]  ;;  %280 = vst [vmem:[#allocation2 + $0x18] sm:$0x1] %v3734_v2 }
  0x2b   : > { %v336_v26 = vld [vmem:[%s3850_s15 + $0x88] sm:$0xff]  ;;  %v3138_v28 = vpack.c.bf16 %v969_v25, %v968_v24  ;;  %v338_v33 = vld [vmem:[%s3850_s15 + $0x98] sm:$0xff]  ;;  %v339_v36 = vld [vmem:[%s3850_s15 + $0xa0] sm:$0xff]  ;;  %282 = vst [vmem:[#allocation2 + $0x220] sm:$0xff] %v3734_v2 }
  0x2c   : > { %v972_v37 = vld [vmem:[%s5382_s3 + $0xa0] sm:$0xff]  ;;  %v973_v38 = vld [vmem:[%s5382_s3 + $0xa8] sm:$0xff]  ;;  %v974_v42 = vld [vmem:[%s5382_s3 + $0xb0] sm:$0xff]  ;;  %283 = vst [vmem:[#allocation2 + $0x228] sm:$0xff] %v3734_v2 }
  0x2d   : > { %3104 = vmatpush3.bf16.msra.mxu0 %v3101_v19  ;;  %3389 = vmatpush1.bf16.msra.mxu1 %v3952_v52  ;;  %v966_v19 = vld [vmem:[%s5382_s3 + $0x70] sm:$0xff]  ;;  %v975_v43 = vld [vmem:[%s5382_s3 + $0xb8] sm:$0xff]  ;;  %v344_v50 = vld [vmem:[%s3850_s15 + $0xc8] sm:$0xff]  ;;  %284 = vst [vmem:[#allocation2 + $0x230] sm:$0xff] %v3734_v2 }
  0x2e   : > { %3106 = vmatprep.subr.bf16.mxu0 %v3105_v22  ;;  %3374 = vmatprep.subr.bf16.mxu1 %v3733_v5  ;;  %v342_v45 = vld [vmem:[%s3850_s15 + $0xb8] sm:$0xff]  ;;  %v3147_v46 = vpack.c.bf16 %v975_v43, %v974_v42  ;;  %v345_v53 = vld [vmem:[%s3850_s15 + $0xd0] sm:$0xff]  ;;  %v347_v58 = vld [vmem:[%s3850_s15 + $0xe0] sm:$0xff]  ;;  %285 = vst [vmem:[#allocation2 + $0x238] sm:$0x1] %v3734_v2 }
  0x2f   : > { %v978_v54 = vld [vmem:[%s5382_s3 + $0xd0] sm:$0xff]  ;;  %v348_v59 = vld [vmem:[%s3850_s15 + $0xe8] sm:$0xff]  ;;  %v350_v62 = vld [vmem:[%s3850_s15 + $0xf8] sm:$0xff]  ;;  %287 = vst [vmem:[#allocation2 + $0x20] sm:$0xff] %v3734_v2 }
  0x30   : > { %v349_v61 = vld [vmem:[%s3850_s15 + $0xf0] sm:$0xff]  ;;  %288 = vst [vmem:[#allocation2 + $0x40] sm:$0xff] %v3734_v2  ;;  %289 = vst [vmem:[#allocation2 + $0x60] sm:$0xff] %v3734_v2  ;;  %v999_v10 = vld [vmem:[%s5382_s3 + $0x178] sm:$0xff] }
  0x31   : > { %3108 = vmatpush3.bf16.msra.mxu0 %v3105_v22  ;;  %3390 = vmatpush1.bf16.msra.mxu1 %v3971_v60  ;;  %v3135_v22 = vpack.c.bf16 %v967_v20, %v966_v19  ;;  %290 = vst [vmem:[#allocation2 + $0x80] sm:$0xff] %v3734_v2  ;;  %291 = vst [vmem:[#allocation2 + $0xa0] sm:$0xff] %v3734_v2  ;;  %v982_v3 = vld [vmem:[%s5382_s3 + $0xf0] sm:$0xff]  ;;  %v1001_v14 = vld [vmem:[%s5382_s3 + $0x188] sm:$0xff] }
  0x32   : > { %3110 = vmatprep.subr.bf16.mxu0 %v3109_v31  ;;  %3375 = vmatprep.subr.bf16.mxu1 %v3733_v5  ;;  %292 = vst [vmem:[#allocation2 + $0xc0] sm:$0xff] %v3734_v2  ;;  %293 = vst [vmem:[#allocation2 + $0xe0] sm:$0xff] %v3734_v2  ;;  %v998_v9 = vld [vmem:[%s5382_s3 + $0x170] sm:$0xff]  ;;  %v1007_v20 = vld [vmem:[%s5382_s3 + $0x1b8] sm:$0xff] }
  0x33   : > { %294 = vst [vmem:[#allocation2 + $0x100] sm:$0xff] %v3734_v2  ;;  %295 = vst [vmem:[#allocation2 + $0x120] sm:$0xff] %v3734_v2  ;;  %v1011_v24 = vld [vmem:[%s5382_s3 + $0x1d8] sm:$0xff] }
  0x34   : > { %296 = vst [vmem:[#allocation2 + $0x140] sm:$0xff] %v3734_v2  ;;  %297 = vst [vmem:[#allocation2 + $0x160] sm:$0xff] %v3734_v2 }
  0x35   : > { %3112 = vmatpush3.bf16.msra.mxu0 %v3109_v31  ;;  %3391 = vmatpush1.bf16.msra.mxu1 %v3990_v4  ;;  %v970_v31 = vld [vmem:[%s5382_s3 + $0x90] sm:$0xff]  ;;  %298 = vst [vmem:[#allocation2 + $0x180] sm:$0xff] %v3734_v2  ;;  %299 = vst [vmem:[#allocation2 + $0x1a0] sm:$0xff] %v3734_v2 }
  0x36   : > { %3113 = vmatprep.subr.bf16.mxu0 %v3733_v5  ;;  %3376 = vmatprep.subr.bf16.mxu1 %v3733_v5  ;;  %v3141_v35 = vpack.c.bf16 %v971_v32, %v970_v31  ;;  %300 = vst [vmem:[#allocation2 + $0x1c0] sm:$0xff] %v3734_v2  ;;  %301 = vst [vmem:[#allocation2 + $0x1e0] sm:$0xff] %v3734_v2  ;;  %v4185_v32 = vld [vmem:[%s5381_s2] ss:$0 sm:$0xff] }
  0x37   : > { %302 = vst [vmem:[#allocation2 + $0x200] sm:$0xff] %v3734_v2  ;;  %303 = vst [vmem:[#allocation2 + $0x38] sm:$0x1] %v3734_v2 }
  0x38   : > { %2874 = vmatmul.mubr.f32.vlgmr.msra.gmra.mrb[0].mxu0 %v320_v39  ;;  %v340_v39 = vld [vmem:[%s3850_s15 + $0xa8] sm:$0xff]  ;;  %304 = vst [vmem:[#allocation2 + $0x58] sm:$0x1] %v3734_v2  ;;  %305 = vst [vmem:[#allocation2 + $0x78] sm:$0x1] %v3734_v2 }
  0x39   : > { %2876 = vmatprep.mubr.f32.mxu0 %v321_v41  ;;  %3115 = vmatpush1.bf16.msra.mxu0 %v3114_v40  ;;  %v3144_v40 = vpack.c.bf16 %v973_v38, %v972_v37  ;;  %v341_v41 = vld [vmem:[%s3850_s15 + $0xb0] sm:$0xff]  ;;  %306 = vst [vmem:[#allocation2 + $0x98] sm:$0x1] %v3734_v2  ;;  %307 = vst [vmem:[#allocation2 + $0xb8] sm:$0x1] %v3734_v2 }
  0x3a   : > { %3116 = vmatprep.subr.bf16.mxu0 %v3733_v5  ;;  %308 = vst [vmem:[#allocation2 + $0xd8] sm:$0x1] %v3734_v2  ;;  %309 = vst [vmem:[#allocation2 + $0xf8] sm:$0x1] %v3734_v2 }
  0x3b   : > { %310 = vst [vmem:[#allocation2 + $0x118] sm:$0x1] %v3734_v2  ;;  %311 = vst [vmem:[#allocation2 + $0x138] sm:$0x1] %v3734_v2 }
  0x3c   : > { %2877 = vmatmul.mubr.f32.gmra.mrb[2].mxu0 %v322_v47  ;;  %v343_v47 = vld [vmem:[%s3850_s15 + $0xc0] sm:$0xff]  ;;  %312 = vst [vmem:[#allocation2 + $0x158] sm:$0x1] %v3734_v2  ;;  %313 = vst [vmem:[#allocation2 + $0x178] sm:$0x1] %v3734_v2 }
  0x3d   : > { %2879 = vmatprep.mubr.f32.mxu0 %v323_v49  ;;  %3118 = vmatpush1.bf16.msra.mxu0 %v3117_v48  ;;  %v976_v48 = vld [vmem:[%s5382_s3 + $0xc0] sm:$0xff]  ;;  %v977_v49 = vld [vmem:[%s5382_s3 + $0xc8] sm:$0xff]  ;;  %314 = vst [vmem:[#allocation2 + $0x198] sm:$0x1] %v3734_v2  ;;  %315 = vst [vmem:[#allocation2 + $0x1b8] sm:$0x1] %v3734_v2 }
  0x3e   : > { %3119 = vmatprep.subr.bf16.mxu0 %v3733_v5  ;;  %v3150_v51 = vpack.c.bf16 %v977_v49, %v976_v48  ;;  %316 = vst [vmem:[#allocation2 + $0x1d8] sm:$0x1] %v3734_v2  ;;  %317 = vst [vmem:[#allocation2 + $0x1f8] sm:$0x1] %v3734_v2 }
  0x3f   : > { %318 = vst [vmem:[#allocation2 + $0x218] sm:$0x1] %v3734_v2 }
  0x40   : > { %2880 = vmatmul.mubr.f32.gmra.mrb[4].mxu0 %v324_v55  ;;  %v979_v55 = vld [vmem:[%s5382_s3 + $0xd8] sm:$0xff] }
  0x41   : > { %2882 = vmatprep.mubr.f32.mxu0 %v325_v57  ;;  %3121 = vmatpush1.bf16.msra.mxu0 %v3120_v56  ;;  %v346_v56 = vld [vmem:[%s3850_s15 + $0xd8] sm:$0xff]  ;;  %v3153_v57 = vpack.c.bf16 %v979_v55, %v978_v54 }
  0x42   : > { %3122 = vmatprep.subr.bf16.mxu0 %v3733_v5 }
  0x44   : > { %2883 = vmatmul.mubr.f32.gmra.mrb[6].mxu0 %v326_v63  ;;  %v980_v63 = vld [vmem:[%s5382_s3 + $0xe0] sm:$0xff] }
  0x45   : > { %2885 = vmatprep.mubr.f32.mxu0 %v327_v1  ;;  %3124 = vmatpush1.bf16.msra.mxu0 %v3123_v0  ;;  %v981_v0 = vld [vmem:[%s5382_s3 + $0xe8] sm:$0xff] }
  0x46   : > { %3125 = vmatprep.subr.bf16.mxu0 %v3733_v5  ;;  %v3156_v1 = vpack.c.bf16 %v981_v0, %v980_v63 }
  0x48   : > { %2886 = vmatmul.mubr.f32.gmra.mrb[8].mxu0 %v328_v6  ;;  %v983_v6 = vld [vmem:[%s5382_s3 + $0xf8] sm:$0xff] }
  0x49   : > { %2888 = vmatprep.mubr.f32.mxu0 %v329_v8  ;;  %3127 = vmatpush1.bf16.msra.mxu0 %v3126_v7  ;;  %v3159_v7 = vpack.c.bf16 %v983_v6, %v982_v3  ;;  %v663_v8 = vld [vmem:[#allocation2 + $0x7] sm:$0xff] }
  0x4a   : > { %3128 = vmatprep.subr.bf16.mxu0 %v3733_v5 }
  0x4c   : > { %2889 = vmatmul.mubr.f32.gmra.mrb[10].mxu0 %v330_v11  ;;  %v3183_v11 = vpack.c.bf16 %v999_v10, %v998_v9  ;;  %v1081_v9 = vld [vmem:[%s5382_s3 + $0x408] sm:$0xff] }
  0x4d   : > { %2891 = vmatprep.mubr.f32.mxu0 %v331_v13  ;;  %3130 = vmatpush1.bf16.msra.mxu0 %v3129_v12  ;;  %v664_v12 = vld [vmem:[#allocation2 + $0xf] sm:$0xff]  ;;  %v1000_v13 = vld [vmem:[%s5382_s3 + $0x180] sm:$0xff] }
  0x4e   : > { %3131 = vmatprep.subr.bf16.mxu0 %v3733_v5  ;;  %3392 = vmatpush1.bf16.msra.mxu1 %v3183_v11  ;;  %v3186_v15 = vpack.c.bf16 %v1001_v14, %v1000_v13 }
  0x4f   : > { %3377 = vmatprep.subr.bf16.mxu1 %v3733_v5 }
  0x50   : > { %2892 = vmatmul.mubr.f32.gmra.mrb[12].mxu0 %v332_v16  ;;  %v1003_v16 = vld [vmem:[%s5382_s3 + $0x198] sm:$0xff] }
  0x51   : > { %2894 = vmatprep.mubr.f32.mxu0 %v333_v18  ;;  %3133 = vmatpush1.bf16.msra.mxu0 %v3132_v17  ;;  %v1005_v18 = vld [vmem:[%s5382_s3 + $0x1a8] sm:$0xff] }
  0x52   : > { %3134 = vmatprep.subr.bf16.mxu0 %v3733_v5  ;;  %3393 = vmatpush1.bf16.msra.mxu1 %v3186_v15 }
  0x53   : > { %3378 = vmatprep.subr.bf16.mxu1 %v3733_v5 }
  0x54   : > { %2895 = vmatmul.mubr.f32.gmra.mrb[14].mxu0 %v334_v21 }
  0x55   : > { %2897 = vmatprep.mubr.f32.mxu0 %v335_v23  ;;  %3136 = vmatpush1.bf16.msra.mxu0 %v3135_v22  ;;  %v1009_v22 = vld [vmem:[%s5382_s3 + $0x1c8] sm:$0xff] }
  0x56   : > { %3137 = vmatprep.subr.bf16.mxu0 %v3733_v5 }
  0x58   : > { %2898 = vmatmul.mubr.f32.gmra.mrb[16].mxu0 %v336_v26  ;;  %v1013_v26 = vld [vmem:[%s5382_s3 + $0x1e8] sm:$0xff] }
  0x59   : > { %2900 = vmatprep.mubr.f32.mxu0 %v337_v29  ;;  %3139 = vmatpush1.bf16.msra.mxu0 %v3138_v28  ;;  %v1015_v29 = vld [vmem:[%s5382_s3 + $0x1f8] sm:$0xff] }
  0x5a   : > { %3140 = vmatprep.subr.bf16.mxu0 %v3733_v5 }
  0x5c   : > { %2901 = vmatmul.mubr.f32.gmra.mrb[18].mxu0 %v338_v33 }
  0x5d   : > { %2903 = vmatprep.mubr.f32.mxu0 %v339_v36  ;;  %3142 = vmatpush1.bf16.msra.mxu0 %v3141_v35 }
  0x5e   : > { %3143 = vmatprep.subr.bf16.mxu0 %v3733_v5 }
  0x60   : > { %2904 = vmatmul.mubr.f32.gmra.mrb[20].mxu0 %v340_v39 }
  0x61   : > { %2906 = vmatprep.mubr.f32.mxu0 %v341_v41  ;;  %3145 = vmatpush1.bf16.msra.mxu0 %v3144_v40 }
  0x62   : > { %3146 = vmatprep.subr.bf16.mxu0 %v3733_v5 }
  0x64   : > { %2907 = vmatmul.mubr.f32.gmra.mrb[22].mxu0 %v342_v45 }
  0x65   : > { %2909 = vmatprep.mubr.f32.mxu0 %v343_v47  ;;  %3148 = vmatpush1.bf16.msra.mxu0 %v3147_v46 }
  0x66   : > { %3149 = vmatprep.subr.bf16.mxu0 %v3733_v5 }
  0x68   : > { %2910 = vmatmul.mubr.f32.gmra.mrb[24].mxu0 %v344_v50 }
  0x69   : > { %2912 = vmatprep.mubr.f32.mxu0 %v345_v53  ;;  %3151 = vmatpush1.bf16.msra.mxu0 %v3150_v51 }
  0x6a   : > { %3152 = vmatprep.subr.bf16.mxu0 %v3733_v5 }
  0x6c   : > { %2913 = vmatmul.mubr.f32.gmra.mrb[26].mxu0 %v346_v56 }
  0x6d   : > { %2915 = vmatprep.mubr.f32.mxu0 %v347_v58  ;;  %3154 = vmatpush1.bf16.msra.mxu0 %v3153_v57 }
  0x6e   : > { %3155 = vmatprep.subr.bf16.mxu0 %v3733_v5 }
  0x70   : > { %2916 = vmatmul.mubr.f32.gmra.mrb[28].mxu0 %v348_v59 }
  0x71   : > { %2918 = vmatprep.mubr.f32.mxu0 %v349_v61  ;;  %3157 = vmatpush1.bf16.msra.mxu0 %v3156_v1 }
  0x72   : > { %3158 = vmatprep.subr.bf16.mxu0 %v3733_v5 }
  0x74   : > { %2919 = vmatmul.mubr.f32.gmra.mrb[30].mxu0 %v350_v62 }
  0x75   : > { %1167 = vmatprep.mubr.f32.mxu0 %v3734_v2  ;;  %3160 = vmatpush1.bf16.msra.mxu0 %v3159_v7 }
  0x76   : > { %3161 = vmatprep.subr.bf16.mxu0 %v3733_v5 }
  0x78   : > { %1168 = vmatmul.mubr.f32.vlgmr.msra.gmra.mrb[32].mxu0 %v663_v8  ;;  %v1080_v8 = vld [vmem:[%s5382_s3 + $0x400] sm:$0xff] }
  0x79   : > { %1172 = vmatprep.mubr.f32.mxu0 %v3734_v2  ;;  %3163 = vmatpush1.bf16.msra.mxu0 %v3889_v27  ;;  %v1002_v27 = vld [vmem:[%s5382_s3 + $0x190] sm:$0xff]  ;;  %v4233_v13 = vpack.c.bf16 %v1081_v9, %v1080_v8 }
  0x7a   : > { %3164 = vmatprep.subr.bf16.mxu0 %v3733_v5  ;;  %v3189_v17 = vpack.c.bf16 %v1003_v16, %v1002_v27 }
  0x7c   : > { %1173 = vmatmul.mubr.f32.gmra.mrb[34].mxu0 %v664_v12  ;;  %3394 = vmatpush1.bf16.msra.mxu1 %v3189_v17 }
  0x7d   : > { %3166 = vmatpush1.bf16.msra.mxu0 %v3898_v30  ;;  %3379 = vmatprep.subr.bf16.mxu1 %v3733_v5  ;;  %v1004_v30 = vld [vmem:[%s5382_s3 + $0x1a0] sm:$0xff] }
  0x7e   : > { %3167 = vmatprep.subr.bf16.mxu0 %v3733_v5  ;;  %v3192_v19 = vpack.c.bf16 %v1005_v18, %v1004_v30 }
  0x80   : > { %3395 = vmatpush1.bf16.msra.mxu1 %v3192_v19 }
  0x81   : > { %3169 = vmatpush1.bf16.msra.mxu0 %v3908_v34  ;;  %3380 = vmatprep.subr.bf16.mxu1 %v3733_v5  ;;  %v1006_v34 = vld [vmem:[%s5382_s3 + $0x1b0] sm:$0xff] }
  0x82   : > { %3170 = vmatprep.subr.bf16.mxu0 %v3733_v5  ;;  %v3195_v21 = vpack.c.bf16 %v1007_v20, %v1006_v34 }
  0x84   : > { %3396 = vmatpush1.bf16.msra.mxu1 %v3195_v21 }
  0x85   : > { %3172 = vmatpush1.bf16.msra.mxu0 %v3934_v44  ;;  %3381 = vmatprep.subr.bf16.mxu1 %v3733_v5  ;;  %v1008_v44 = vld [vmem:[%s5382_s3 + $0x1c0] sm:$0xff] }
  0x86   : > { %3173 = vmatprep.subr.bf16.mxu0 %v3733_v5  ;;  %v3198_v23 = vpack.c.bf16 %v1009_v22, %v1008_v44 }
  0x88   : > { %3397 = vmatpush1.bf16.msra.mxu1 %v3198_v23 }
  0x89   : > { %3175 = vmatpush1.bf16.msra.mxu0 %v3952_v52  ;;  %3382 = vmatprep.subr.bf16.mxu1 %v3733_v5  ;;  %v1010_v52 = vld [vmem:[%s5382_s3 + $0x1d0] sm:$0xff] }
  0x8a   : > { %3176 = vmatprep.subr.bf16.mxu0 %v3733_v5  ;;  %v3201_v25 = vpack.c.bf16 %v1011_v24, %v1010_v52 }
  0x8c   : > { %3398 = vmatpush1.bf16.msra.mxu1 %v3201_v25 }
  0x8d   : > { %3178 = vmatpush1.bf16.msra.mxu0 %v3971_v60  ;;  %3383 = vmatprep.subr.bf16.mxu1 %v3733_v5  ;;  %v1012_v60 = vld [vmem:[%s5382_s3 + $0x1e0] sm:$0xff] }
  0x8e   : > { %3179 = vmatprep.subr.bf16.mxu0 %v3733_v5  ;;  %v3204_v28 = vpack.c.bf16 %v1013_v26, %v1012_v60 }
  0x90   : > { %3399 = vmatpush1.bf16.msra.mxu1 %v3204_v28 }
  0x91   : > { %3181 = vmatpush1.bf16.msra.mxu0 %v3990_v4  ;;  %3384 = vmatprep.subr.bf16.mxu1 %v3733_v5  ;;  %v1014_v4 = vld [vmem:[%s5382_s3 + $0x1f0] sm:$0xff] }
  0x92   : > { %3182 = vmatprep.subr.bf16.mxu0 %v3733_v5  ;;  %v3207_v31 = vpack.c.bf16 %v1015_v29, %v1014_v4  ;;  %v1016_v4 = vld [vmem:[%s5382_s3 + $0x200] sm:$0xff]  ;;  %v1017_v29 = vld [vmem:[%s5382_s3 + $0x208] sm:$0xff] }
  0x94   : > { %3400 = vmatpush1.bf16.msra.mxu1 %v3207_v31 }
  0x95   : > { %3184 = vmatpush1.bf16.msra.mxu0 %v3183_v11  ;;  %3209 = vmatprep.subr.bf16.mxu1 %v3733_v5 }
  0x96   : > { %3185 = vmatprep.subr.bf16.mxu0 %v3733_v5 }
  0x99   : > { %3187 = vmatpush1.bf16.msra.mxu0 %v3186_v15 }
  0x9a   : > { %3188 = vmatprep.subr.bf16.mxu0 %v3733_v5 }
  0x9d   : > { %3190 = vmatpush1.bf16.msra.mxu0 %v3189_v17 }
  0x9e   : > { %3191 = vmatprep.subr.bf16.mxu0 %v3733_v5 }
  0xa1   : > { %3193 = vmatpush1.bf16.msra.mxu0 %v3192_v19 }
  0xa2   : > { %3194 = vmatprep.subr.bf16.mxu0 %v3733_v5 }
  0xa5   : > { %3196 = vmatpush1.bf16.msra.mxu0 %v3195_v21 }
  0xa6   : > { %3197 = vmatprep.subr.bf16.mxu0 %v3733_v5 }
  0xa9   : > { %3199 = vmatpush1.bf16.msra.mxu0 %v3198_v23 }
  0xaa   : > { %3200 = vmatprep.subr.bf16.mxu0 %v3733_v5 }
  0xad   : > { %3202 = vmatpush1.bf16.msra.mxu0 %v3201_v25 }
  0xae   : > { %3203 = vmatprep.subr.bf16.mxu0 %v3733_v5 }
  0xb1   : > { %3205 = vmatpush1.bf16.msra.mxu0 %v3204_v28 }
  0xb2   : > { %3206 = vmatprep.subr.bf16.mxu0 %v3733_v5 }
  0xb5   : > { %3208 = vmatpush1.bf16.msra.mxu0 %v3207_v31 }
  0xb6   : > { %3306 = vmatprep.subr.bf16.mxu0 %v4233_v13 }
 0x10b   : > { %v2875_v33 = vpop.f32.mrb[0].mxu0 }
 0x10c   : > { %v446_v35 = vadd.f32 %v2875_v33, %v4185_v32  ;;  %v440_v36 = vpop.f32.mrb[1].mxu0 }
 0x10d   : > { %v441_v37 = vadd.f32 %v4185_v32, %v440_v36  ;;  %v3210_v36 = vpack.c.bf16 %v1017_v29, %v1016_v4 }
 0x10e   : > { %v600_v38 = vmax.f32 %v446_v35, 0.0 }
 0x10f   : > { %v599_v39 = vmax.f32 %v441_v37, 0.0  ;;  %v2878_v40 = vpop.f32.mrb[2].mxu0 }
 0x110   : > { %632 = vst [vmem:[#allocation2 + $0x30] sm:$0xff] %v600_v38  ;;  %v456_v41 = vadd.f32 %v2878_v40, %v4185_v32  ;;  %v450_v42 = vpop.f32.mrb[3].mxu0 }
 0x111   : > { %631 = vst [vmem:[#allocation2 + $0x28] sm:$0xff] %v599_v39  ;;  %v451_v43 = vadd.f32 %v4185_v32, %v450_v42  ;;  %1177 = vmatprep.mubr.f32.mxu0 %v599_v39  ;;  %v1019_v42 = vld [vmem:[%s5382_s3 + $0x218] sm:$0xff] }
 0x112   : > { %v602_v45 = vmax.f32 %v456_v41, 0.0 }
 0x113   : > { %v601_v46 = vmax.f32 %v451_v43, 0.0  ;;  %v2881_v47 = vpop.f32.mrb[4].mxu0 }
 0x114   : > { %634 = vst [vmem:[#allocation2 + $0x50] sm:$0xff] %v602_v45  ;;  %v466_v48 = vadd.f32 %v2881_v47, %v4185_v32  ;;  %v460_v49 = vpop.f32.mrb[5].mxu0 }
 0x115   : > { %633 = vst [vmem:[#allocation2 + $0x48] sm:$0xff] %v601_v46  ;;  %v461_v50 = vadd.f32 %v4185_v32, %v460_v49 }
 0x116   : > { %v4193_v51 = vmax.f32 %v466_v48, 0.0 }
 0x117   : > { %v4195_v53 = vmax.f32 %v461_v50, 0.0  ;;  %v2884_v54 = vpop.f32.mrb[6].mxu0 }
 0x118   : > { %636 = vst [vmem:[#allocation2 + $0x70] sm:$0xff] %v4193_v51  ;;  %v476_v55 = vadd.f32 %v2884_v54, %v4185_v32  ;;  %v470_v56 = vpop.f32.mrb[7].mxu0  ;;  %v4199_v57 = vld [vmem:[#allocation2 + $0x27] sm:$0xff]  ;;  %v4212_v1 = vld [vmem:[#allocation2 + $0x2f] sm:$0xff] }
 0x119   : > { %635 = vst [vmem:[#allocation2 + $0x68] sm:$0xff] %v4195_v53  ;;  %v471_v58 = vadd.f32 %v4185_v32, %v470_v56  ;;  %1178 = vmatmul.mubr.f32.gmra.mrb[36].mxu0 %v4199_v57 }
 0x11a   : > { %v4204_v59 = vmax.f32 %v476_v55, 0.0  ;;  %1182 = vmatprep.mubr.f32.mxu0 %v600_v38  ;;  %v1018_v38 = vld [vmem:[%s5382_s3 + $0x210] sm:$0xff]  ;;  %v1020_v55 = vld [vmem:[%s5382_s3 + $0x220] sm:$0xff] }
 0x11b   : > { %v4206_v61 = vmax.f32 %v471_v58, 0.0  ;;  %v2887_v62 = vpop.f32.mrb[8].mxu0  ;;  %v3213_v50 = vpack.c.bf16 %v1019_v42, %v1018_v38 }
 0x11c   : > { %638 = vst [vmem:[#allocation2 + $0x90] sm:$0xff] %v4204_v59  ;;  %v4210_v63 = vadd.f32 %v2887_v62, %v4185_v32  ;;  %v480_v0 = vpop.f32.mrb[9].mxu0  ;;  %v4231_v12 = vld [vmem:[#allocation2 + $0x47] sm:$0xff]  ;;  %v4247_v18 = vld [vmem:[#allocation2 + $0x4f] sm:$0xff] }
 0x11d   : > { %637 = vst [vmem:[#allocation2 + $0x88] sm:$0xff] %v4206_v61  ;;  %v481_v2 = vadd.f32 %v4185_v32, %v480_v0  ;;  %1183 = vmatmul.mubr.f32.gmra.mrb[38].mxu0 %v4212_v1  ;;  %v1021_v0 = vld [vmem:[%s5382_s3 + $0x228] sm:$0xff] }
 0x11e   : > { %v608_v3 = vmax.f32 %v4210_v63, 0.0  ;;  %1187 = vmatprep.mubr.f32.mxu0 %v601_v46  ;;  %v1025_v63 = vld [vmem:[%s5382_s3 + $0x248] sm:$0xff] }
 0x11f   : > { %v4218_v6 = vmax.f32 %v481_v2, 0.0  ;;  %v2890_v7 = vpop.f32.mrb[10].mxu0 }
 0x120   : > { %640 = vst [vmem:[#allocation2 + $0xb0] sm:$0xff] %v608_v3  ;;  %v4229_v10 = vadd.f32 %v2890_v7, %v4185_v32  ;;  %v490_v11 = vpop.f32.mrb[11].mxu0  ;;  %v4262_v22 = vld [vmem:[#allocation2 + $0x67] sm:$0xff]  ;;  %v4275_v26 = vld [vmem:[#allocation2 + $0x6f] sm:$0xff] }
 0x121   : > { %639 = vst [vmem:[#allocation2 + $0xa8] sm:$0xff] %v4218_v6  ;;  %v491_v14 = vadd.f32 %v4185_v32, %v490_v11  ;;  %1188 = vmatmul.mubr.f32.gmra.mrb[40].mxu0 %v4231_v12 }
 0x122   : > { %v610_v15 = vmax.f32 %v4229_v10, 0.0  ;;  %1192 = vmatprep.mubr.f32.mxu0 %v602_v45  ;;  %v1029_v10 = vld [vmem:[%s5382_s3 + $0x268] sm:$0xff] }
 0x123   : > { %v4240_v27 = vmax.f32 %v491_v14, 0.0  ;;  %v2893_v16 = vpop.f32.mrb[12].mxu0  ;;  %v3216_v14 = vpack.c.bf16 %v1021_v0, %v1020_v55 }
 0x124   : > { %642 = vst [vmem:[#allocation2 + $0xd0] sm:$0xff] %v610_v15  ;;  %v4245_v17 = vadd.f32 %v2893_v16, %v4185_v32  ;;  %v500_v30 = vpop.f32.mrb[13].mxu0  ;;  %v4302_v41 = vld [vmem:[#allocation2 + $0x87] sm:$0xff]  ;;  %v4329_v58 = vld [vmem:[#allocation2 + $0x8f] sm:$0xff] }
 0x125   : > { %641 = vst [vmem:[#allocation2 + $0xc8] sm:$0xff] %v4240_v27  ;;  %v4251_v19 = vadd.f32 %v4185_v32, %v500_v30  ;;  %1193 = vmatmul.mubr.f32.gmra.mrb[42].mxu0 %v4247_v18 }
 0x126   : > { %v612_v34 = vmax.f32 %v4245_v17, 0.0  ;;  %1197 = vmatprep.mubr.f32.mxu0 %v4195_v53  ;;  %v1033_v17 = vld [vmem:[%s5382_s3 + $0x288] sm:$0xff] }
 0x127   : > { %v611_v20 = vmax.f32 %v4251_v19, 0.0  ;;  %v2896_v21 = vpop.f32.mrb[14].mxu0  ;;  %v1031_v19 = vld [vmem:[%s5382_s3 + $0x278] sm:$0xff] }
 0x128   : > { %644 = vst [vmem:[#allocation2 + $0xf0] sm:$0xff] %v612_v34  ;;  %v4260_v44 = vadd.f32 %v2896_v21, %v4185_v32  ;;  %v510_v23 = vpop.f32.mrb[15].mxu0  ;;  %v4354_v21 = vld [vmem:[#allocation2 + $0xa7] sm:$0xff] }
 0x129   : > { %643 = vst [vmem:[#allocation2 + $0xe8] sm:$0xff] %v611_v20  ;;  %1198 = vmatmul.mubr.f32.gmra.mrb[44].mxu0 %v4262_v22  ;;  %v4268_v52 = vadd.f32 %v4185_v32, %v510_v23  ;;  %v1022_v23 = vld [vmem:[%s5382_s3 + $0x230] sm:$0xff] }
 0x12a   : > { %v5393_v24 = vmax.f32 %v4260_v44, 0.0  ;;  %1202 = vmatprep.mubr.f32.mxu0 %v4193_v51 }
 0x12b   : > { %v613_v25 = vmax.f32 %v4268_v52, 0.0  ;;  %v2899_v60 = vpop.f32.mrb[16].mxu0  ;;  %v4343_v8 = vld [vmem:[#allocation2 + $0xd1] sm:$0xff]  ;;  %v5404_v52 = vmax.f32 %v4260_v44, 0.0 }
 0x12c   : > { %646 = vst [vmem:[#allocation2 + $0x110] sm:$0xff] %v5393_v24  ;;  %v4278_v28 = vadd.f32 %v2899_v60, %v4185_v32  ;;  %v520_v31 = vpop.f32.mrb[17].mxu0  ;;  %v4312_v46 = vld [vmem:[#allocation2 + $0xc9] sm:$0xff]  ;;  %v1023_v60 = vld [vmem:[%s5382_s3 + $0x238] sm:$0xff] }
 0x12d   : > { %645 = vst [vmem:[#allocation2 + $0x108] sm:$0xff] %v613_v25  ;;  %1203 = vmatmul.mubr.f32.gmra.mrb[46].mxu0 %v4275_v26  ;;  %v4290_v33 = vadd.f32 %v4185_v32, %v520_v31  ;;  %v3219_v42 = vpack.c.bf16 %v1023_v60, %v1022_v23 }
 0x12e   : > { %1207 = vmatprep.mubr.f32.mxu0 %v4206_v61  ;;  %v5391_v35 = vmax.f32 %v4278_v28, 0.0 }
 0x12f   : > { %v5392_v37 = vmax.f32 %v4290_v33, 0.0  ;;  %v2902_v39 = vpop.f32.mrb[18].mxu0 }
 0x130   : > { %v4298_v40 = vld [vmem:[#allocation2 + $0xe7] sm:$0xff]  ;;  %648 = vst [vmem:[#allocation2 + $0x130] sm:$0xff] %v5391_v35  ;;  %v4308_v43 = vadd.f32 %v2902_v39, %v4185_v32  ;;  %v530_v45 = vpop.f32.mrb[19].mxu0  ;;  %v4321_v48 = vld [vmem:[#allocation2 + $0xef] sm:$0xff] }
 0x131   : > { %1452 = vmatprep.mubr.f32.mxu1 %v4298_v40  ;;  %1208 = vmatmul.mubr.f32.gmra.mrb[48].mxu0 %v4302_v41  ;;  %647 = vst [vmem:[#allocation2 + $0x128] sm:$0xff] %v5392_v37  ;;  %v4317_v47 = vadd.f32 %v4185_v32, %v530_v45  ;;  %v4369_v31 = vld [vmem:[#allocation2 + $0xe9] sm:$0xff]  ;;  %v1024_v45 = vld [vmem:[%s5382_s3 + $0x240] sm:$0xff] }
 0x132   : > { %1453 = vmatmul.mubr.f32.vlgmr.msra.gmra.mrb[0].mxu1 %v4312_v46  ;;  %1212 = vmatprep.mubr.f32.mxu0 %v4204_v59  ;;  %v5389_v49 = vmax.f32 %v4308_v43, 0.0  ;;  %v3222_v23 = vpack.c.bf16 %v1025_v63, %v1024_v45 }
 0x133   : > { %3211 = vmatpush1.bf16.msra.mxu1 %v3210_v36  ;;  %1457 = vmatprep.mubr.f32.mxu1 %v4321_v48  ;;  %v5390_v54 = vmax.f32 %v4317_v47, 0.0  ;;  %v2905_v56 = vpop.f32.mrb[20].mxu0 }
 0x134   : > { %3212 = vmatprep.subr.bf16.mxu1 %v3733_v5  ;;  %v4332_v62 = vld [vmem:[#allocation2 + $0x107] sm:$0xff]  ;;  %650 = vst [vmem:[#allocation2 + $0x150] sm:$0xff] %v5389_v49  ;;  %v4340_v2 = vadd.f32 %v2905_v56, %v4185_v32  ;;  %v540_v7 = vpop.f32.mrb[21].mxu0  ;;  %v4376_v38 = vld [vmem:[#allocation2 + $0x10f] sm:$0xff] }
 0x135   : > { %1213 = vmatmul.mubr.f32.gmra.mrb[50].mxu0 %v4329_v58  ;;  %649 = vst [vmem:[#allocation2 + $0x148] sm:$0xff] %v5390_v54  ;;  %v541_v9 = vadd.f32 %v4185_v32, %v540_v7  ;;  %v4385_v56 = vld [vmem:[#allocation2 + $0xaf] sm:$0xff] }
 0x136   : > { %1458 = vmatmul.mubr.f32.gmra.mrb[2].mxu1 %v4343_v8  ;;  %1217 = vmatprep.mubr.f32.mxu0 %v4218_v6  ;;  %v5388_v11 = vmax.f32 %v4340_v2, 0.0  ;;  %v4420_v63 = vld [vmem:[#allocation2 + $0x109] sm:$0xff] }
 0x137   : > { %3214 = vmatpush1.bf16.msra.mxu1 %v3213_v50  ;;  %1462 = vmatprep.mubr.f32.mxu1 %v4332_v62  ;;  %v4352_v16 = vmax.f32 %v541_v9, 0.0  ;;  %v2908_v30 = vpop.f32.mrb[22].mxu0  ;;  %v4397_v9 = vld [vmem:[#allocation2 + $0xf1] sm:$0xff] }
 0x138   : > { %3215 = vmatprep.subr.bf16.mxu1 %v3733_v5  ;;  %652 = vst [vmem:[#allocation2 + $0x170] sm:$0xff] %v5388_v11  ;;  %v4366_v4 = vadd.f32 %v2908_v30, %v4185_v32  ;;  %v550_v29 = vpop.f32.mrb[23].mxu0  ;;  %v4387_v0 = vld [vmem:[#allocation2 + $0x127] sm:$0xff]  ;;  %v4437_v54 = vld [vmem:[#allocation2 + $0xcf] sm:$0xff] }
 0x139   : > { %1218 = vmatmul.mubr.f32.gmra.mrb[52].mxu0 %v4354_v21  ;;  %651 = vst [vmem:[#allocation2 + $0x168] sm:$0xff] %v4352_v16  ;;  %v551_v36 = vadd.f32 %v4185_v32, %v550_v29  ;;  %v1028_v11 = vld [vmem:[%s5382_s3 + $0x260] sm:$0xff] }
 0x13a   : > { %1463 = vmatmul.mubr.f32.gmra.mrb[4].mxu1 %v4369_v31  ;;  %1222 = vmatprep.mubr.f32.mxu0 %v608_v3  ;;  %v5387_v39 = vmax.f32 %v4366_v4, 0.0 }
 0x13b   : > { %1467 = vmatprep.mubr.f32.mxu1 %v4376_v38  ;;  %3217 = vmatpush1.bf16.msra.mxu1 %v3216_v14  ;;  %v4383_v50 = vmax.f32 %v551_v36, 0.0  ;;  %v2911_v55 = vpop.f32.mrb[24].mxu0  ;;  %v4408_v36 = vld [vmem:[#allocation2 + $0xc7] sm:$0xff]  ;;  %v4532_v44 = vld [vmem:[#allocation2 + $0x151] sm:$0xff] }
 0x13c   : > { %3218 = vmatprep.subr.bf16.mxu1 %v3733_v5  ;;  %654 = vst [vmem:[#allocation2 + $0x190] sm:$0xff] %v5387_v39  ;;  %v566_v3 = vadd.f32 %v2911_v55, %v4185_v32  ;;  %v560_v7 = vpop.f32.mrb[25].mxu0  ;;  %v1026_v55 = vld [vmem:[%s5382_s3 + $0x250] sm:$0xff]  ;;  %v4439_v35 = vld [vmem:[#allocation2 + $0x147] sm:$0xff] }
 0x13d   : > { %1223 = vmatmul.mubr.f32.gmra.mrb[54].mxu0 %v4385_v56  ;;  %653 = vst [vmem:[#allocation2 + $0x188] sm:$0xff] %v4383_v50  ;;  %v561_v14 = vadd.f32 %v4185_v32, %v560_v7 }
 0x13e   : > { %1468 = vmatmul.mubr.f32.gmra.mrb[6].mxu1 %v4397_v9  ;;  %1227 = vmatprep.mubr.f32.mxu0 %v4240_v27  ;;  %v4403_v30 = vmax.f32 %v566_v3, 0.0  ;;  %v1027_v3 = vld [vmem:[%s5382_s3 + $0x258] sm:$0xff] }
 0x13f   : > { %1472 = vmatprep.mubr.f32.mxu1 %v4387_v0  ;;  %3220 = vmatpush1.bf16.msra.mxu1 %v3219_v42  ;;  %v4406_v60 = vmax.f32 %v561_v14, 0.0  ;;  %v2914_v29 = vpop.f32.mrb[26].mxu0  ;;  %v4427_v14 = vld [vmem:[#allocation2 + $0x12f] sm:$0xff] }
 0x140   : > { %3221 = vmatprep.subr.bf16.mxu1 %v3733_v5  ;;  %656 = vst [vmem:[#allocation2 + $0x1b0] sm:$0xff] %v4403_v30  ;;  %v576_v42 = vadd.f32 %v2914_v29, %v4185_v32  ;;  %v570_v45 = vpop.f32.mrb[27].mxu0  ;;  %v3225_v29 = vpack.c.bf16 %v1027_v3, %v1026_v55  ;;  %v4448_v55 = vld [vmem:[#allocation2 + $0x111] sm:$0xff]  ;;  %v4486_v24 = vld [vmem:[#allocation2 + $0x167] sm:$0xff] }
 0x141   : > { %1228 = vmatmul.mubr.f32.gmra.mrb[56].mxu0 %v4408_v36  ;;  %655 = vst [vmem:[#allocation2 + $0x1a8] sm:$0xff] %v4406_v60  ;;  %v571_v7 = vadd.f32 %v4185_v32, %v570_v45 }
 0x142   : > { %1473 = vmatmul.mubr.f32.gmra.mrb[8].mxu1 %v4420_v63  ;;  %1232 = vmatprep.mubr.f32.mxu0 %v610_v15  ;;  %v4429_v39 = vmax.f32 %v576_v42, 0.0 }
 0x143   : > { %1477 = vmatprep.mubr.f32.mxu1 %v4427_v14  ;;  %3223 = vmatpush1.bf16.msra.mxu1 %v3222_v23  ;;  %v4435_v49 = vmax.f32 %v571_v7, 0.0  ;;  %v2917_v45 = vpop.f32.mrb[28].mxu0  ;;  %v3228_v7 = vpack.c.bf16 %v1029_v10, %v1028_v11  ;;  %v4472_v11 = vld [vmem:[#allocation2 + $0x129] sm:$0xff] }
 0x144   : > { %3224 = vmatprep.subr.bf16.mxu1 %v3733_v5  ;;  %658 = vst [vmem:[#allocation2 + $0x1d0] sm:$0xff] %v4429_v39  ;;  %v586_v15 = vadd.f32 %v2917_v45, %v4185_v32  ;;  %v580_v23 = vpop.f32.mrb[29].mxu0 }
 0x145   : > { %1233 = vmatmul.mubr.f32.gmra.mrb[58].mxu0 %v4437_v54  ;;  %657 = vst [vmem:[#allocation2 + $0x1c8] sm:$0xff] %v4435_v49  ;;  %v581_v3 = vadd.f32 %v4185_v32, %v580_v23  ;;  %v1030_v23 = vld [vmem:[%s5382_s3 + $0x270] sm:$0xff] }
 0x146   : > { %1478 = vmatmul.mubr.f32.gmra.mrb[10].mxu1 %v4448_v55  ;;  %1237 = vmatprep.mubr.f32.mxu0 %v611_v20  ;;  %v4455_v42 = vmax.f32 %v586_v15, 0.0  ;;  %v4481_v15 = vld [vmem:[#allocation2 + $0x14f] sm:$0xff] }
 0x147   : > { %1482 = vmatprep.mubr.f32.mxu1 %v4439_v35  ;;  %3226 = vmatpush1.bf16.msra.mxu1 %v3225_v29  ;;  %v4458_v45 = vmax.f32 %v581_v3, 0.0  ;;  %v2920_v37 = vpop.f32.mrb[30].mxu0 }
 0x148   : > { %3227 = vmatprep.subr.bf16.mxu1 %v3733_v5  ;;  %660 = vst [vmem:[#allocation2 + $0x1f0] sm:$0xff] %v4455_v42  ;;  %v4469_v20 = vadd.f32 %v2920_v37, %v4185_v32  ;;  %v590_v29 = vpop.f32.mrb[31].mxu0 }
 0x149   : > { %1238 = vmatmul.mubr.f32.gmra.mrb[60].mxu0 %v4298_v40  ;;  %659 = vst [vmem:[#allocation2 + $0x1e8] sm:$0xff] %v4458_v45  ;;  %v4476_v10 = vadd.f32 %v4185_v32, %v590_v29  ;;  %v3231_v40 = vpack.c.bf16 %v1031_v19, %v1030_v23  ;;  %v1032_v32 = vld [vmem:[%s5382_s3 + $0x280] sm:$0xff]  ;;  %v1035_v23 = vld [vmem:[%s5382_s3 + $0x298] sm:$0xff]  ;;  %v4514_v19 = vld [vmem:[#allocation2 + $0x149] sm:$0xff] }
 0x14a   : > { %5402 = vst [vmem:[#allocation6_spill] sm:$0xff] %v4469_v20  ;;  %1483 = vmatmul.mubr.f32.gmra.mrb[12].mxu1 %v4472_v11  ;;  %1242 = vmatprep.mubr.f32.mxu0 %v612_v34  ;;  %v5394_v37 = vmax.f32 %v4469_v20, 0.0  ;;  %v4498_v34 = vld [vmem:[#allocation2 + $0x131] sm:$0xff] }
 0x14b   : > { %5403 = vst [vmem:[#allocation7_spill] sm:$0xff] %v4476_v10  ;;  %1487 = vmatprep.mubr.f32.mxu1 %v4481_v15  ;;  %3229 = vmatpush1.bf16.msra.mxu1 %v3228_v7  ;;  %v5395_v3 = vmax.f32 %v4476_v10, 0.0  ;;  %v3234_v7 = vpack.c.bf16 %v1033_v17, %v1032_v32  ;;  %v1037_v32 = vld [vmem:[%s5382_s3 + $0x2a8] sm:$0xff]  ;;  %v5405_v17 = vmax.f32 %v4290_v33, 0.0  ;;  %v5406_v33 = vmax.f32 %v4278_v28, 0.0  ;;  %v4564_v28 = vld [vmem:[#allocation2 + $0x171] sm:$0xff] }
 0x14c   : > { %3230 = vmatprep.subr.bf16.mxu1 %v3733_v5  ;;  %662 = vst [vmem:[#allocation2 + $0x210] sm:$0xff] %v5394_v37  ;;  %v4708_v10 = vld [vmem:[#allocation2 + $0x71] sm:$0xff] }
 0x14d   : > { %1243 = vmatmul.mubr.f32.gmra.mrb[62].mxu0 %v4321_v48  ;;  %661 = vst [vmem:[#allocation2 + $0x208] sm:$0xff] %v5395_v3  ;;  %v1034_v48 = vld [vmem:[%s5382_s3 + $0x290] sm:$0xff] }
 0x14e   : > { %1488 = vmatmul.mubr.f32.gmra.mrb[14].mxu1 %v4498_v34  ;;  %1247 = vmatprep.mubr.f32.mxu0 %v613_v25  ;;  %v4519_v25 = vld [vmem:[#allocation2 + $0x16f] sm:$0xff]  ;;  %v3237_v29 = vpack.c.bf16 %v1035_v23, %v1034_v48 }
 0x14f   : > { %1492 = vmatprep.mubr.f32.mxu1 %v4486_v24  ;;  %3232 = vmatpush1.bf16.msra.mxu1 %v3231_v40  ;;  %v4522_v40 = vld [vmem:[#allocation2 + $0x187] sm:$0xff]  ;;  %v1038_v48 = vld [vmem:[%s5382_s3 + $0x2b0] sm:$0xff] }
 0x150   : > { %3233 = vmatprep.subr.bf16.mxu1 %v3733_v5  ;;  %v4546_v23 = vld [vmem:[#allocation2 + $0x169] sm:$0xff] }
 0x151   : > { %1248 = vmatmul.mubr.f32.gmra.mrb[64].mxu0 %v4332_v62  ;;  %v1036_v62 = vld [vmem:[%s5382_s3 + $0x2a0] sm:$0xff]  ;;  %v727_v3 = vld [vmem:[#allocation2 + $0x9] sm:$0xff] }
 0x152   : > { %1493 = vmatmul.mubr.f32.gmra.mrb[16].mxu1 %v4514_v19  ;;  %1252 = vmatprep.mubr.f32.mxu0 %v5404_v52  ;;  %v4551_v52 = vld [vmem:[#allocation2 + $0x18f] sm:$0xff] }
 0x153   : > { %1497 = vmatprep.mubr.f32.mxu1 %v4519_v25  ;;  %3235 = vmatpush1.bf16.msra.mxu1 %v3234_v7  ;;  %v3240_v7 = vpack.c.bf16 %v1037_v32, %v1036_v62  ;;  %v4554_v62 = vld [vmem:[#allocation2 + $0x1a7] sm:$0xff] }
 0x154   : > { %3236 = vmatprep.subr.bf16.mxu1 %v3733_v5  ;;  %v1041_v32 = vld [vmem:[%s5382_s3 + $0x2c8] sm:$0xff] }
 0x155   : > { %1253 = vmatmul.mubr.f32.gmra.mrb[66].mxu0 %v4376_v38  ;;  %v1039_v38 = vld [vmem:[%s5382_s3 + $0x2b8] sm:$0xff] }
 0x156   : > { %1498 = vmatmul.mubr.f32.gmra.mrb[18].mxu1 %v4532_v44  ;;  %1257 = vmatprep.mubr.f32.mxu0 %v5405_v17  ;;  %v5407_v17 = vmax.f32 %v4317_v47, 0.0  ;;  %v5408_v47 = vmax.f32 %v4308_v43, 0.0 }
 0x157   : > { %1502 = vmatprep.mubr.f32.mxu1 %v4522_v40  ;;  %3238 = vmatpush1.bf16.msra.mxu1 %v3237_v29  ;;  %v3243_v29 = vpack.c.bf16 %v1039_v38, %v1038_v48  ;;  %v1042_v48 = vld [vmem:[%s5382_s3 + $0x2d0] sm:$0xff] }
 0x158   : > { %3239 = vmatprep.subr.bf16.mxu1 %v3733_v5  ;;  %v4578_v38 = vld [vmem:[#allocation2 + $0x189] sm:$0xff] }
 0x159   : > { %1258 = vmatmul.mubr.f32.gmra.mrb[68].mxu0 %v4387_v0  ;;  %v1040_v0 = vld [vmem:[%s5382_s3 + $0x2c0] sm:$0xff] }
 0x15a   : > { %1503 = vmatmul.mubr.f32.gmra.mrb[20].mxu1 %v4546_v23  ;;  %1262 = vmatprep.mubr.f32.mxu0 %v5406_v33  ;;  %v784_v33 = vld [vmem:[#allocation2 + $0x1af] sm:$0xff] }
 0x15b   : > { %1507 = vmatprep.mubr.f32.mxu1 %v4551_v52  ;;  %3241 = vmatpush1.bf16.msra.mxu1 %v3240_v7  ;;  %v3246_v7 = vpack.c.bf16 %v1041_v32, %v1040_v0  ;;  %v785_v0 = vld [vmem:[#allocation2 + $0x1c7] sm:$0xff] }
 0x15c   : > { %3242 = vmatprep.subr.bf16.mxu1 %v3733_v5  ;;  %v1044_v32 = vld [vmem:[%s5382_s3 + $0x2e0] sm:$0xff] }
 0x15d   : > { %1263 = vmatmul.mubr.f32.gmra.mrb[70].mxu0 %v4427_v14  ;;  %v1043_v14 = vld [vmem:[%s5382_s3 + $0x2d8] sm:$0xff] }
 0x15e   : > { %1508 = vmatmul.mubr.f32.gmra.mrb[22].mxu1 %v4564_v28  ;;  %1267 = vmatprep.mubr.f32.mxu0 %v5407_v17  ;;  %v4591_v17 = vld [vmem:[#allocation2 + $0x191] sm:$0xff] }
 0x15f   : > { %1512 = vmatprep.mubr.f32.mxu1 %v4554_v62  ;;  %3244 = vmatpush1.bf16.msra.mxu1 %v3243_v29  ;;  %v3249_v29 = vpack.c.bf16 %v1043_v14, %v1042_v48  ;;  %v1047_v48 = vld [vmem:[%s5382_s3 + $0x2f8] sm:$0xff]  ;;  %v5409_v14 = vmax.f32 %v4340_v2, 0.0  ;;  %v5410_v2 = vmax.f32 %v4366_v4, 0.0  ;;  %v790_v4 = vld [vmem:[#allocation2 + $0x20f] sm:$0xff] }
 0x160   : > { %3245 = vmatprep.subr.bf16.mxu1 %v3733_v5 }
 0x161   : > { %1268 = vmatmul.mubr.f32.gmra.mrb[72].mxu0 %v4439_v35  ;;  %v1045_v35 = vld [vmem:[%s5382_s3 + $0x2e8] sm:$0xff] }
 0x162   : > { %1513 = vmatmul.mubr.f32.gmra.mrb[24].mxu1 %v4578_v38  ;;  %1272 = vmatprep.mubr.f32.mxu0 %v5408_v47  ;;  %v3252_v43 = vpack.c.bf16 %v1045_v35, %v1044_v32  ;;  %v786_v47 = vld [vmem:[#allocation2 + $0x1cf] sm:$0xff]  ;;  %v787_v32 = vld [vmem:[#allocation2 + $0x1e7] sm:$0xff] }
 0x163   : > { %1517 = vmatprep.mubr.f32.mxu1 %v784_v33  ;;  %3247 = vmatpush1.bf16.msra.mxu1 %v3246_v7  ;;  %v1046_v7 = vld [vmem:[%s5382_s3 + $0x2f0] sm:$0xff] }
 0x164   : > { %3248 = vmatprep.subr.bf16.mxu1 %v3733_v5  ;;  %v4610_v35 = vld [vmem:[#allocation2 + $0x1b1] sm:$0xff] }
 0x165   : > { %1273 = vmatmul.mubr.f32.gmra.mrb[74].mxu0 %v4481_v15  ;;  %v4603_v15 = vld [vmem:[#allocation2 + $0x1a9] sm:$0xff] }
 0x166   : > { %1518 = vmatmul.mubr.f32.gmra.mrb[26].mxu1 %v4591_v17  ;;  %1277 = vmatprep.mubr.f32.mxu0 %v4352_v16 }
 0x167   : > { %1522 = vmatprep.mubr.f32.mxu1 %v785_v0  ;;  %3250 = vmatpush1.bf16.msra.mxu1 %v3249_v29  ;;  %v3255_v29 = vpack.c.bf16 %v1047_v48, %v1046_v7  ;;  %v4622_v7 = vld [vmem:[#allocation2 + $0x1d1] sm:$0xff]  ;;  %v1049_v48 = vld [vmem:[%s5382_s3 + $0x308] sm:$0xff] }
 0x168   : > { %3251 = vmatprep.subr.bf16.mxu1 %v3733_v5 }
 0x169   : > { %1278 = vmatmul.mubr.f32.gmra.mrb[76].mxu0 %v4486_v24  ;;  %v4616_v24 = vld [vmem:[#allocation2 + $0x1c9] sm:$0xff] }
 0x16a   : > { %1523 = vmatmul.mubr.f32.gmra.mrb[28].mxu1 %v4603_v15  ;;  %1282 = vmatprep.mubr.f32.mxu0 %v5409_v14  ;;  %v4637_v14 = vld [vmem:[#allocation2 + $0x1f1] sm:$0xff] }
 0x16b   : > { %1527 = vmatprep.mubr.f32.mxu1 %v786_v47  ;;  %3253 = vmatpush1.bf16.msra.mxu1 %v3252_v43  ;;  %v789_v43 = vld [vmem:[#allocation2 + $0x207] sm:$0xff] }
 0x16c   : > { %3254 = vmatprep.subr.bf16.mxu1 %v3733_v5 }
 0x16d   : > { %1283 = vmatmul.mubr.f32.gmra.mrb[78].mxu0 %v4519_v25  ;;  %v788_v25 = vld [vmem:[#allocation2 + $0x1ef] sm:$0xff] }
 0x16e   : > { %1528 = vmatmul.mubr.f32.gmra.mrb[30].mxu1 %v4610_v35  ;;  %1287 = vmatprep.mubr.f32.mxu0 %v4383_v50 }
 0x16f   : > { %1532 = vmatprep.mubr.f32.mxu1 %v787_v32  ;;  %3256 = vmatpush1.bf16.msra.mxu1 %v3255_v29 }
 0x170   : > { %3257 = vmatprep.subr.bf16.mxu1 %v3733_v5 }
 0x171   : > { %1288 = vmatmul.mubr.f32.gmra.mrb[80].mxu0 %v4522_v40  ;;  %v4627_v40 = vld [vmem:[#allocation2 + $0x1e9] sm:$0xff] }
 0x172   : > { %1533 = vmatmul.mubr.f32.gmra.mrb[32].mxu1 %v4616_v24  ;;  %1292 = vmatprep.mubr.f32.mxu0 %v5410_v2  ;;  %v1050_v2 = vld [vmem:[%s5382_s3 + $0x310] sm:$0xff] }
 0x173   : > { %1537 = vmatprep.mubr.f32.mxu1 %v788_v25 }
 0x175   : > { %1293 = vmatmul.mubr.f32.gmra.mrb[82].mxu0 %v4551_v52  ;;  %v1048_v52 = vld [vmem:[%s5382_s3 + $0x300] sm:$0xff] }
 0x176   : > { %1538 = vmatmul.mubr.f32.gmra.mrb[34].mxu1 %v4622_v7  ;;  %1297 = vmatprep.mubr.f32.mxu0 %v4406_v60  ;;  %v3258_v29 = vpack.c.bf16 %v1049_v48, %v1048_v52  ;;  %v1052_v52 = vld [vmem:[%s5382_s3 + $0x320] sm:$0xff]  ;;  %v792_v48 = vld [vmem:[#allocation2 + $0x30] sm:$0xff] }
 0x177   : > { %1542 = vmatprep.mubr.f32.mxu1 %v789_v43  ;;  %v1051_v43 = vld [vmem:[%s5382_s3 + $0x318] sm:$0xff] }
 0x178   : > { %v3261_v37 = vpack.c.bf16 %v1051_v43, %v1050_v2  ;;  %v1054_v2 = vld [vmem:[%s5382_s3 + $0x330] sm:$0xff]  ;;  %v4672_v43 = vld [vmem:[#allocation2 + $0x48] sm:$0xff] }
 0x179   : > { %1298 = vmatmul.mubr.f32.gmra.mrb[84].mxu0 %v4554_v62  ;;  %v4641_v62 = vld [vmem:[#allocation2 + $0x29] sm:$0xff]  ;;  %5411 = vst [vmem:[#allocation8_spill] sm:$0xff] %v4672_v43 }
 0x17a   : > { %1543 = vmatmul.mubr.f32.gmra.mrb[36].mxu1 %v4627_v40  ;;  %1302 = vmatprep.mubr.f32.mxu0 %v4403_v30 }
 0x17b   : > { %1547 = vmatprep.mubr.f32.mxu1 %v790_v4  ;;  %v4651_v4 = vld [vmem:[#allocation2 + $0x31] sm:$0xff] }
 0x17d   : > { %1303 = vmatmul.mubr.f32.gmra.mrb[86].mxu0 %v784_v33  ;;  %v791_v33 = vld [vmem:[#allocation2 + $0x28] sm:$0xff] }
 0x17e   : > { %1548 = vmatmul.mubr.f32.gmra.mrb[38].mxu1 %v4637_v14  ;;  %1307 = vmatprep.mubr.f32.mxu0 %v4435_v49 }
 0x17f   : > { %1617 = vmatprep.mubr.f32.mxu1 %v4641_v62 }
 0x181   : > { %1308 = vmatmul.mubr.f32.gmra.mrb[88].mxu0 %v785_v0  ;;  %v1053_v0 = vld [vmem:[%s5382_s3 + $0x328] sm:$0xff] }
 0x182   : > { %1618 = vmatmul.mubr.f32.vlgmr.msra.gmra.mrb[40].mxu1 %v791_v33  ;;  %1312 = vmatprep.mubr.f32.mxu0 %v4429_v39  ;;  %v4662_v33 = vld [vmem:[#allocation2 + $0x49] sm:$0xff] }
 0x183   : > { %3259 = vmatpush1.bf16.msra.mxu1 %v3258_v29  ;;  %1622 = vmatprep.mubr.f32.mxu1 %v4651_v4  ;;  %v3264_v29 = vpack.c.bf16 %v1053_v0, %v1052_v52  ;;  %v1056_v52 = vld [vmem:[%s5382_s3 + $0x340] sm:$0xff]  ;;  %v4686_v0 = vld [vmem:[#allocation2 + $0x50] sm:$0xff] }
 0x184   : > { %3260 = vmatprep.subr.bf16.mxu1 %v3733_v5  ;;  %5412 = vst [vmem:[#allocation9_spill] sm:$0xff] %v4686_v0 }
 0x185   : > { %1313 = vmatmul.mubr.f32.gmra.mrb[90].mxu0 %v786_v47  ;;  %v1055_v47 = vld [vmem:[%s5382_s3 + $0x338] sm:$0xff] }
 0x186   : > { %1623 = vmatmul.mubr.f32.gmra.mrb[42].mxu1 %v792_v48  ;;  %1317 = vmatprep.mubr.f32.mxu0 %v4458_v45  ;;  %v4676_v48 = vld [vmem:[#allocation2 + $0x51] sm:$0xff] }
 0x187   : > { %1627 = vmatprep.mubr.f32.mxu1 %v4662_v33  ;;  %3262 = vmatpush1.bf16.msra.mxu1 %v3261_v37  ;;  %v3267_v37 = vpack.c.bf16 %v1055_v47, %v1054_v2  ;;  %v1082_v2 = vld [vmem:[%s5382_s3 + $0x410] sm:$0xff]  ;;  %v1083_v47 = vld [vmem:[%s5382_s3 + $0x418] sm:$0xff] }
 0x188   : > { %3263 = vmatprep.subr.bf16.mxu1 %v3733_v5  ;;  %v3309_v20 = vpack.c.bf16 %v1083_v47, %v1082_v2  ;;  %v1087_v2 = vld [vmem:[%s5382_s3 + $0x438] sm:$0xff] }
 0x189   : > { %1318 = vmatmul.mubr.f32.gmra.mrb[92].mxu0 %v787_v32  ;;  %v1057_v32 = vld [vmem:[%s5382_s3 + $0x348] sm:$0xff] }
 0x18a   : > { %1628 = vmatmul.mubr.f32.gmra.mrb[44].mxu1 %v4672_v43  ;;  %1322 = vmatprep.mubr.f32.mxu0 %v4455_v42  ;;  %v728_v43 = vld [vmem:[#allocation2 + $0x11] sm:$0xff] }
 0x18b   : > { %1632 = vmatprep.mubr.f32.mxu1 %v4676_v48  ;;  %3265 = vmatpush1.bf16.msra.mxu1 %v3264_v29  ;;  %v4690_v29 = vld [vmem:[#allocation2 + $0x69] sm:$0xff] }
 0x18c   : > { %3266 = vmatprep.subr.bf16.mxu1 %v3733_v5 }
 0x18d   : > { %1323 = vmatmul.mubr.f32.gmra.mrb[94].mxu0 %v788_v25  ;;  %v3270_v25 = vpack.c.bf16 %v1057_v32, %v1056_v52  ;;  %v1085_v52 = vld [vmem:[%s5382_s3 + $0x428] sm:$0xff] }
 0x18e   : > { %1633 = vmatmul.mubr.f32.gmra.mrb[46].mxu1 %v4686_v0  ;;  %1392 = vmatprep.mubr.f32.mxu0 %v4199_v57  ;;  %v1058_v57 = vld [vmem:[%s5382_s3 + $0x350] sm:$0xff]  ;;  %v1059_v0 = vld [vmem:[%s5382_s3 + $0x358] sm:$0xff] }
 0x18f   : > { %1637 = vmatprep.mubr.f32.mxu1 %v4690_v29  ;;  %3268 = vmatpush1.bf16.msra.mxu1 %v3267_v37  ;;  %v1084_v37 = vld [vmem:[%s5382_s3 + $0x420] sm:$0xff] }
 0x190   : > { %3269 = vmatprep.subr.bf16.mxu1 %v3733_v5  ;;  %v3313_v32 = vpack.c.bf16 %v1085_v52, %v1084_v37  ;;  %v4765_v52 = vld [vmem:[#allocation2 + $0xa9] sm:$0xff] }
 0x191   : > { %1393 = vmatmul.mubr.f32.vlgmr.msra.gmra.mrb[32].mxu0 %v727_v3  ;;  %v3273_v3 = vpack.c.bf16 %v1059_v0, %v1058_v57  ;;  %v4727_v0 = vld [vmem:[#allocation2 + $0x89] sm:$0xff] }
 0x192   : > { %1638 = vmatmul.mubr.f32.gmra.mrb[48].mxu1 %v4195_v53  ;;  %1397 = vmatprep.mubr.f32.mxu0 %v4212_v1  ;;  %v1060_v53 = vld [vmem:[%s5382_s3 + $0x360] sm:$0xff]  ;;  %v1061_v1 = vld [vmem:[%s5382_s3 + $0x368] sm:$0xff] }
 0x193   : > { %1642 = vmatprep.mubr.f32.mxu1 %v4708_v10  ;;  %3271 = vmatpush1.bf16.msra.mxu1 %v3270_v25  ;;  %v4746_v25 = vld [vmem:[#allocation2 + $0x91] sm:$0xff]  ;;  %v1089_v57 = vld [vmem:[%s5382_s3 + $0x448] sm:$0xff] }
 0x194   : > { %3308 = vmatpush3.bf16.msra.mxu0 %v4233_v13  ;;  %3272 = vmatprep.subr.bf16.mxu1 %v3733_v5  ;;  %v1086_v13 = vld [vmem:[%s5382_s3 + $0x430] sm:$0xff] }
 0x195   : > { %1398 = vmatmul.mubr.f32.gmra.mrb[34].mxu0 %v728_v43  ;;  %3310 = vmatprep.subr.bf16.mxu0 %v3309_v20  ;;  %v3276_v43 = vpack.c.bf16 %v1061_v1, %v1060_v53  ;;  %v3317_v47 = vpack.c.bf16 %v1087_v2, %v1086_v13  ;;  %v1091_v53 = vld [vmem:[%s5382_s3 + $0x458] sm:$0xff]  ;;  %v1092_v13 = vld [vmem:[%s5382_s3 + $0x460] sm:$0xff]  ;;  %v1093_v2 = vld [vmem:[%s5382_s3 + $0x468] sm:$0xff] }
 0x196   : > { %1643 = vmatmul.mubr.f32.gmra.mrb[50].mxu1 %v4193_v51  ;;  %1402 = vmatprep.mubr.f32.mxu0 %v4231_v12  ;;  %v1062_v51 = vld [vmem:[%s5382_s3 + $0x370] sm:$0xff]  ;;  %v1063_v12 = vld [vmem:[%s5382_s3 + $0x378] sm:$0xff] }
 0x197   : > { %1647 = vmatprep.mubr.f32.mxu1 %v4727_v0  ;;  %3274 = vmatpush1.bf16.msra.mxu1 %v3273_v3  ;;  %v1090_v3 = vld [vmem:[%s5382_s3 + $0x450] sm:$0xff] }
 0x198   : > { %3312 = vmatpush3.bf16.msra.mxu0 %v3309_v20  ;;  %3275 = vmatprep.subr.bf16.mxu1 %v3733_v5  ;;  %v1088_v20 = vld [vmem:[%s5382_s3 + $0x440] sm:$0xff]  ;;  %v3325_v1 = vpack.c.bf16 %v1091_v53, %v1090_v3  ;;  %v1075_v3 = vld [vmem:[%s5382_s3 + $0x3d8] sm:$0xff]  ;;  %v4844_v53 = vld [vmem:[#allocation2 + $0xe8] sm:$0xff] }
 0x199   : > { %1403 = vmatmul.mubr.f32.gmra.mrb[36].mxu0 %v4641_v62  ;;  %3314 = vmatprep.subr.bf16.mxu0 %v3313_v32  ;;  %v3279_v62 = vpack.c.bf16 %v1063_v12, %v1062_v51  ;;  %v3321_v37 = vpack.c.bf16 %v1089_v57, %v1088_v20  ;;  %v4801_v51 = vld [vmem:[#allocation2 + $0xb0] sm:$0xff]  ;;  %v3329_v12 = vpack.c.bf16 %v1093_v2, %v1092_v13  ;;  %v1095_v20 = vld [vmem:[%s5382_s3 + $0x478] sm:$0xff]  ;;  %v4882_v13 = vld [vmem:[#allocation2 + $0x128] sm:$0xff] }
 0x19a   : > { %1648 = vmatmul.mubr.f32.gmra.mrb[52].mxu1 %v4206_v61  ;;  %1407 = vmatprep.mubr.f32.mxu0 %v4247_v18  ;;  %v1064_v61 = vld [vmem:[%s5382_s3 + $0x380] sm:$0xff]  ;;  %v1065_v18 = vld [vmem:[%s5382_s3 + $0x388] sm:$0xff] }
 0x19b   : > { %1652 = vmatprep.mubr.f32.mxu1 %v4746_v25  ;;  %3277 = vmatpush1.bf16.msra.mxu1 %v3276_v43  ;;  %v861_v2 = vld [vmem:[#allocation2 + $0x8f] sm:$0xff] }
 0x19c   : > { %3316 = vmatpush3.bf16.msra.mxu0 %v3313_v32  ;;  %3278 = vmatprep.subr.bf16.mxu1 %v3733_v5  ;;  %v4784_v32 = vld [vmem:[#allocation2 + $0xb1] sm:$0xff] }
 0x19d   : > { %1408 = vmatmul.mubr.f32.gmra.mrb[38].mxu0 %v4651_v4  ;;  %3318 = vmatprep.subr.bf16.mxu0 %v3317_v47  ;;  %v3282_v4 = vpack.c.bf16 %v1065_v18, %v1064_v61  ;;  %v1072_v18 = vld [vmem:[%s5382_s3 + $0x3c0] sm:$0xff] }
 0x19e   : > { %1653 = vmatmul.mubr.f32.gmra.mrb[54].mxu1 %v4204_v59  ;;  %1412 = vmatprep.mubr.f32.mxu0 %v4262_v22  ;;  %v1066_v59 = vld [vmem:[%s5382_s3 + $0x390] sm:$0xff]  ;;  %v1067_v22 = vld [vmem:[%s5382_s3 + $0x398] sm:$0xff] }
 0x19f   : > { %1657 = vmatprep.mubr.f32.mxu1 %v4765_v52  ;;  %3280 = vmatpush1.bf16.msra.mxu1 %v3279_v62  ;;  %v3285_v43 = vpack.c.bf16 %v1067_v22, %v1066_v59  ;;  %v1070_v62 = vld [vmem:[%s5382_s3 + $0x3b0] sm:$0xff]  ;;  %v1079_v22 = vld [vmem:[%s5382_s3 + $0x3f8] sm:$0xff] }
 0x1a0   : > { %3320 = vmatpush3.bf16.msra.mxu0 %v3317_v47  ;;  %3281 = vmatprep.subr.bf16.mxu1 %v3733_v5  ;;  %v1094_v47 = vld [vmem:[%s5382_s3 + $0x470] sm:$0xff] }
 0x1a1   : > { %1413 = vmatmul.mubr.f32.gmra.mrb[40].mxu0 %v4662_v33  ;;  %3322 = vmatprep.subr.bf16.mxu0 %v3321_v37  ;;  %v3333_v61 = vpack.c.bf16 %v1095_v20, %v1094_v47  ;;  %v4857_v59 = vld [vmem:[#allocation2 + $0xf0] sm:$0xff] }
 0x1a2   : > { %1658 = vmatmul.mubr.f32.gmra.mrb[56].mxu1 %v4218_v6  ;;  %1417 = vmatprep.mubr.f32.mxu0 %v4275_v26  ;;  %v1068_v6 = vld [vmem:[%s5382_s3 + $0x3a0] sm:$0xff]  ;;  %v1069_v26 = vld [vmem:[%s5382_s3 + $0x3a8] sm:$0xff] }
 0x1a3   : > { %1662 = vmatprep.mubr.f32.mxu1 %v4784_v32  ;;  %3283 = vmatpush1.bf16.msra.mxu1 %v3282_v4  ;;  %v3288_v57 = vpack.c.bf16 %v1069_v26, %v1068_v6  ;;  %v1077_v4 = vld [vmem:[%s5382_s3 + $0x3e8] sm:$0xff] }
 0x1a4   : > { %3324 = vmatpush3.bf16.msra.mxu0 %v3321_v37  ;;  %3284 = vmatprep.subr.bf16.mxu1 %v3733_v5  ;;  %v1073_v37 = vld [vmem:[%s5382_s3 + $0x3c8] sm:$0xff] }
 0x1a5   : > { %1418 = vmatmul.mubr.f32.gmra.mrb[42].mxu0 %v4676_v48  ;;  %3326 = vmatprep.subr.bf16.mxu0 %v3325_v1 }
 0x1a6   : > { %1663 = vmatmul.mubr.f32.gmra.mrb[58].mxu1 %v4801_v51  ;;  %1422 = vmatprep.mubr.f32.mxu0 %v4302_v41  ;;  %v1071_v41 = vld [vmem:[%s5382_s3 + $0x3b8] sm:$0xff] }
 0x1a7   : > { %1667 = vmatprep.mubr.f32.mxu1 %v4312_v46  ;;  %3286 = vmatpush1.bf16.msra.mxu1 %v3285_v43  ;;  %v3291_v46 = vpack.c.bf16 %v1071_v41, %v1070_v62  ;;  %v894_v43 = vld [vmem:[#allocation2 + $0xa8] sm:$0xff] }
 0x1a8   : > { %3328 = vmatpush3.bf16.msra.mxu0 %v3325_v1  ;;  %3287 = vmatprep.subr.bf16.mxu1 %v3733_v5  ;;  %v4870_v1 = vld [vmem:[#allocation2 + $0x108] sm:$0xff] }
 0x1a9   : > { %1423 = vmatmul.mubr.f32.gmra.mrb[44].mxu0 %v4690_v29  ;;  %3330 = vmatprep.subr.bf16.mxu0 %v3329_v12  ;;  %v896_v62 = vld [vmem:[#allocation2 + $0xc8] sm:$0xff] }
 0x1aa   : > { %1668 = vmatmul.mubr.f32.gmra.mrb[60].mxu1 %v4240_v27  ;;  %1427 = vmatprep.mubr.f32.mxu0 %v4329_v58  ;;  %v4831_v27 = vld [vmem:[#allocation2 + $0xd0] sm:$0xff]  ;;  %v3294_v58 = vpack.c.bf16 %v1073_v37, %v1072_v18 }
 0x1ab   : > { %1672 = vmatprep.mubr.f32.mxu1 %v4343_v8  ;;  %3289 = vmatpush1.bf16.msra.mxu1 %v3288_v57  ;;  %v1074_v8 = vld [vmem:[%s5382_s3 + $0x3d0] sm:$0xff] }
 0x1ac   : > { %3332 = vmatpush3.bf16.msra.mxu0 %v3329_v12  ;;  %3290 = vmatprep.subr.bf16.mxu1 %v3733_v5  ;;  %v862_v12 = vld [vmem:[#allocation2 + $0xa7] sm:$0xff]  ;;  %v863_v57 = vld [vmem:[#allocation2 + $0xaf] sm:$0xff] }
 0x1ad   : > { %1428 = vmatmul.mubr.f32.gmra.mrb[46].mxu0 %v4708_v10  ;;  %3334 = vmatprep.subr.bf16.mxu0 %v3333_v61 }
 0x1ae   : > { %1673 = vmatmul.mubr.f32.gmra.mrb[62].mxu1 %v4831_v27  ;;  %1432 = vmatprep.mubr.f32.mxu0 %v4354_v21  ;;  %v3297_v21 = vpack.c.bf16 %v1075_v3, %v1074_v8  ;;  %v866_v3 = vld [vmem:[#allocation2 + $0xe7] sm:$0xff] }
 0x1af   : > { %1677 = vmatprep.mubr.f32.mxu1 %v4369_v31  ;;  %3292 = vmatpush1.bf16.msra.mxu1 %v3291_v46  ;;  %v1076_v31 = vld [vmem:[%s5382_s3 + $0x3e0] sm:$0xff] }
 0x1b0   : > { %3336 = vmatpush3.bf16.msra.mxu0 %v3333_v61  ;;  %3293 = vmatprep.subr.bf16.mxu1 %v3733_v5  ;;  %v864_v46 = vld [vmem:[#allocation2 + $0xc7] sm:$0xff] }
 0x1b1   : > { %1433 = vmatmul.mubr.f32.gmra.mrb[48].mxu0 %v4727_v0 }
 0x1b2   : > { %1678 = vmatmul.mubr.f32.gmra.mrb[0].mxu1 %v4844_v53  ;;  %1437 = vmatprep.mubr.f32.mxu0 %v4385_v56  ;;  %v3300_v56 = vpack.c.bf16 %v1077_v4, %v1076_v31  ;;  %v867_v4 = vld [vmem:[#allocation2 + $0xef] sm:$0xff] }
 0x1b3   : > { %1682 = vmatprep.mubr.f32.mxu1 %v4397_v9  ;;  %3295 = vmatpush1.bf16.msra.mxu1 %v3294_v58  ;;  %v1078_v9 = vld [vmem:[%s5382_s3 + $0x3f0] sm:$0xff] }
 0x1b4   : > { %3296 = vmatprep.subr.bf16.mxu1 %v3733_v5  ;;  %v865_v58 = vld [vmem:[#allocation2 + $0xcf] sm:$0xff] }
 0x1b5   : > { %1438 = vmatmul.mubr.f32.gmra.mrb[50].mxu0 %v4746_v25 }
 0x1b6   : > { %1683 = vmatmul.mubr.f32.gmra.mrb[2].mxu1 %v4857_v59  ;;  %1442 = vmatprep.mubr.f32.mxu0 %v4408_v36  ;;  %v3303_v36 = vpack.c.bf16 %v1079_v22, %v1078_v9  ;;  %v868_v9 = vld [vmem:[#allocation2 + $0x107] sm:$0xff] }
 0x1b7   : > { %1687 = vmatprep.mubr.f32.mxu1 %v4420_v63  ;;  %3298 = vmatpush1.bf16.msra.mxu1 %v3297_v21  ;;  %v4877_v63 = vld [vmem:[#allocation2 + $0x110] sm:$0xff] }
 0x1b8   : > { %3299 = vmatprep.subr.bf16.mxu1 %v3733_v5 }
 0x1b9   : > { %1443 = vmatmul.mubr.f32.gmra.mrb[52].mxu0 %v4765_v52 }
 0x1ba   : > { %1688 = vmatmul.mubr.f32.gmra.mrb[4].mxu1 %v4870_v1  ;;  %1447 = vmatprep.mubr.f32.mxu0 %v4437_v54  ;;  %v4894_v54 = vld [vmem:[#allocation2 + $0x148] sm:$0xff] }
 0x1bb   : > { %1692 = vmatprep.mubr.f32.mxu1 %v4448_v55  ;;  %3301 = vmatpush1.bf16.msra.mxu1 %v3300_v56  ;;  %v4900_v55 = vld [vmem:[#allocation2 + $0x150] sm:$0xff] }
 0x1bc   : > { %3302 = vmatprep.subr.bf16.mxu1 %v3733_v5  ;;  %v4888_v5 = vld [vmem:[#allocation2 + $0x130] sm:$0xff] }
 0x1bd   : > { %1448 = vmatmul.mubr.f32.gmra.mrb[54].mxu0 %v4784_v32 }
 0x1be   : > { %1693 = vmatmul.mubr.f32.gmra.mrb[6].mxu1 %v4877_v63  ;;  %2953 = vmatprep.mubr.f32.mxu0 %v4662_v33  ;;  %v930_v33 = vld [vmem:[#allocation2 + $0xe9] sm:$0xff] }
 0x1bf   : > { %1697 = vmatprep.mubr.f32.mxu1 %v4472_v11  ;;  %3304 = vmatpush1.bf16.msra.mxu1 %v3303_v36  ;;  %v928_v11 = vld [vmem:[#allocation2 + $0xc9] sm:$0xff] }
 0x1c0   : > { %v869_v36 = vld [vmem:[#allocation2 + $0x10f] sm:$0xff] }
 0x1c1   : > { %2954 = vmatmul.mubr.f32.vlgmr.msra.gmra.mrb[96].mxu0 %v4676_v48  ;;  %v931_v48 = vld [vmem:[#allocation2 + $0xf1] sm:$0xff] }
 0x1c2   : > { %1698 = vmatmul.mubr.f32.gmra.mrb[8].mxu1 %v4882_v13  ;;  %2956 = vmatprep.mubr.f32.mxu0 %v4690_v29  ;;  %v4907_v29 = vld [vmem:[#allocation2 + $0x170] sm:$0xff] }
 0x1c3   : > { %1702 = vmatprep.mubr.f32.mxu1 %v4498_v34 }
 0x1c5   : > { %2957 = vmatmul.mubr.f32.gmra.mrb[98].mxu0 %v4708_v10  ;;  %v929_v10 = vld [vmem:[#allocation2 + $0xd1] sm:$0xff] }
 0x1c6   : > { %1703 = vmatmul.mubr.f32.gmra.mrb[10].mxu1 %v4888_v5  ;;  %2959 = vmatprep.mubr.f32.mxu0 %v4727_v0  ;;  %v932_v0 = vld [vmem:[#allocation2 + $0x109] sm:$0xff] }
 0x1c7   : > { %1707 = vmatprep.mubr.f32.mxu1 %v4514_v19 }
 0x1c9   : > { %2960 = vmatmul.mubr.f32.gmra.mrb[100].mxu0 %v4746_v25  ;;  %v933_v25 = vld [vmem:[#allocation2 + $0x111] sm:$0xff] }
 0x1ca   : > { %1708 = vmatmul.mubr.f32.gmra.mrb[12].mxu1 %v4894_v54  ;;  %2962 = vmatprep.mubr.f32.mxu0 %v4765_v52  ;;  %v934_v52 = vld [vmem:[#allocation2 + $0x129] sm:$0xff] }
 0x1cb   : > { %1712 = vmatprep.mubr.f32.mxu1 %v4532_v44 }
 0x1cd   : > { %2963 = vmatmul.mubr.f32.gmra.mrb[102].mxu0 %v4784_v32 }
 0x1ce   : > { %1713 = vmatmul.mubr.f32.gmra.mrb[14].mxu1 %v4900_v55  ;;  %2965 = vmatprep.mubr.f32.mxu0 %v928_v11 }
 0x1cf   : > { %1717 = vmatprep.mubr.f32.mxu1 %v4546_v23 }
 0x1d1   : > { %2966 = vmatmul.mubr.f32.gmra.mrb[104].mxu0 %v929_v10  ;;  %v870_v10 = vld [vmem:[#allocation2 + $0x127] sm:$0xff] }
 0x1d2   : > { %1718 = vmatmul.mubr.f32.gmra.mrb[16].mxu1 %v4352_v16  ;;  %2968 = vmatprep.mubr.f32.mxu0 %v930_v33  ;;  %v4913_v16 = vld [vmem:[#allocation2 + $0x190] sm:$0xff] }
 0x1d3   : > { %1722 = vmatprep.mubr.f32.mxu1 %v4564_v28 }
 0x1d5   : > { %2969 = vmatmul.mubr.f32.gmra.mrb[106].mxu0 %v931_v48  ;;  %v871_v48 = vld [vmem:[#allocation2 + $0x12f] sm:$0xff] }
 0x1d6   : > { %1723 = vmatmul.mubr.f32.gmra.mrb[18].mxu1 %v4907_v29  ;;  %2971 = vmatprep.mubr.f32.mxu0 %v932_v0  ;;  %v2261_v0 = vld [vmem:[%s5384_s5 + $0x8] sm:$0xff] }
 0x1d7   : > { %1727 = vmatprep.mubr.f32.mxu1 %v4578_v38 }
 0x1d9   : > { %2972 = vmatmul.mubr.f32.gmra.mrb[108].mxu0 %v933_v25 }
 0x1da   : > { %1728 = vmatmul.mubr.f32.gmra.mrb[20].mxu1 %v4383_v50  ;;  %2974 = vmatprep.mubr.f32.mxu0 %v934_v52  ;;  %v5413_v50 = vld [vmem:[#allocation7_spill] sm:$0xff] }
 0x1db   : > { %1732 = vmatprep.mubr.f32.mxu1 %v4591_v17  ;;  %v872_v52 = vld [vmem:[#allocation2 + $0x147] sm:$0xff] }
 0x1dd   : > { %2975 = vmatmul.mubr.f32.gmra.mrb[110].mxu0 %v4498_v34  ;;  %v951_v34 = vld [vmem:[#allocation2 + $0x231] sm:$0xff] }
 0x1de   : > { %1733 = vmatmul.mubr.f32.gmra.mrb[22].mxu1 %v4913_v16  ;;  %2977 = vmatprep.mubr.f32.mxu0 %v4514_v19 }
 0x1df   : > { %1737 = vmatprep.mubr.f32.mxu1 %v4603_v15 }
 0x1e1   : > { %2978 = vmatmul.mubr.f32.gmra.mrb[112].mxu0 %v4532_v44  ;;  %v5417_v44 = vld [vmem:[#allocation8_spill] sm:$0xff] }
 0x1e2   : > { %1738 = vmatmul.mubr.f32.gmra.mrb[24].mxu1 %v4406_v60  ;;  %2980 = vmatprep.mubr.f32.mxu0 %v4546_v23  ;;  %v950_v60 = vld [vmem:[#allocation2 + $0x229] sm:$0xff] }
 0x1e3   : > { %1742 = vmatprep.mubr.f32.mxu1 %v4610_v35  ;;  %v856_v23 = vld [vmem:[#allocation2 + $0x47] sm:$0xff] }
 0x1e5   : > { %2981 = vmatmul.mubr.f32.gmra.mrb[114].mxu0 %v4564_v28  ;;  %v857_v28 = vld [vmem:[#allocation2 + $0x4f] sm:$0xff] }
 0x1e6   : > { %1743 = vmatmul.mubr.f32.gmra.mrb[26].mxu1 %v4403_v30  ;;  %2983 = vmatprep.mubr.f32.mxu0 %v4578_v38  ;;  %v5414_v30 = vmax.f32 %v5413_v50, 0.0  ;;  %v890_v38 = vld [vmem:[#allocation2 + $0x68] sm:$0xff] }
 0x1e7   : > { %1747 = vmatprep.mubr.f32.mxu1 %v4616_v24 }
 0x1e9   : > { %2984 = vmatmul.mubr.f32.gmra.mrb[116].mxu0 %v4591_v17  ;;  %v858_v17 = vld [vmem:[#allocation2 + $0x67] sm:$0xff] }
 0x1ea   : > { %1748 = vmatmul.mubr.f32.gmra.mrb[28].mxu1 %v4435_v49  ;;  %2986 = vmatprep.mubr.f32.mxu0 %v4603_v15  ;;  %v853_v49 = vld [vmem:[#allocation2 + $0x209] sm:$0xff] }
 0x1eb   : > { %1752 = vmatprep.mubr.f32.mxu1 %v4622_v7  ;;  %v891_v15 = vld [vmem:[#allocation2 + $0x70] sm:$0xff] }
 0x1ed   : > { %2987 = vmatmul.mubr.f32.gmra.mrb[118].mxu0 %v4610_v35  ;;  %v859_v35 = vld [vmem:[#allocation2 + $0x6f] sm:$0xff] }
 0x1ee   : > { %1753 = vmatmul.mubr.f32.gmra.mrb[30].mxu1 %v4429_v39  ;;  %2989 = vmatprep.mubr.f32.mxu0 %v4616_v24  ;;  %v949_v39 = vld [vmem:[#allocation2 + $0x211] sm:$0xff]  ;;  %v892_v24 = vld [vmem:[#allocation2 + $0x88] sm:$0xff] }
 0x1ef   : > { %1757 = vmatprep.mubr.f32.mxu1 %v4627_v40 }
 0x1f1   : > { %2990 = vmatmul.mubr.f32.gmra.mrb[120].mxu0 %v4622_v7  ;;  %v860_v7 = vld [vmem:[#allocation2 + $0x87] sm:$0xff] }
 0x1f2   : > { %1758 = vmatmul.mubr.f32.gmra.mrb[32].mxu1 %v4458_v45  ;;  %2992 = vmatprep.mubr.f32.mxu0 %v4627_v40  ;;  %v5415_v45 = vld [vmem:[#allocation6_spill] sm:$0xff]  ;;  %v893_v40 = vld [vmem:[#allocation2 + $0x90] sm:$0xff] }
 0x1f3   : > { %1762 = vmatprep.mubr.f32.mxu1 %v4637_v14  ;;  %v5416_v19 = vmax.f32 %v5415_v45, 0.0  ;;  %v2265_v45 = vld [vmem:[%s5384_s5 + $0x28] sm:$0xff] }
 0x1f5   : > { %2993 = vmatmul.mubr.f32.gmra.mrb[122].mxu0 %v4637_v14 }
 0x1f6   : > { %1763 = vmatmul.mubr.f32.gmra.mrb[34].mxu1 %v4455_v42  ;;  %2995 = vmatprep.mubr.f32.mxu0 %v853_v49  ;;  %v5418_v42 = vld [vmem:[#allocation9_spill] sm:$0xff] }
 0x1f7   : > { %1767 = vmatprep.mubr.f32.mxu1 %v853_v49  ;;  %v2262_v49 = vld [vmem:[%s5384_s5 + $0x10] sm:$0xff] }
 0x1f9   : > { %2996 = vmatmul.mubr.f32.gmra.mrb[124].mxu0 %v949_v39 }
 0x1fa   : > { %1768 = vmatmul.mubr.f32.gmra.mrb[36].mxu1 %v5414_v30  ;;  %2998 = vmatprep.mubr.f32.mxu0 %v950_v60  ;;  %v873_v60 = vld [vmem:[#allocation2 + $0x14f] sm:$0xff] }
 0x1fb   : > { %1772 = vmatprep.mubr.f32.mxu1 %v949_v39  ;;  %v2263_v39 = vld [vmem:[%s5384_s5 + $0x18] sm:$0xff] }
 0x1fc   : > { %v3341_v50 = vpack.c.bf16 %v2263_v39, %v2262_v49  ;;  %v881_v39 = vld [vmem:[#allocation2 + $0x1cf] sm:$0xff] }
 0x1fd   : > { %2999 = vmatmul.mubr.f32.gmra.mrb[126].mxu0 %v951_v34  ;;  %v2264_v34 = vld [vmem:[%s5384_s5 + $0x20] sm:$0xff] }
 0x1fe   : > { %1773 = vmatmul.mubr.f32.gmra.mrb[38].mxu1 %v5416_v19  ;;  %v906_v19 = vld [vmem:[#allocation2 + $0x168] sm:$0xff] }
 0x1ff   : > { %1842 = vmatprep.mubr.f32.mxu1 %v5417_v44  ;;  %v3345_v44 = vpack.c.bf16 %v2265_v45, %v2264_v34  ;;  %v882_v34 = vld [vmem:[#allocation2 + $0x1e7] sm:$0xff]  ;;  %v915_v45 = vld [vmem:[#allocation2 + $0x1f0] sm:$0xff] }
 0x202   : > { %1843 = vmatmul.mubr.f32.vlgmr.msra.gmra.mrb[40].mxu1 %v856_v23 }
 0x203   : > { %1847 = vmatprep.mubr.f32.mxu1 %v5418_v42  ;;  %v874_v42 = vld [vmem:[#allocation2 + $0x167] sm:$0xff] }
 0x206   : > { %1848 = vmatmul.mubr.f32.gmra.mrb[42].mxu1 %v857_v28  ;;  %v2266_v28 = vld [vmem:[%s5384_s5 + $0x30] sm:$0xff] }
 0x207   : > { %1852 = vmatprep.mubr.f32.mxu1 %v890_v38  ;;  %v2267_v38 = vld [vmem:[%s5384_s5 + $0x38] sm:$0xff] }
 0x20a   : > { %1853 = vmatmul.mubr.f32.gmra.mrb[44].mxu1 %v858_v17  ;;  %v3349_v17 = vpack.c.bf16 %v2267_v38, %v2266_v28 }
 0x20b   : > { %1857 = vmatprep.mubr.f32.mxu1 %v891_v15 }
 0x20e   : > { %1858 = vmatmul.mubr.f32.gmra.mrb[46].mxu1 %v859_v35  ;;  %v875_v35 = vld [vmem:[#allocation2 + $0x16f] sm:$0xff] }
 0x20f   : > { %1862 = vmatprep.mubr.f32.mxu1 %v892_v24 }
 0x212   : > { %1863 = vmatmul.mubr.f32.gmra.mrb[48].mxu1 %v860_v7  ;;  %v2268_v7 = vld [vmem:[%s5384_s5 + $0x40] sm:$0xff] }
 0x213   : > { %1867 = vmatprep.mubr.f32.mxu1 %v893_v40  ;;  %v2269_v40 = vld [vmem:[%s5384_s5 + $0x48] sm:$0xff] }
 0x214   : > { %v4947_v14 = vpop.f32.mrb[56].mxu0 }
 0x215   : > { %v1231_v32 = vpop.f32.mrb[57].mxu0 }
 0x216   : > { %1868 = vmatmul.mubr.f32.gmra.mrb[50].mxu1 %v861_v2  ;;  %v2270_v32 = vld [vmem:[%s5384_s5 + $0x50] sm:$0xff]  ;;  %v3353_v2 = vpack.c.bf16 %v2269_v40, %v2268_v7 }
 0x217   : > { %1872 = vmatprep.mubr.f32.mxu1 %v894_v43  ;;  %v2271_v43 = vld [vmem:[%s5384_s5 + $0x58] sm:$0xff]  ;;  %v885_v40 = vld [vmem:[#allocation2 + $0x20f] sm:$0xff] }
 0x218   : > { %v4949_v6 = vpop.f32.mrb[58].mxu0 }
 0x219   : > { %v1236_v26 = vpop.f32.mrb[59].mxu0 }
 0x21a   : > { %1873 = vmatmul.mubr.f32.gmra.mrb[52].mxu1 %v862_v12  ;;  %v3357_v26 = vpack.c.bf16 %v2271_v43, %v2270_v32  ;;  %v3636_v32 = vld [vmem:[#allocation2 + $0x8] sm:$0xff] }
 0x21b   : > { %1877 = vmatprep.mubr.f32.mxu1 %v4801_v51 }
 0x21c   : > { %v4952_v47 = vpop.f32.mrb[60].mxu0 }
 0x21d   : > { %v1241_v20 = vpop.f32.mrb[61].mxu0 }
 0x21e   : > { %1878 = vmatmul.mubr.f32.gmra.mrb[54].mxu1 %v863_v57  ;;  %v876_v57 = vld [vmem:[#allocation2 + $0x187] sm:$0xff] }
 0x21f   : > { %1882 = vmatprep.mubr.f32.mxu1 %v896_v62 }
 0x220   : > { %v4954_v41 = vpop.f32.mrb[62].mxu0 }
 0x221   : > { %v1246_v61 = vpop.f32.mrb[63].mxu0 }
 0x222   : > { %1883 = vmatmul.mubr.f32.gmra.mrb[56].mxu1 %v864_v46  ;;  %v877_v46 = vld [vmem:[#allocation2 + $0x18f] sm:$0xff] }
 0x223   : > { %1887 = vmatprep.mubr.f32.mxu1 %v4831_v27 }
 0x224   : > { %v4957_v18 = vpop.f32.mrb[64].mxu0 }
 0x225   : > { %v1251_v37 = vpop.f32.mrb[65].mxu0 }
 0x226   : > { %1888 = vmatmul.mubr.f32.gmra.mrb[58].mxu1 %v865_v58  ;;  %v910_v37 = vld [vmem:[#allocation2 + $0x1a8] sm:$0xff] }
 0x227   : > { %1892 = vmatprep.mubr.f32.mxu1 %v4844_v53 }
 0x228   : > { %v4960_v51 = vpop.f32.mrb[66].mxu0 }
 0x229   : > { %v1256_v8 = vpop.f32.mrb[67].mxu0 }
 0x22a   : > { %1893 = vmatmul.mubr.f32.gmra.mrb[60].mxu1 %v866_v3  ;;  %v878_v3 = vld [vmem:[#allocation2 + $0x1a7] sm:$0xff] }
 0x22b   : > { %1897 = vmatprep.mubr.f32.mxu1 %v4857_v59 }
 0x22c   : > { %v4963_v21 = vpop.f32.mrb[68].mxu0 }
 0x22d   : > { %v1261_v31 = vpop.f32.mrb[69].mxu0 }
 0x22e   : > { %1898 = vmatmul.mubr.f32.gmra.mrb[62].mxu1 %v867_v4  ;;  %v911_v31 = vld [vmem:[#allocation2 + $0x1b0] sm:$0xff]  ;;  %v2272_v4 = vld [vmem:[%s5384_s5 + $0x60] sm:$0xff] }
 0x22f   : > { %1902 = vmatprep.mubr.f32.mxu1 %v4870_v1 }
 0x230   : > { %v4966_v27 = vpop.f32.mrb[70].mxu0 }
 0x231   : > { %v1266_v56 = vpop.f32.mrb[71].mxu0 }
 0x232   : > { %1903 = vmatmul.mubr.f32.gmra.mrb[0].mxu1 %v868_v9 }
 0x233   : > { %1907 = vmatprep.mubr.f32.mxu1 %v4877_v63  ;;  %v2260_v63 = vld [vmem:[%s5384_s5] sm:$0xff] }
 0x234   : > { %v4969_v53 = vpop.f32.mrb[72].mxu0 }
 0x235   : > { %v1271_v22 = vpop.f32.mrb[73].mxu0 }
 0x236   : > { %1908 = vmatmul.mubr.f32.gmra.mrb[2].mxu1 %v869_v36  ;;  %v879_v36 = vld [vmem:[#allocation2 + $0x1af] sm:$0xff] }
 0x237   : > { %1912 = vmatprep.mubr.f32.mxu1 %v4882_v13  ;;  %v3337_v13 = vpack.c.bf16 %v2261_v0, %v2260_v63 }
 0x238   : > { %v4972_v59 = vpop.f32.mrb[74].mxu0 }
 0x239   : > { %v1276_v11 = vpop.f32.mrb[75].mxu0  ;;  %3338 = vmatprep.subr.bf16.mxu0 %v3337_v13 }
 0x23a   : > { %1913 = vmatmul.mubr.f32.gmra.mrb[4].mxu1 %v870_v10  ;;  %3340 = vmatpush3.bf16.msra.mxu0 %v3337_v13  ;;  %v912_v11 = vld [vmem:[#allocation2 + $0x1c8] sm:$0xff]  ;;  %v2274_v10 = vld [vmem:[%s5384_s5 + $0x70] sm:$0xff] }
 0x23b   : > { %1917 = vmatprep.mubr.f32.mxu1 %v4888_v5  ;;  %3342 = vmatprep.subr.bf16.mxu0 %v3341_v50  ;;  %v880_v13 = vld [vmem:[#allocation2 + $0x1c7] sm:$0xff] }
 0x23c   : > { %v4975_v1 = vpop.f32.mrb[76].mxu0 }
 0x23d   : > { %v1281_v33 = vpop.f32.mrb[77].mxu0 }
 0x23e   : > { %1918 = vmatmul.mubr.f32.gmra.mrb[6].mxu1 %v871_v48  ;;  %3344 = vmatpush3.bf16.msra.mxu0 %v3341_v50  ;;  %v2275_v33 = vld [vmem:[%s5384_s5 + $0x78] sm:$0xff]  ;;  %v914_v50 = vld [vmem:[#allocation2 + $0x1e8] sm:$0xff] }
 0x23f   : > { %1922 = vmatprep.mubr.f32.mxu1 %v4894_v54  ;;  %3346 = vmatprep.subr.bf16.mxu0 %v3345_v44  ;;  %v3365_v48 = vpack.c.bf16 %v2275_v33, %v2274_v10 }
 0x240   : > { %v4984_v25 = vpop.f32.mrb[78].mxu0 }
 0x241   : > { %v1286_v5 = vpop.f32.mrb[79].mxu0 }
 0x242   : > { %1923 = vmatmul.mubr.f32.gmra.mrb[8].mxu1 %v872_v52  ;;  %3348 = vmatpush3.bf16.msra.mxu0 %v3345_v44  ;;  %v913_v5 = vld [vmem:[#allocation2 + $0x1d0] sm:$0xff] }
 0x243   : > { %1927 = vmatprep.mubr.f32.mxu1 %v4900_v55  ;;  %3350 = vmatprep.subr.bf16.mxu0 %v3349_v17 }
 0x244   : > { %v4993_v30 = vpop.f32.mrb[80].mxu0 }
 0x245   : > { %v1291_v54 = vpop.f32.mrb[81].mxu0 }
 0x246   : > { %1928 = vmatmul.mubr.f32.gmra.mrb[10].mxu1 %v873_v60  ;;  %3352 = vmatpush3.bf16.msra.mxu0 %v3349_v17  ;;  %v884_v17 = vld [vmem:[#allocation2 + $0x207] sm:$0xff] }
 0x247   : > { %1932 = vmatprep.mubr.f32.mxu1 %v906_v19  ;;  %3354 = vmatprep.subr.bf16.mxu0 %v3353_v2 }
 0x248   : > { %v5001_v23 = vpop.f32.mrb[82].mxu0 }
 0x249   : > { %5419 = vst [vmem:[#allocation7_spill] sm:$0xff] %v5001_v23  ;;  %v1296_v55 = vpop.f32.mrb[83].mxu0 }
 0x24a   : > { %1933 = vmatmul.mubr.f32.gmra.mrb[12].mxu1 %v874_v42  ;;  %3356 = vmatpush3.bf16.msra.mxu0 %v3353_v2  ;;  %v883_v55 = vld [vmem:[#allocation2 + $0x1ef] sm:$0xff] }
 0x24b   : > { %1937 = vmatprep.mubr.f32.mxu1 %v4907_v29  ;;  %v908_v29 = vld [vmem:[#allocation2 + $0x188] sm:$0xff]  ;;  %3358 = vmatprep.subr.bf16.mxu0 %v3357_v26 }
 0x24c   : > { %v5010_v15 = vpop.f32.mrb[84].mxu0  ;;  %v916_v42 = vld [vmem:[#allocation2 + $0x208] sm:$0xff] }
 0x24d   : > { %5420 = vst [vmem:[#allocation6_spill] sm:$0xff] %v5010_v15  ;;  %v1301_v24 = vpop.f32.mrb[85].mxu0 }
 0x24e   : > { %1938 = vmatmul.mubr.f32.gmra.mrb[14].mxu1 %v875_v35  ;;  %3360 = vmatpush3.bf16.msra.mxu0 %v3357_v26  ;;  %v917_v35 = vld [vmem:[#allocation2 + $0x210] sm:$0xff] }
 0x24f   : > { %1942 = vmatprep.mubr.f32.mxu1 %v908_v29  ;;  %v886_v29 = vld [vmem:[#allocation2 + $0x227] sm:$0xff]  ;;  %v887_v26 = vld [vmem:[#allocation2 + $0x22f] sm:$0xff] }
 0x250   : > { %v5024_v12 = vpop.f32.mrb[86].mxu0 }
 0x251   : > { %5421 = vst [vmem:[#allocation8_spill] sm:$0xff] %v5024_v12  ;;  %v1306_v20 = vpop.f32.mrb[87].mxu0 }
 0x252   : > { %1943 = vmatmul.mubr.f32.gmra.mrb[16].mxu1 %v876_v57 }
 0x253   : > { %1947 = vmatprep.mubr.f32.mxu1 %v4913_v16  ;;  %v2273_v16 = vld [vmem:[%s5384_s5 + $0x68] sm:$0xff] }
 0x254   : > { %v5027_v62 = vpop.f32.mrb[88].mxu0  ;;  %v3361_v56 = vpack.c.bf16 %v2273_v16, %v2272_v4 }
 0x255   : > { %5422 = vst [vmem:[#allocation9_spill] sm:$0xff] %v5027_v62  ;;  %v1311_v61 = vpop.f32.mrb[89].mxu0 }
 0x256   : > { %1948 = vmatmul.mubr.f32.gmra.mrb[18].mxu1 %v877_v46  ;;  %3362 = vmatprep.subr.bf16.mxu0 %v3361_v56 }
 0x257   : > { %1952 = vmatprep.mubr.f32.mxu1 %v910_v37  ;;  %3364 = vmatpush3.bf16.msra.mxu0 %v3361_v56 }
 0x258   : > { %v5029_v58 = vpop.f32.mrb[90].mxu0  ;;  %3366 = vmatprep.subr.bf16.mxu0 %v3365_v48 }
 0x259   : > { %5423 = vst [vmem:[#allocation10_spill] sm:$0xff] %v5029_v58  ;;  %v1316_v8 = vpop.f32.mrb[91].mxu0 }
 0x25a   : > { %1953 = vmatmul.mubr.f32.gmra.mrb[20].mxu1 %v878_v3 }
 0x25b   : > { %1957 = vmatprep.mubr.f32.mxu1 %v911_v31  ;;  %3368 = vmatpush3.bf16.msra.mxu0 %v3365_v48 }
 0x25c   : > { %v5037_v9 = vpop.f32.mrb[92].mxu0 }
 0x25d   : > { %5424 = vst [vmem:[#allocation11_spill] sm:$0xff] %v5037_v9  ;;  %v1321_v22 = vpop.f32.mrb[93].mxu0 }
 0x25e   : > { %1958 = vmatmul.mubr.f32.gmra.mrb[22].mxu1 %v879_v36 }
 0x25f   : > { %1962 = vmatprep.mubr.f32.mxu1 %v912_v11 }
 0x260   : > { %v5045_v63 = vpop.f32.mrb[94].mxu0 }
 0x261   : > { %5425 = vst [vmem:[#allocation12_spill] sm:$0xff] %v5045_v63  ;;  %v1326_v0 = vpop.f32.mrb[95].mxu0  ;;  %v5128_v63 = vld [vmem:[%s5383_s4] ss:$0 sm:$0xff] }
 0x262   : > { %1963 = vmatmul.mubr.f32.gmra.mrb[24].mxu1 %v880_v13 }
 0x263   : > { %1967 = vmatprep.mubr.f32.mxu1 %v913_v5 }
 0x264   : > { %v5047_v52 = vpop.f32.mrb[32].mxu0 }
 0x265   : > { %v1396_v49 = vpop.f32.mrb[33].mxu0  ;;  %v3401_v9 = vadd.f32 %v5128_v63, %v5047_v52 }
 0x266   : > { %1968 = vmatmul.mubr.f32.gmra.mrb[26].mxu1 %v881_v39 }
 0x267   : > { %1972 = vmatprep.mubr.f32.mxu1 %v914_v50 }
 0x268   : > { %v5049_v54 = vpop.f32.mrb[34].mxu0 }
 0x269   : > { %v1401_v60 = vpop.f32.mrb[35].mxu0 }
 0x26a   : > { %1973 = vmatmul.mubr.f32.gmra.mrb[28].mxu1 %v882_v34 }
 0x26b   : > { %1977 = vmatprep.mubr.f32.mxu1 %v915_v45 }
 0x26c   : > { %v5051_v19 = vpop.f32.mrb[36].mxu0 }
 0x26d   : > { %v1406_v44 = vpop.f32.mrb[37].mxu0 }
 0x26e   : > { %1978 = vmatmul.mubr.f32.gmra.mrb[30].mxu1 %v883_v55 }
 0x26f   : > { %1982 = vmatprep.mubr.f32.mxu1 %v916_v42 }
 0x270   : > { %v5053_v28 = vpop.f32.mrb[38].mxu0 }
 0x271   : > { %v1411_v38 = vpop.f32.mrb[39].mxu0 }
 0x272   : > { %1983 = vmatmul.mubr.f32.gmra.mrb[32].mxu1 %v884_v17 }
 0x273   : > { %1987 = vmatprep.mubr.f32.mxu1 %v917_v35 }
 0x274   : > { %v5055_v24 = vpop.f32.mrb[40].mxu0 }
 0x275   : > { %v1416_v7 = vpop.f32.mrb[41].mxu0 }
 0x276   : > { %1988 = vmatmul.mubr.f32.gmra.mrb[34].mxu1 %v885_v40 }
 0x277   : > { %1992 = vmatprep.mubr.f32.mxu1 %v3636_v32 }
 0x278   : > { %v5057_v2 = vpop.f32.mrb[42].mxu0 }
 0x279   : > { %v1421_v43 = vpop.f32.mrb[43].mxu0 }
 0x27a   : > { %1993 = vmatmul.mubr.f32.gmra.mrb[36].mxu1 %v886_v29 }
 0x27b   : > { %1997 = vmatprep.mubr.f32.mxu1 %v3636_v32 }
 0x27c   : > { %v5059_v20 = vpop.f32.mrb[44].mxu0 }
 0x27d   : > { %v1426_v57 = vpop.f32.mrb[45].mxu0 }
 0x27e   : > { %1998 = vmatmul.mubr.f32.gmra.mrb[38].mxu1 %v887_v26 }
 0x280   : > { %v5061_v61 = vpop.f32.mrb[46].mxu0 }
 0x281   : > { %v1431_v46 = vpop.f32.mrb[47].mxu0 }
 0x284   : > { %v5063_v37 = vpop.f32.mrb[48].mxu0 }
 0x285   : > { %v1436_v8 = vpop.f32.mrb[49].mxu0 }
 0x288   : > { %v5065_v3 = vpop.f32.mrb[50].mxu0 }
 0x289   : > { %v1441_v31 = vpop.f32.mrb[51].mxu0 }
 0x28c   : > { %v5067_v4 = vpop.f32.mrb[52].mxu0 }
 0x28d   : > { %v1446_v16 = vpop.f32.mrb[53].mxu0 }
 0x290   : > { %v5069_v56 = vpop.f32.mrb[54].mxu0 }
 0x291   : > { %v1451_v22 = vpop.f32.mrb[55].mxu0 }
 0x294   : > { %v2955_v36 = vpop.f32.mrb[96].mxu0 }
 0x295   : > { %v2069_v11 = vpop.f32.mrb[97].mxu0 }
 0x298   : > { %v2958_v10 = vpop.f32.mrb[98].mxu0 }
 0x299   : > { %v2079_v33 = vpop.f32.mrb[99].mxu0 }
 0x29c   : > { %v5071_v48 = vpop.f32.mrb[100].mxu0 }
 0x29d   : > { %v2089_v0 = vpop.f32.mrb[101].mxu0 }
 0x2a0   : > { %v5073_v13 = vpop.f32.mrb[102].mxu0 }
 0x2a1   : > { %v5075_v5 = vpop.f32.mrb[103].mxu0 }
 0x2a4   : > { %v5077_v49 = vpop.f32.mrb[104].mxu0 }
 0x2a5   : > { %v5079_v39 = vpop.f32.mrb[105].mxu0 }
 0x2a8   : > { %v5081_v50 = vpop.f32.mrb[106].mxu0 }
 0x2a9   : > { %v5083_v60 = vpop.f32.mrb[107].mxu0 }
 0x2ac   : > { %v5085_v34 = vpop.f32.mrb[108].mxu0 }
 0x2ad   : > { %v5087_v45 = vpop.f32.mrb[109].mxu0 }
 0x2b0   : > { %v5089_v44 = vpop.f32.mrb[110].mxu0 }
 0x2b1   : > { %v5091_v55 = vpop.f32.mrb[111].mxu0 }
 0x2b4   : > { %v5093_v42 = vpop.f32.mrb[112].mxu0 }
 0x2b5   : > { %v5095_v38 = vpop.f32.mrb[113].mxu0 }
 0x2b8   : > { %v5097_v17 = vpop.f32.mrb[114].mxu0 }
 0x2b9   : > { %v5099_v35 = vpop.f32.mrb[115].mxu0 }
 0x2bc   : > { %v5101_v7 = vpop.f32.mrb[116].mxu0 }
 0x2bd   : > { %v5103_v40 = vpop.f32.mrb[117].mxu0 }
 0x2c0   : > { %v5105_v32 = vpop.f32.mrb[118].mxu0 }
 0x2c1   : > { %5426 = vst [vmem:[#allocation13_spill] sm:$0xff] %v5105_v32  ;;  %v5107_v29 = vpop.f32.mrb[119].mxu0 }
 0x2c4   : > { %v5109_v43 = vpop.f32.mrb[120].mxu0 }
 0x2c5   : > { %5427 = vst [vmem:[#allocation14_spill] sm:$0xff] %v5109_v43  ;;  %v5111_v26 = vpop.f32.mrb[121].mxu0 }
 0x2c6   : > { %5428 = vst [vmem:[#allocation15_spill] sm:$0xff] %v5111_v26 }
 0x2c8   : > { %v5113_v57 = vpop.f32.mrb[122].mxu0 }
 0x2c9   : > { %5429 = vst [vmem:[#allocation16_spill] sm:$0xff] %v5113_v57  ;;  %v5115_v46 = vpop.f32.mrb[123].mxu0 }
 0x2ca   : > { %5430 = vst [vmem:[#allocation17_spill] sm:$0xff] %v5115_v46 }
 0x2cc   : > { %v5117_v8 = vpop.f32.mrb[124].mxu0 }
 0x2cd   : > { %5431 = vst [vmem:[#allocation18_spill] sm:$0xff] %v5117_v8  ;;  %v5119_v31 = vpop.f32.mrb[125].mxu0  ;;  %v3403_v8 = vadd.f32 %v5128_v63, %v5049_v54 }
 0x2ce   : > { %5432 = vst [vmem:[#allocation19_spill] sm:$0xff] %v5119_v31 }
 0x2d0   : > { %v5121_v16 = vpop.f32.mrb[126].mxu0 }
 0x2d1   : > { %5433 = vst [vmem:[#allocation20_spill] sm:$0xff] %v5121_v16  ;;  %v5123_v22 = vpop.f32.mrb[127].mxu0 }
 0x2d2   : > { %5434 = vst [vmem:[#allocation21_spill] sm:$0xff] %v5123_v22  ;;  %v3405_v22 = vadd.f32 %v5128_v63, %v5051_v19 }
 0x2d5   : > { %v1844_v58 = vpop.f32.mrb[40].mxu1 }
 0x2d6   : > { %v3402_v57 = vadd.f32 %v3401_v9, %v1844_v58  ;;  %v1846_v62 = vpop.f32.mrb[41].mxu1 }
 0x2d7   : > { %v3407_v62 = vadd.f32 %v5128_v63, %v5053_v28 }
 0x2d8   : > { %v2070_v46 = vadd.f32 %v3402_v57, %v2069_v11 }
 0x2d9   : > { %v1849_v31 = vpop.f32.mrb[42].mxu1 }
 0x2da   : > { %v2228_v12 = vmax.f32 %v2070_v46, 0.0  ;;  %v3404_v16 = vadd.f32 %v3403_v8, %v1849_v31  ;;  %v1851_v43 = vpop.f32.mrb[43].mxu1  ;;  %v3413_v31 = vadd.f32 %v5128_v63, %v5059_v20  ;;  %v3417_v20 = vadd.f32 %v5128_v63, %v5063_v37 }
 0x2db   : > { %v3409_v43 = vadd.f32 %v5128_v63, %v5055_v24  ;;  %v3421_v37 = vadd.f32 %v5128_v63, %v5067_v4  ;;  %v1230_v4 = vadd.f32 %v5128_v63, %v4947_v14  ;;  %v1240_v14 = vadd.f32 %v5128_v63, %v4952_v47 }
 0x2dc   : > { %v2075_v15 = vadd.f32 %v3404_v16, %v2955_v36  ;;  %3033 = vmatprep.mubr.f32.mxu0 %v2228_v12  ;;  %v1250_v47 = vadd.f32 %v5128_v63, %v4957_v18  ;;  %v1260_v18 = vadd.f32 %v5128_v63, %v4963_v21  ;;  %v1270_v21 = vadd.f32 %v5128_v63, %v4969_v53 }
 0x2dd   : > { %v1854_v26 = vpop.f32.mrb[44].mxu1  ;;  %v1280_v53 = vadd.f32 %v5128_v63, %v4975_v1  ;;  %v1290_v1 = vadd.f32 %v5128_v63, %v4993_v30 }
 0x2de   : > { %v2229_v23 = vmax.f32 %v2075_v15, 0.0  ;;  %v3406_v32 = vadd.f32 %v3405_v22, %v1854_v26  ;;  %v1856_v52 = vpop.f32.mrb[45].mxu1  ;;  %v3411_v26 = vadd.f32 %v5128_v63, %v5057_v2 }
 0x2e0   : > { %v2080_v58 = vadd.f32 %v3406_v32, %v2079_v33  ;;  %3034 = vmatmul.mubr.f32.vlgmr.msra.gmra.mrb[128].mxu0 %v2229_v23 }
 0x2e1   : > { %v1859_v9 = vpop.f32.mrb[46].mxu1 }
 0x2e2   : > { %v2230_v54 = vmax.f32 %v2080_v58, 0.0  ;;  %v3408_v11 = vadd.f32 %v3407_v62, %v1859_v9  ;;  %v1861_v57 = vpop.f32.mrb[47].mxu1  ;;  %v3415_v62 = vadd.f32 %v5128_v63, %v5061_v61  ;;  %v3419_v61 = vadd.f32 %v5128_v63, %v5065_v3 }
 0x2e3   : > { %v3423_v3 = vadd.f32 %v5128_v63, %v5069_v56  ;;  %v1235_v56 = vadd.f32 %v5128_v63, %v4949_v6  ;;  %v1245_v6 = vadd.f32 %v5128_v63, %v4954_v41  ;;  %v1255_v41 = vadd.f32 %v5128_v63, %v4960_v51 }
 0x2e4   : > { %v2085_v46 = vadd.f32 %v3408_v11, %v2958_v10  ;;  %3036 = vmatprep.mubr.f32.mxu0 %v2230_v54  ;;  %v1265_v51 = vadd.f32 %v5128_v63, %v4966_v27  ;;  %v1275_v27 = vadd.f32 %v5128_v63, %v4972_v59  ;;  %v1285_v59 = vadd.f32 %v5128_v63, %v4984_v25 }
 0x2e5   : > { %v1864_v19 = vpop.f32.mrb[48].mxu1 }
 0x2e6   : > { %v2231_v12 = vmax.f32 %v2085_v46, 0.0  ;;  %v3410_v36 = vadd.f32 %v3409_v43, %v1864_v19  ;;  %v1866_v15 = vpop.f32.mrb[49].mxu1 }
 0x2e8   : > { %v2090_v8 = vadd.f32 %v3410_v36, %v2089_v0  ;;  %3037 = vmatmul.mubr.f32.gmra.mrb[130].mxu0 %v2231_v12 }
 0x2e9   : > { %v1869_v28 = vpop.f32.mrb[50].mxu1 }
 0x2ea   : > { %v2232_v23 = vmax.f32 %v2090_v8, 0.0  ;;  %v3412_v33 = vadd.f32 %v3411_v26, %v1869_v28  ;;  %v1871_v32 = vpop.f32.mrb[51].mxu1 }
 0x2ec   : > { %v2095_v24 = vadd.f32 %v3412_v33, %v5071_v48  ;;  %3039 = vmatprep.mubr.f32.mxu0 %v2232_v23 }
 0x2ed   : > { %v1874_v10 = vpop.f32.mrb[52].mxu1 }
 0x2ee   : > { %v2233_v16 = vmax.f32 %v2095_v24, 0.0  ;;  %v3414_v22 = vadd.f32 %v3413_v31, %v1874_v10  ;;  %v1876_v52 = vpop.f32.mrb[53].mxu1 }
 0x2f0   : > { %v2100_v2 = vadd.f32 %v3414_v22, %v5075_v5  ;;  %3040 = vmatmul.mubr.f32.gmra.mrb[132].mxu0 %v2233_v16 }
 0x2f1   : > { %v1879_v0 = vpop.f32.mrb[54].mxu1 }
 0x2f2   : > { %v2234_v58 = vmax.f32 %v2100_v2, 0.0  ;;  %v3416_v9 = vadd.f32 %v3415_v62, %v1879_v0  ;;  %v1881_v54 = vpop.f32.mrb[55].mxu1 }
 0x2f4   : > { %v2105_v48 = vadd.f32 %v3416_v9, %v5073_v13  ;;  %3042 = vmatprep.mubr.f32.mxu0 %v2234_v58 }
 0x2f5   : > { %v1884_v11 = vpop.f32.mrb[56].mxu1 }
 0x2f6   : > { %v2235_v57 = vmax.f32 %v2105_v48, 0.0  ;;  %v3418_v43 = vadd.f32 %v3417_v20, %v1884_v11  ;;  %v1886_v46 = vpop.f32.mrb[57].mxu1 }
 0x2f8   : > { %v2110_v5 = vadd.f32 %v3418_v43, %v5079_v39  ;;  %3043 = vmatmul.mubr.f32.gmra.mrb[134].mxu0 %v2235_v57 }
 0x2f9   : > { %v1889_v19 = vpop.f32.mrb[58].mxu1 }
 0x2fa   : > { %v2236_v12 = vmax.f32 %v2110_v5, 0.0  ;;  %v3420_v36 = vadd.f32 %v3419_v61, %v1889_v19  ;;  %v1891_v15 = vpop.f32.mrb[59].mxu1 }
 0x2fc   : > { %v2115_v13 = vadd.f32 %v3420_v36, %v5077_v49  ;;  %3045 = vmatprep.mubr.f32.mxu0 %v2236_v12 }
 0x2fd   : > { %v1894_v26 = vpop.f32.mrb[60].mxu1 }
 0x2fe   : > { %v2237_v8 = vmax.f32 %v2115_v13, 0.0  ;;  %v3422_v28 = vadd.f32 %v3421_v37, %v1894_v26  ;;  %v1896_v23 = vpop.f32.mrb[61].mxu1 }
 0x300   : > { %v2120_v39 = vadd.f32 %v3422_v28, %v5083_v60  ;;  %3046 = vmatmul.mubr.f32.gmra.mrb[136].mxu0 %v2237_v8 }
 0x301   : > { %v1899_v33 = vpop.f32.mrb[62].mxu1 }
 0x302   : > { %v2238_v32 = vmax.f32 %v2120_v39, 0.0  ;;  %v3424_v31 = vadd.f32 %v3423_v3, %v1899_v33  ;;  %v1901_v24 = vpop.f32.mrb[63].mxu1 }
 0x304   : > { %v2125_v49 = vadd.f32 %v3424_v31, %v5081_v50  ;;  %3048 = vmatprep.mubr.f32.mxu0 %v2238_v32 }
 0x305   : > { %v1904_v10 = vpop.f32.mrb[0].mxu1 }
 0x306   : > { %v2239_v16 = vmax.f32 %v2125_v49, 0.0  ;;  %v3426_v22 = vadd.f32 %v1904_v10, %v1230_v4  ;;  %v1906_v52 = vpop.f32.mrb[1].mxu1 }
 0x308   : > { %v2130_v60 = vadd.f32 %v3426_v22, %v5087_v45  ;;  %3049 = vmatmul.mubr.f32.gmra.mrb[138].mxu0 %v2239_v16 }
 0x309   : > { %v1909_v62 = vpop.f32.mrb[2].mxu1 }
 0x30a   : > { %v2240_v2 = vmax.f32 %v2130_v60, 0.0  ;;  %v3428_v0 = vadd.f32 %v1909_v62, %v1235_v56  ;;  %v1911_v58 = vpop.f32.mrb[3].mxu1 }
 0x30c   : > { %v2135_v50 = vadd.f32 %v3428_v0, %v5085_v34  ;;  %3051 = vmatprep.mubr.f32.mxu0 %v2240_v2 }
 0x30d   : > { %v1914_v9 = vpop.f32.mrb[4].mxu1 }
 0x30e   : > { %v2241_v54 = vmax.f32 %v2135_v50, 0.0  ;;  %v3430_v20 = vadd.f32 %v1914_v9, %v1240_v14  ;;  %v1916_v48 = vpop.f32.mrb[5].mxu1  ;;  %v5435_v9 = vld [vmem:[#allocation13_spill] sm:$0xff] }
 0x310   : > { %v2140_v45 = vadd.f32 %v3430_v20, %v5091_v55  ;;  %3052 = vmatmul.mubr.f32.gmra.mrb[140].mxu0 %v2241_v54 }
 0x311   : > { %v1919_v11 = vpop.f32.mrb[6].mxu1 }
 0x312   : > { %v2242_v57 = vmax.f32 %v2140_v45, 0.0  ;;  %v3432_v43 = vadd.f32 %v1919_v11, %v1245_v6  ;;  %v1921_v46 = vpop.f32.mrb[7].mxu1  ;;  %v5436_v45 = vld [vmem:[#allocation7_spill] sm:$0xff] }
 0x313   : > { %v1295_v25 = vadd.f32 %v5128_v63, %v5436_v45  ;;  %v5437_v11 = vld [vmem:[#allocation15_spill] sm:$0xff] }
 0x314   : > { %v2145_v34 = vadd.f32 %v3432_v43, %v5089_v44  ;;  %3054 = vmatprep.mubr.f32.mxu0 %v2242_v57  ;;  %v3637_v45 = vld [vmem:[%s3850_s15 + $0x8] sm:$0xff] }
 0x315   : > { %v1924_v61 = vpop.f32.mrb[8].mxu1 }
 0x316   : > { %v2243_v5 = vmax.f32 %v2145_v34, 0.0  ;;  %v3434_v19 = vadd.f32 %v1924_v61, %v1250_v47  ;;  %v1926_v12 = vpop.f32.mrb[9].mxu1  ;;  %v5438_v34 = vld [vmem:[#allocation6_spill] sm:$0xff] }
 0x317   : > { %v1300_v30 = vadd.f32 %v5128_v63, %v5438_v34  ;;  %v5439_v61 = vld [vmem:[#allocation14_spill] sm:$0xff] }
 0x318   : > { %v2150_v55 = vadd.f32 %v3434_v19, %v5095_v38  ;;  %3055 = vmatmul.mubr.f32.gmra.mrb[142].mxu0 %v2243_v5 }
 0x319   : > { %v1929_v36 = vpop.f32.mrb[10].mxu1 }
 0x31a   : > { %v2244_v15 = vmax.f32 %v2150_v55, 0.0  ;;  %v3436_v37 = vadd.f32 %v1929_v36, %v1255_v41  ;;  %v1931_v13 = vpop.f32.mrb[11].mxu1  ;;  %v5440_v36 = vld [vmem:[#allocation8_spill] sm:$0xff] }
 0x31c   : > { %v2155_v44 = vadd.f32 %v3436_v37, %v5093_v42  ;;  %3057 = vmatprep.mubr.f32.mxu0 %v2244_v15  ;;  %v1305_v15 = vadd.f32 %v5128_v63, %v5440_v36  ;;  %v5441_v37 = vld [vmem:[#allocation17_spill] sm:$0xff] }
 0x31d   : > { %v1934_v26 = vpop.f32.mrb[12].mxu1 }
 0x31e   : > { %v2245_v8 = vmax.f32 %v2155_v44, 0.0  ;;  %v3438_v28 = vadd.f32 %v1934_v26, %v1260_v18  ;;  %v1936_v23 = vpop.f32.mrb[13].mxu1 }
 0x320   : > { %v2160_v38 = vadd.f32 %v3438_v28, %v5099_v35  ;;  %3058 = vmatmul.mubr.f32.gmra.mrb[144].mxu0 %v2245_v8  ;;  %v5442_v28 = vld [vmem:[#allocation9_spill] sm:$0xff] }
 0x321   : > { %v1939_v3 = vpop.f32.mrb[14].mxu1  ;;  %v1310_v23 = vadd.f32 %v5128_v63, %v5442_v28 }
 0x322   : > { %v2246_v39 = vmax.f32 %v2160_v38, 0.0  ;;  %v3440_v33 = vadd.f32 %v1939_v3, %v1265_v51  ;;  %v1941_v32 = vpop.f32.mrb[15].mxu1  ;;  %v5443_v51 = vld [vmem:[#allocation16_spill] sm:$0xff] }
 0x324   : > { %v2165_v42 = vadd.f32 %v3440_v33, %v5097_v17  ;;  %3060 = vmatprep.mubr.f32.mxu0 %v2246_v39 }
 0x325   : > { %v1944_v31 = vpop.f32.mrb[16].mxu1 }
 0x326   : > { %v2247_v24 = vmax.f32 %v2165_v42, 0.0  ;;  %v3442_v4 = vadd.f32 %v1944_v31, %v1270_v21  ;;  %v1946_v49 = vpop.f32.mrb[17].mxu1  ;;  %v5444_v21 = vld [vmem:[#allocation10_spill] sm:$0xff]  ;;  %v5445_v31 = vld [vmem:[#allocation19_spill] sm:$0xff] }
 0x327   : > { %v1315_v42 = vadd.f32 %v5128_v63, %v5444_v21  ;;  %v3644_v21 = vld [vmem:[%s3850_s15 + $0x30] sm:$0xff] }
 0x328   : > { %v2170_v35 = vadd.f32 %v3442_v4, %v5103_v40  ;;  %3061 = vmatmul.mubr.f32.gmra.mrb[146].mxu0 %v2247_v24 }
 0x329   : > { %v1949_v10 = vpop.f32.mrb[18].mxu1 }
 0x32a   : > { %v2248_v16 = vmax.f32 %v2170_v35, 0.0  ;;  %v3444_v22 = vadd.f32 %v1949_v10, %v1275_v27  ;;  %v1951_v52 = vpop.f32.mrb[19].mxu1  ;;  %v5446_v10 = vld [vmem:[#allocation11_spill] sm:$0xff] }
 0x32c   : > { %v2175_v17 = vadd.f32 %v3444_v22, %v5101_v7  ;;  %3063 = vmatprep.mubr.f32.mxu0 %v2248_v16  ;;  %v1320_v16 = vadd.f32 %v5128_v63, %v5446_v10  ;;  %v5447_v22 = vld [vmem:[#allocation18_spill] sm:$0xff]  ;;  %v3645_v10 = vld [vmem:[%s3850_s15 + $0x48] sm:$0xff] }
 0x32d   : > { %v1954_v56 = vpop.f32.mrb[20].mxu1 }
 0x32e   : > { %v2249_v60 = vmax.f32 %v2175_v17, 0.0  ;;  %v3446_v62 = vadd.f32 %v1954_v56, %v1280_v53  ;;  %v1956_v2 = vpop.f32.mrb[21].mxu1 }
 0x330   : > { %v2180_v40 = vadd.f32 %v3446_v62, %v5107_v29  ;;  %3064 = vmatmul.mubr.f32.gmra.mrb[148].mxu0 %v2249_v60  ;;  %v5448_v62 = vld [vmem:[#allocation12_spill] sm:$0xff] }
 0x331   : > { %v1959_v0 = vpop.f32.mrb[22].mxu1  ;;  %v1325_v2 = vadd.f32 %v5128_v63, %v5448_v62 }
 0x332   : > { %v2250_v58 = vmax.f32 %v2180_v40, 0.0  ;;  %v3448_v14 = vadd.f32 %v1959_v0, %v1285_v59  ;;  %v1961_v50 = vpop.f32.mrb[23].mxu1  ;;  %v5449_v59 = vld [vmem:[#allocation21_spill] sm:$0xff] }
 0x334   : > { %v2185_v7 = vadd.f32 %v3448_v14, %v5435_v9  ;;  %3066 = vmatprep.mubr.f32.mxu0 %v2250_v58 }
 0x335   : > { %v1964_v54 = vpop.f32.mrb[24].mxu1 }
 0x336   : > { %v2251_v20 = vmax.f32 %v2185_v7, 0.0  ;;  %v3450_v48 = vadd.f32 %v1964_v54, %v1290_v1  ;;  %v1966_v6 = vpop.f32.mrb[25].mxu1  ;;  %v5450_v1 = vld [vmem:[#allocation20_spill] sm:$0xff]  ;;  %v5225_v54 = vld [vmem:[%s5385_s6] ss:$0 sm:$0xff] }
 0x338   : > { %v2190_v29 = vadd.f32 %v3450_v48, %v5437_v11  ;;  %3067 = vmatmul.mubr.f32.gmra.mrb[150].mxu0 %v2251_v20  ;;  %v3638_v11 = vld [vmem:[%s3850_s15] sm:$0xff] }
 0x339   : > { %v1969_v57 = vpop.f32.mrb[26].mxu1 }
 0x33a   : > { %v2252_v43 = vmax.f32 %v2190_v29, 0.0  ;;  %v3452_v46 = vadd.f32 %v1969_v57, %v1295_v25  ;;  %v1971_v47 = vpop.f32.mrb[27].mxu1 }
 0x33c   : > { %v2195_v5 = vadd.f32 %v3452_v46, %v5439_v61  ;;  %3069 = vmatprep.mubr.f32.mxu0 %v2252_v43  ;;  %v3639_v61 = vld [vmem:[%s3850_s15 + $0x18] sm:$0xff] }
 0x33d   : > { %v1974_v19 = vpop.f32.mrb[28].mxu1 }
 0x33e   : > { %v2253_v12 = vmax.f32 %v2195_v5, 0.0  ;;  %v3454_v41 = vadd.f32 %v1974_v19, %v1300_v30  ;;  %v1976_v55 = vpop.f32.mrb[29].mxu1  ;;  %v3640_v19 = vld [vmem:[%s3850_s15 + $0x10] sm:$0xff] }
 0x340   : > { %v2200_v13 = vadd.f32 %v3454_v41, %v5441_v37  ;;  %3070 = vmatmul.mubr.f32.gmra.mrb[152].mxu0 %v2253_v12 }
 0x341   : > { %v1979_v18 = vpop.f32.mrb[30].mxu1 }
 0x342   : > { %v2254_v44 = vmax.f32 %v2200_v13, 0.0  ;;  %v3456_v26 = vadd.f32 %v1979_v18, %v1305_v15  ;;  %v1981_v8 = vpop.f32.mrb[31].mxu1  ;;  %v3641_v18 = vld [vmem:[%s3850_s15 + $0x28] sm:$0xff] }
 0x344   : > { %v2205_v38 = vadd.f32 %v3456_v26, %v5443_v51  ;;  %3072 = vmatprep.mubr.f32.mxu0 %v2254_v44  ;;  %v3642_v26 = vld [vmem:[%s3850_s15 + $0x20] sm:$0xff] }
 0x345   : > { %v1984_v3 = vpop.f32.mrb[32].mxu1 }
 0x346   : > { %v2255_v39 = vmax.f32 %v2205_v38, 0.0  ;;  %v3458_v33 = vadd.f32 %v1984_v3, %v1310_v23  ;;  %v1986_v32 = vpop.f32.mrb[33].mxu1 }
 0x348   : > { %v2210_v24 = vadd.f32 %v3458_v33, %v5445_v31  ;;  %3073 = vmatmul.mubr.f32.gmra.mrb[154].mxu0 %v2255_v39  ;;  %v3643_v33 = vld [vmem:[%s3850_s15 + $0x38] sm:$0xff] }
 0x349   : > { %v1989_v4 = vpop.f32.mrb[34].mxu1 }
 0x34a   : > { %v2256_v49 = vmax.f32 %v2210_v24, 0.0  ;;  %v3460_v27 = vadd.f32 %v1989_v4, %v1315_v42  ;;  %v1991_v35 = vpop.f32.mrb[35].mxu1 }
 0x34c   : > { %v2215_v52 = vadd.f32 %v3460_v27, %v5447_v22  ;;  %3075 = vmatprep.mubr.f32.mxu0 %v2256_v49  ;;  %v3646_v22 = vld [vmem:[%s3850_s15 + $0x40] sm:$0xff] }
 0x34d   : > { %v1994_v53 = vpop.f32.mrb[36].mxu1 }
 0x34e   : > { %v2257_v17 = vmax.f32 %v2215_v52, 0.0  ;;  %v3462_v56 = vadd.f32 %v1994_v53, %v1320_v16  ;;  %v1996_v60 = vpop.f32.mrb[37].mxu1 }
 0x350   : > { %v2220_v40 = vadd.f32 %v3462_v56, %v5449_v59  ;;  %3076 = vmatmul.mubr.f32.gmra.mrb[156].mxu0 %v2257_v17  ;;  %v3647_v59 = vld [vmem:[%s3850_s15 + $0x58] sm:$0xff] }
 0x351   : > { %v1999_v0 = vpop.f32.mrb[38].mxu1 }
 0x352   : > { %v2258_v58 = vmax.f32 %v2220_v40, 0.0  ;;  %v3464_v14 = vadd.f32 %v1999_v0, %v1325_v2  ;;  %v2001_v50 = vpop.f32.mrb[39].mxu1  ;;  %v3648_v0 = vld [vmem:[%s3850_s15 + $0x50] sm:$0xff] }
 0x354   : > { %v2225_v9 = vadd.f32 %v3464_v14, %v5450_v1  ;;  %3078 = vmatprep.mubr.f32.mxu0 %v2258_v58 }
 0x356   : > { %v2259_v7 = vmax.f32 %v2225_v9, 0.0 }
 0x358   : > { %3079 = vmatmul.mubr.f32.gmra.mrb[158].mxu0 %v2259_v7 }
 0x3b3   : > { %v3035_v63 = vpop.f32.mrb[128].mxu0 }
 0x3b4   : > { %v2355_v20 = vadd.f32 %v3035_v63, %v5225_v54  ;;  %v2349_v48 = vpop.f32.mrb[129].mxu0 }
 0x3b5   : > { %v2350_v6 = vadd.f32 %v5225_v54, %v2349_v48 }
 0x3b6   : > { %v2509_v25 = vadd.f32 %v3637_v45, %v2355_v20  ;;  %v3649_v20 = vld [vmem:[%s3850_s15 + $0x68] sm:$0xff] }
 0x3b7   : > { %v2508_v29 = vadd.f32 %v3638_v11, %v2350_v6  ;;  %v3650_v6 = vld [vmem:[%s3850_s15 + $0x60] sm:$0xff] }
 0x3b8   : > { %v2541_v57 = vmax.f32 %v2509_v25, 0.0 }
 0x3b9   : > { %v2540_v43 = vmax.f32 %v2508_v29, 0.0 }
 0x3ba   : > { %2573 = vst [vmem:[%s5233_s9 + $0x8] sm:$0xff] %v2541_v57 }
 0x3bb   : > { %2572 = vst [vmem:[%s5233_s9] sm:$0xff] %v2540_v43  ;;  %v3038_v46 = vpop.f32.mrb[130].mxu0 }
 0x3bc   : > { %v2365_v47 = vadd.f32 %v3038_v46, %v5225_v54  ;;  %v2359_v34 = vpop.f32.mrb[131].mxu0 }
 0x3bd   : > { %v2360_v30 = vadd.f32 %v5225_v54, %v2359_v34 }
 0x3be   : > { %v2511_v5 = vadd.f32 %v3639_v61, %v2365_v47  ;;  %v3651_v47 = vld [vmem:[%s3850_s15 + $0x78] sm:$0xff] }
 0x3bf   : > { %v2510_v12 = vadd.f32 %v3640_v19, %v2360_v30  ;;  %v3652_v30 = vld [vmem:[%s3850_s15 + $0x70] sm:$0xff] }
 0x3c0   : > { %v2543_v41 = vmax.f32 %v2511_v5, 0.0 }
 0x3c1   : > { %v2542_v55 = vmax.f32 %v2510_v12, 0.0 }
 0x3c2   : > { %2575 = vst [vmem:[%s5233_s9 + $0x18] sm:$0xff] %v2543_v41 }
 0x3c3   : > { %2574 = vst [vmem:[%s5233_s9 + $0x10] sm:$0xff] %v2542_v55  ;;  %v3041_v36 = vpop.f32.mrb[132].mxu0 }
 0x3c4   : > { %v2375_v15 = vadd.f32 %v3041_v36, %v5225_v54  ;;  %v2369_v37 = vpop.f32.mrb[133].mxu0 }
 0x3c5   : > { %v2370_v13 = vadd.f32 %v5225_v54, %v2369_v37 }
 0x3c6   : > { %v2513_v44 = vadd.f32 %v3641_v18, %v2375_v15  ;;  %v3653_v15 = vld [vmem:[%s3850_s15 + $0x88] sm:$0xff] }
 0x3c7   : > { %v2512_v8 = vadd.f32 %v3642_v26, %v2370_v13  ;;  %v3654_v13 = vld [vmem:[%s3850_s15 + $0x80] sm:$0xff] }
 0x3c8   : > { %v2545_v28 = vmax.f32 %v2513_v44, 0.0 }
 0x3c9   : > { %v2544_v23 = vmax.f32 %v2512_v8, 0.0 }
 0x3ca   : > { %2577 = vst [vmem:[%s5233_s9 + $0x28] sm:$0xff] %v2545_v28 }
 0x3cb   : > { %2576 = vst [vmem:[%s5233_s9 + $0x20] sm:$0xff] %v2544_v23  ;;  %v3044_v51 = vpop.f32.mrb[134].mxu0 }
 0x3cc   : > { %v2385_v38 = vadd.f32 %v3044_v51, %v5225_v54  ;;  %v2379_v3 = vpop.f32.mrb[135].mxu0 }
 0x3cd   : > { %v2380_v39 = vadd.f32 %v5225_v54, %v2379_v3 }
 0x3ce   : > { %v2515_v32 = vadd.f32 %v3643_v33, %v2385_v38  ;;  %v3655_v38 = vld [vmem:[%s3850_s15 + $0x98] sm:$0xff] }
 0x3cf   : > { %v2514_v42 = vadd.f32 %v3644_v21, %v2380_v39  ;;  %v3656_v39 = vld [vmem:[%s3850_s15 + $0x90] sm:$0xff] }
 0x3d0   : > { %v2547_v31 = vmax.f32 %v2515_v32, 0.0 }
 0x3d1   : > { %v2546_v24 = vmax.f32 %v2514_v42, 0.0 }
 0x3d2   : > { %2579 = vst [vmem:[%s5233_s9 + $0x38] sm:$0xff] %v2547_v31 }
 0x3d3   : > { %2578 = vst [vmem:[%s5233_s9 + $0x30] sm:$0xff] %v2546_v24  ;;  %v3047_v4 = vpop.f32.mrb[136].mxu0 }
 0x3d4   : > { %v2395_v49 = vadd.f32 %v3047_v4, %v5225_v54  ;;  %v2389_v27 = vpop.f32.mrb[137].mxu0 }
 0x3d5   : > { %v2390_v35 = vadd.f32 %v5225_v54, %v2389_v27 }
 0x3d6   : > { %v2517_v16 = vadd.f32 %v3645_v10, %v2395_v49  ;;  %v3657_v49 = vld [vmem:[%s3850_s15 + $0xa8] sm:$0xff] }
 0x3d7   : > { %v2516_v52 = vadd.f32 %v3646_v22, %v2390_v35  ;;  %v3658_v35 = vld [vmem:[%s3850_s15 + $0xa0] sm:$0xff] }
 0x3d8   : > { %v2549_v53 = vmax.f32 %v2517_v16, 0.0 }
 0x3d9   : > { %v2548_v17 = vmax.f32 %v2516_v52, 0.0 }
 0x3da   : > { %2581 = vst [vmem:[%s5233_s9 + $0x48] sm:$0xff] %v2549_v53 }
 0x3db   : > { %2580 = vst [vmem:[%s5233_s9 + $0x40] sm:$0xff] %v2548_v17  ;;  %v3050_v56 = vpop.f32.mrb[138].mxu0 }
 0x3dc   : > { %v2405_v60 = vadd.f32 %v3050_v56, %v5225_v54  ;;  %v2399_v62 = vpop.f32.mrb[139].mxu0 }
 0x3dd   : > { %v2400_v2 = vadd.f32 %v5225_v54, %v2399_v62 }
 0x3de   : > { %v2519_v40 = vadd.f32 %v3647_v59, %v2405_v60  ;;  %v3659_v60 = vld [vmem:[%s3850_s15 + $0xb8] sm:$0xff] }
 0x3df   : > { %v2518_v58 = vadd.f32 %v3648_v0, %v2400_v2  ;;  %v3660_v2 = vld [vmem:[%s3850_s15 + $0xb0] sm:$0xff] }
 0x3e0   : > { %v2551_v14 = vmax.f32 %v2519_v40, 0.0 }
 0x3e1   : > { %v2550_v50 = vmax.f32 %v2518_v58, 0.0 }
 0x3e2   : > { %2583 = vst [vmem:[%s5233_s9 + $0x58] sm:$0xff] %v2551_v14 }
 0x3e3   : > { %2582 = vst [vmem:[%s5233_s9 + $0x50] sm:$0xff] %v2550_v50  ;;  %v3053_v1 = vpop.f32.mrb[140].mxu0 }
 0x3e4   : > { %v2415_v9 = vadd.f32 %v3053_v1, %v5225_v54  ;;  %v2409_v7 = vpop.f32.mrb[141].mxu0 }
 0x3e5   : > { %v2410_v63 = vadd.f32 %v5225_v54, %v2409_v7 }
 0x3e6   : > { %v2521_v48 = vadd.f32 %v3649_v20, %v2415_v9  ;;  %v3661_v9 = vld [vmem:[%s3850_s15 + $0xc8] sm:$0xff] }
 0x3e7   : > { %v2520_v45 = vadd.f32 %v3650_v6, %v2410_v63  ;;  %v3662_v63 = vld [vmem:[%s3850_s15 + $0xc0] sm:$0xff] }
 0x3e8   : > { %v2553_v25 = vmax.f32 %v2521_v48, 0.0 }
 0x3e9   : > { %v2552_v11 = vmax.f32 %v2520_v45, 0.0 }
 0x3ea   : > { %2585 = vst [vmem:[%s5233_s9 + $0x68] sm:$0xff] %v2553_v25 }
 0x3eb   : > { %2584 = vst [vmem:[%s5233_s9 + $0x60] sm:$0xff] %v2552_v11  ;;  %v3056_v29 = vpop.f32.mrb[142].mxu0 }
 0x3ec   : > { %v2425_v57 = vadd.f32 %v3056_v29, %v5225_v54  ;;  %v2419_v43 = vpop.f32.mrb[143].mxu0 }
 0x3ed   : > { %v2420_v46 = vadd.f32 %v5225_v54, %v2419_v43 }
 0x3ee   : > { %v2523_v34 = vadd.f32 %v3651_v47, %v2425_v57  ;;  %v3663_v57 = vld [vmem:[%s3850_s15 + $0xd8] sm:$0xff] }
 0x3ef   : > { %v2522_v61 = vadd.f32 %v3652_v30, %v2420_v46  ;;  %v3664_v46 = vld [vmem:[%s3850_s15 + $0xd0] sm:$0xff] }
 0x3f0   : > { %v2555_v5 = vmax.f32 %v2523_v34, 0.0 }
 0x3f1   : > { %v2554_v19 = vmax.f32 %v2522_v61, 0.0 }
 0x3f2   : > { %2587 = vst [vmem:[%s5233_s9 + $0x78] sm:$0xff] %v2555_v5 }
 0x3f3   : > { %2586 = vst [vmem:[%s5233_s9 + $0x70] sm:$0xff] %v2554_v19  ;;  %v3059_v12 = vpop.f32.mrb[144].mxu0 }
 0x3f4   : > { %v2435_v41 = vadd.f32 %v3059_v12, %v5225_v54  ;;  %v2429_v55 = vpop.f32.mrb[145].mxu0 }
 0x3f5   : > { %v2430_v36 = vadd.f32 %v5225_v54, %v2429_v55 }
 0x3f6   : > { %v2525_v37 = vadd.f32 %v3653_v15, %v2435_v41  ;;  %v3665_v41 = vld [vmem:[%s3850_s15 + $0xe8] sm:$0xff] }
 0x3f7   : > { %v2524_v18 = vadd.f32 %v3654_v13, %v2430_v36  ;;  %v3666_v36 = vld [vmem:[%s3850_s15 + $0xe0] sm:$0xff] }
 0x3f8   : > { %v2557_v44 = vmax.f32 %v2525_v37, 0.0 }
 0x3f9   : > { %v2556_v26 = vmax.f32 %v2524_v18, 0.0 }
 0x3fa   : > { %2589 = vst [vmem:[%s5233_s9 + $0x88] sm:$0xff] %v2557_v44 }
 0x3fb   : > { %2588 = vst [vmem:[%s5233_s9 + $0x80] sm:$0xff] %v2556_v26  ;;  %v3062_v8 = vpop.f32.mrb[146].mxu0 }
 0x3fc   : > { %v2445_v28 = vadd.f32 %v3062_v8, %v5225_v54  ;;  %v2439_v23 = vpop.f32.mrb[147].mxu0 }
 0x3fd   : > { %v2440_v51 = vadd.f32 %v5225_v54, %v2439_v23 }
 0x3fe   : > { %v2527_v3 = vadd.f32 %v3655_v38, %v2445_v28  ;;  %v3667_v28 = vld [vmem:[%s3850_s15 + $0xf8] sm:$0xff] }
 0x3ff   : > { %v2526_v33 = vadd.f32 %v3656_v39, %v2440_v51  ;;  %v3668_v51 = vld [vmem:[%s3850_s15 + $0xf0] sm:$0xff]  ;;  %s3735_s15 = smov [#allocation3]  }
 0x400   : > { %v2559_v32 = vmax.f32 %v2527_v3, 0.0  ;;  %s3673_s20 = sshll.u32 %s3735_s15, 4  ;;  %s3674_s20 = int_to_ptr.vmem [resolvable:$false] %s3673_s20 }
 0x401   : > { %v2558_v21 = vmax.f32 %v2526_v33, 0.0  ;;  %s3675_s21 = scalar_lea.vmem %s3674_s20, 8192  ;;  %p3676_p0 = scmp.lt.s32.totalorder %s5332_s14, %s3674_s20 }
 0x402   : > { %2591 = vst [vmem:[%s5233_s9 + $0x98] sm:$0xff] %v2559_v32  ;;  %p3677_p1 = scmp.lt.s32.totalorder %s3675_s21, %s3669_s19 }
 0x403   : > { %2590 = vst [vmem:[%s5233_s9 + $0x90] sm:$0xff] %v2558_v21  ;;  %v3065_v42 = vpop.f32.mrb[148].mxu0 }
 0x404   : > { %v2455_v31 = vadd.f32 %v3065_v42, %v5225_v54  ;;  %v2449_v24 = vpop.f32.mrb[149].mxu0  ;;  %p3678_p2 = por %p3677_p1, %p3676_p0 }
 0x405   : > { %v2450_v4 = vadd.f32 %v5225_v54, %v2449_v24 }
 0x406   : > { %v2529_v27 = vadd.f32 %v3657_v49, %v2455_v31  ;;  %p3679_p3 = pnand %p3678_p2, %p3672_p13 }
 0x407   : > { %v2528_v10 = vadd.f32 %v3658_v35, %v2450_v4 }
 0x408   : > { %v2561_v16 = vmax.f32 %v2529_v27, 0.0 }
 0x409   : > { %v2560_v22 = vmax.f32 %v2528_v10, 0.0 }
 0x40a   : > { %2593 = vst [vmem:[%s5233_s9 + $0xa8] sm:$0xff] %v2561_v16 }
 0x40b   : > { %2592 = vst [vmem:[%s5233_s9 + $0xa0] sm:$0xff] %v2560_v22  ;;  %v3068_v52 = vpop.f32.mrb[150].mxu0 }
 0x40c   : > { %v2465_v53 = vadd.f32 %v3068_v52, %v5225_v54  ;;  %v2459_v17 = vpop.f32.mrb[151].mxu0 }
 0x40d   : > { %v2460_v56 = vadd.f32 %v5225_v54, %v2459_v17 }
 0x40e   : > { %v2531_v62 = vadd.f32 %v3659_v60, %v2465_v53 }
 0x40f   : > { %v2530_v59 = vadd.f32 %v3660_v2, %v2460_v56 }
 0x410   : > { %v2563_v40 = vmax.f32 %v2531_v62, 0.0 }
 0x411   : > { %v2562_v0 = vmax.f32 %v2530_v59, 0.0 }
 0x412   : > { %2595 = vst [vmem:[%s5233_s9 + $0xb8] sm:$0xff] %v2563_v40 }
 0x413   : > { %2594 = vst [vmem:[%s5233_s9 + $0xb0] sm:$0xff] %v2562_v0  ;;  %v3071_v58 = vpop.f32.mrb[152].mxu0 }
 0x414   : > { %v2475_v14 = vadd.f32 %v3071_v58, %v5225_v54  ;;  %v2469_v50 = vpop.f32.mrb[153].mxu0 }
 0x415   : > { %v2470_v1 = vadd.f32 %v5225_v54, %v2469_v50 }
 0x416   : > { %v2533_v7 = vadd.f32 %v3661_v9, %v2475_v14 }
 0x417   : > { %v2532_v20 = vadd.f32 %v3662_v63, %v2470_v1 }
 0x418   : > { %v2565_v48 = vmax.f32 %v2533_v7, 0.0 }
 0x419   : > { %v2564_v6 = vmax.f32 %v2532_v20, 0.0 }
 0x41a   : > { %2597 = vst [vmem:[%s5233_s9 + $0xc8] sm:$0xff] %v2565_v48 }
 0x41b   : > { %2596 = vst [vmem:[%s5233_s9 + $0xc0] sm:$0xff] %v2564_v6  ;;  %v3074_v45 = vpop.f32.mrb[154].mxu0 }
 0x41c   : > { %v2485_v25 = vadd.f32 %v3074_v45, %v5225_v54  ;;  %v2479_v11 = vpop.f32.mrb[155].mxu0 }
 0x41d   : > { %v2480_v29 = vadd.f32 %v5225_v54, %v2479_v11 }
 0x41e   : > { %v2535_v43 = vadd.f32 %v3663_v57, %v2485_v25 }
 0x41f   : > { %v2534_v47 = vadd.f32 %v3664_v46, %v2480_v29 }
 0x420   : > { %v2567_v34 = vmax.f32 %v2535_v43, 0.0 }
 0x421   : > { %v2566_v30 = vmax.f32 %v2534_v47, 0.0 }
 0x422   : > { %2599 = vst [vmem:[%s5233_s9 + $0xd8] sm:$0xff] %v2567_v34 }
 0x423   : > { %2598 = vst [vmem:[%s5233_s9 + $0xd0] sm:$0xff] %v2566_v30  ;;  %v3077_v61 = vpop.f32.mrb[156].mxu0 }
 0x424   : > { %v2495_v5 = vadd.f32 %v3077_v61, %v5225_v54  ;;  %v2489_v19 = vpop.f32.mrb[157].mxu0 }
 0x425   : > { %v2490_v12 = vadd.f32 %v5225_v54, %v2489_v19 }
 0x426   : > { %v2537_v55 = vadd.f32 %v3665_v41, %v2495_v5 }
 0x427   : > { %v2536_v15 = vadd.f32 %v3666_v36, %v2490_v12 }
 0x428   : > { %v2569_v37 = vmax.f32 %v2537_v55, 0.0 }
 0x429   : > { %v2568_v13 = vmax.f32 %v2536_v15, 0.0 }
 0x42a   : > { %2601 = vst [vmem:[%s5233_s9 + $0xe8] sm:$0xff] %v2569_v37 }
 0x42b   : > { %2600 = vst [vmem:[%s5233_s9 + $0xe0] sm:$0xff] %v2568_v13  ;;  %v3080_v18 = vpop.f32.mrb[158].mxu0 }
 0x42c   : > { %v2505_v44 = vadd.f32 %v3080_v18, %v5225_v54  ;;  %v2499_v26 = vpop.f32.mrb[159].mxu0 }
 0x42d   : > { %v2500_v8 = vadd.f32 %v5225_v54, %v2499_v26 }
 0x42e   : > { %v2539_v23 = vadd.f32 %v3667_v28, %v2505_v44 }
 0x42f   : > { %v2538_v38 = vadd.f32 %v3668_v51, %v2500_v8 }
 0x430   : > { %v2571_v3 = vmax.f32 %v2539_v23, 0.0 }
 0x431   : > { %v2570_v39 = vmax.f32 %v2538_v38, 0.0 }
 0x432   : > { %2603 = vst [vmem:[%s5233_s9 + $0xf8] sm:$0xff] %v2571_v3 }
 0x433   : > { %2602 = vst [vmem:[%s5233_s9 + $0xf0] sm:$0xff] %v2570_v39 }
 0x434   : > { %3682 = shalt.err (!%p3679_p3)
}
 0x435   : > { %s3683_s22 = scalar_lea.hbm %s5330_s18, 4096  ;;  %s3687_s8 = scalar_lea.hbm %s5386_s7, 8192 }
 0x436   : > { %p3684_p4 = scmp.ne.s32.totalorder %s5330_s18, %s3683_s22  ;;  %p3688_p9 = scmp.lt.u32.totalorder %s5330_s18, %s5386_s7 }
 0x437   : > { %p3689_p10 = scmp.lt.u32.totalorder %s3687_s8, %s3683_s22  ;;  %p3691_p12 = scmp.lt.u32.totalorder %s3683_s22, %s5330_s18 }
 0x438   : > { %p3685_p7 = pnand %p3684_p4, %p3816_p5 }
 0x439   : > { %p3690_p11 = por %p3689_p10, %p3688_p9 }
 0x43a   : > { %p3686_p8 = pneg %p3685_p7 }
 0x43b   : > { %p3692_p13 = por %p3691_p12, %p3690_p11 }
 0x43d   : > { %p3693_p0 = pnand %p3692_p13, %p3686_p8 }
 0x43f   : > { %3696 = shalt.err (!%p3693_p0)
}
 0x440   : > { %s3736_s16 = smov 128   ;;  %s3737_s17 = smov 8  }
 0x441   : > { %3593 = dma.vmem_to_hbm [thread:$0]  (%p3816_p5), %s5332_s14, 4096, %s5330_s18, %s5338_s28, %s3736_s16, %s3736_s16, %s3737_s17  }
 0x442 PF: > { %p3599_p1 = scmp.ge.s32.totalorder %s3731_s27, 2  ;;  %s2633_s19 = sand.u32 1, %s3719_s24  }
 0x443   : > { %s2634_s15 = scalar_lea.sflag [#allocation4], %s2633_s19 }
 0x444   : > { %p3596_p2 = pnand %p3599_p1, %p3820_p6 }
 0x446   : > { %3714 = dma.done.wait (!%p3596_p2), %s2634_s15, 4096  }
 0x447   : > { %3716 = vsyncadd (!%p3596_p2), %s2634_s15, 4294963200  ;;  %p17_p3 = scmp.ge.s32.totalorder %s3803_s30, 4   ;;  %s5451_s24 = smov %s3723_s25 }
 0x448   : > { %s5452_s25 = smov %s3727_s26  ;;  %s5453_s26 = smov %s3814_s10 }
 0x449   : > { %s5454_s27 = smov %s3803_s30  ;;  %19 = sbr.rel (!%p17_p3) target bundleno = 3 (0x3), region = 86 }
 0x450   :  { %2639 = vsyncpa [#allocation4], 1 }
 0x451   :  { %2641 = vsyncpa [#allocation4 + $0x1], 1 }

</bundles_post_ra>
